<compile_context>
chip_gen: v7x
topology: tpu7x:2x2x1
jax: 0.10.0
libtpu: 0.0.40
codegen_flags: <defaults>
</compile_context>

<pallas_src>
import functools

import jax
import jax.numpy as jnp
from jax.experimental import pallas as pl
from jax.experimental.pallas import tpu as pltpu

_EPS = 1e-5
_LANES = 128
_VMEM_LIMIT_BYTES = 32 * 1024 * 1024  # generous for these tiles; safe on v7x


def _round_up(v, m):
    return (v + m - 1) // m * m


def _row_tiling(m, target=1024):
    """Pick a row tile (multiple of 8, <= ~target) and a padded row count.

    Prefers a tile that divides m exactly (no padding).  Otherwise the rows
    are zero-padded up to a multiple of the tile; padded rows are exactly zero
    so BN sums are unaffected (count stays the real N*H*W)."""
    cap = min(target, _round_up(m, 8))
    cap = max((cap // 8) * 8, 8)
    t = cap
    while t >= 256:
        if m % t == 0:
            return t, m
        t -= 8
    if m % cap == 0:
        return cap, m
    nblk = -(-m // cap)
    tile = _round_up(-(-m // nblk), 8)
    return tile, tile * nblk


def _pick_h_tile(h):
    """Largest divisor of h that is <= min(32, h//2) (>=2 strips if possible)."""
    max_rows = max(1, min(32, h // 2))
    t = min(h, max_rows)
    while t > 1 and h % t:
        t -= 1
    return t


def _pad_last(a, cp):
    c = a.shape[-1]
    if c == cp:
        return a
    pad = [(0, 0)] * (a.ndim - 1) + [(0, cp - c)]
    return jnp.pad(a, pad)


# ---------------------------------------------------------------------------
# Kernels
# ---------------------------------------------------------------------------
def _matmul_bias_stats_kernel(x_ref, w_ref, b_ref, y_ref, st_ref):
    """y = x @ w + b (bf16 store); stats (sum, sum_sq) of the pre-bias f32 z.

    x_ref : (Mt, Cp)  bf16 activation row-tile
    w_ref : (Cp, Cp)  bf16 1x1-conv weight, (in, out) layout (affine pre-folded)
    b_ref : (1, Cp)   f32 folded bias (zeros for pass 1)
    y_ref : (Mt, Cp)  bf16 output tile
    st_ref: (1, 2, Cp) f32 per-tile BN partials of z = x @ w (pre-bias)
    """
    z = jnp.dot(x_ref[...], w_ref[...], preferred_element_type=jnp.float32)
    y_ref[...] = (z + b_ref[...]).astype(y_ref.dtype)
    st_ref[0, 0:1, :] = jnp.sum(z, axis=0, keepdims=True)
    st_ref[0, 1:2, :] = jnp.sum(z * z, axis=0, keepdims=True)


def _dw_conv_stats_kernel(mid_ref, top_ref, bot_ref, w_ref, p_ref,
                          y_ref, st_ref):
    """BN1-apply + ReLU + 3x3 depthwise conv (stride 1, pad 1) on one H-strip.

    mid_ref: (1, Th, W, Cp) bf16  conv1 output strip (pre-BN1)
    top_ref: (1, 1,  W, Cp) bf16  row just above the strip (clamped at i==0)
    bot_ref: (1, 1,  W, Cp) bf16  row just below the strip (clamped at last)
    w_ref  : (3, 3, Cp)     f32   depthwise taps
    p_ref  : (2, Cp)        f32   BN1 scale / shift
    y_ref  : (1, Th, W, Cp) bf16  depthwise output strip (pre-BN2)
    st_ref : (1, 2, Cp)     f32   per-strip BN2 partials (sum, sum_sq)
    """
    th = mid_ref.shape[1]
    wd = mid_ref.shape[2]
    cp = mid_ref.shape[3]
    i = pl.program_id(1)
    last = pl.num_programs(1) - 1

    scale = p_ref[0:1, :].reshape(1, 1, cp)
    shift = p_ref[1:2, :].reshape(1, 1, cp)

    def bn_relu(v):  # upcast to f32 (v5e has no bf16 VALU), affine, ReLU
        return jnp.maximum(v.astype(jnp.float32) * scale + shift, 0.0)

    # Image-boundary halo rows must be zero *after* the affine+ReLU (the conv
    # zero-padding acts on the activated tensor in the reference).
    top = jnp.where(i == 0, 0.0, bn_relu(top_ref[0]))
    bot = jnp.where(i == last, 0.0, bn_relu(bot_ref[0]))
    rows = jnp.concatenate([top, bn_relu(mid_ref[0]), bot], axis=0)  # (Th+2,W,Cp)

    # Width shifts via XLU rotate + boundary mask (no unaligned sublane slices).
    col = jax.lax.broadcasted_iota(jnp.int32, (1, wd, 1), 1)
    left = jnp.where(col == 0, 0.0, pltpu.roll(rows, shift=1, axis=1))
    right = jnp.where(col == wd - 1, 0.0, pltpu.roll(rows, shift=wd - 1, axis=1))

    w = w_ref[...]
    taps = (left, rows, right)              # dx = -1, 0, +1
    acc = jnp.zeros((th, wd, cp), jnp.float32)
    for dy in range(3):
        for dx in range(3):
            acc = acc + taps[dx][dy:dy + th] * w[dy:dy + 1, dx:dx + 1, :]

    y_ref[0] = acc.astype(y_ref.dtype)
    st_ref[0, 0:1, :] = jnp.sum(jnp.sum(acc, axis=0), axis=0, keepdims=True)
    st_ref[0, 1:2, :] = jnp.sum(jnp.sum(acc * acc, axis=0), axis=0, keepdims=True)


# ---------------------------------------------------------------------------
# Pass wrappers (pallas_call)
# ---------------------------------------------------------------------------
def _matmul_pass(x, w, b, mt):
    mp, cp = x.shape
    g = mp // mt
    cost = pl.CostEstimate(flops=2 * mp * cp * cp + 5 * mp * cp,
                           transcendentals=0,
                           bytes_accessed=4 * mp * cp + 2 * cp * cp + 8 * g * cp)
    return pl.pallas_call(
        _matmul_bias_stats_kernel,
        out_shape=(jax.ShapeDtypeStruct((mp, cp), jnp.bfloat16),
                   jax.ShapeDtypeStruct((g, 2, cp), jnp.float32)),
        grid_spec=pltpu.PrefetchScalarGridSpec(
            num_scalar_prefetch=0,
            grid=(g,),
            in_specs=[pl.BlockSpec((mt, cp), lambda i: (i, 0)),
                      pl.BlockSpec((cp, cp), lambda i: (0, 0)),
                      pl.BlockSpec((1, cp), lambda i: (0, 0))],
            out_specs=[pl.BlockSpec((mt, cp), lambda i: (i, 0)),
                       pl.BlockSpec((1, 2, cp), lambda i: (i, 0, 0))]),
        compiler_params=pltpu.CompilerParams(
            dimension_semantics=("parallel",),
            vmem_limit_bytes=_VMEM_LIMIT_BYTES),
        cost_estimate=cost,
    )(x, w, b)


def _depthwise_pass(x, w, p, th):
    n, h, wd, cp = x.shape
    nh = h // th
    cost = pl.CostEstimate(
        flops=25 * n * h * wd * cp, transcendentals=0,
        bytes_accessed=int(2 * n * h * wd * cp * (2 + 2.0 / th)))
    return pl.pallas_call(
        _dw_conv_stats_kernel,
        out_shape=(jax.ShapeDtypeStruct((n, h, wd, cp), jnp.bfloat16),
                   jax.ShapeDtypeStruct((n * nh, 2, cp), jnp.float32)),
        grid_spec=pltpu.PrefetchScalarGridSpec(
            num_scalar_prefetch=0,
            grid=(n, nh),
            in_specs=[
                pl.BlockSpec((1, th, wd, cp), lambda b, i: (b, i, 0, 0)),
                pl.BlockSpec((1, 1, wd, cp),
                             lambda b, i: (b, jnp.maximum(i * th - 1, 0), 0, 0)),
                pl.BlockSpec((1, 1, wd, cp),
                             lambda b, i: (b, jnp.minimum((i + 1) * th, h - 1),
                                           0, 0)),
                pl.BlockSpec((3, 3, cp), lambda b, i: (0, 0, 0)),
                pl.BlockSpec((2, cp), lambda b, i: (0, 0)),
            ],
            out_specs=[
                pl.BlockSpec((1, th, wd, cp), lambda b, i: (b, i, 0, 0)),
                pl.BlockSpec((1, 2, cp), lambda b, i: (b * nh + i, 0, 0)),
            ]),
        compiler_params=pltpu.CompilerParams(
            dimension_semantics=("parallel", "parallel"),
            vmem_limit_bytes=_VMEM_LIMIT_BYTES),
        cost_estimate=cost,
    )(x, x, x, w, p)


# ---------------------------------------------------------------------------
# Wrapper
# ---------------------------------------------------------------------------
def _bn_scale_shift(partials, count, gamma_p, beta_p, bias=None):
    """Fold batch statistics (sum / sum_sq of the *pre-bias* z) into scale/shift.

    mean(z + b) = mean(z) + b, var(z + b) = var(z), so a constant folded bias
    only shifts the mean.  Padded rows/channels contribute exactly zero.
    """
    tot = jnp.sum(partials.reshape(-1, 2, partials.shape[-1]), axis=0)  # (2,Cp)
    mean = tot[0] / count
    var = jnp.maximum(tot[1] / count - mean * mean, 0.0)  # one-pass variance
    if bias is not None:
        mean = mean + bias
    scale = gamma_p * jax.lax.rsqrt(var + _EPS)
    shift = beta_p - mean * scale
    return jnp.stack([scale, shift], axis=0).astype(jnp.float32)


def basic_block_forward(x, w1, w2, w3, g1, b1, g2, b2, g3, b3,
                        split_ratio=0.5, groups=2):
    """x: NCHW float32 -> NCHW (training-mode BatchNorm, like the PyTorch
    module in its default state)."""
    N, C, H, W = x.shape
    c = int(C * split_ratio)
    C2 = C - c
    Cp = _round_up(C2, _LANES)
    M = N * H * W
    Mt, Mp = _row_tiling(M)
    Th = _pick_h_tile(H)
    count = jnp.float32(M)
    f32, bf16 = jnp.float32, jnp.bfloat16

    x1 = x[:, :c]                                             # passthrough half
    x2 = jnp.transpose(x[:, c:], (0, 2, 3, 1)).reshape(M, C2)
    x2p = _pad_last(x2.astype(f32), Cp).astype(bf16)
    if Mp != M:
        x2p = jnp.pad(x2p, ((0, Mp - M), (0, 0)))             # zero rows only

    # Weight / BN-param re-layout, zero-padded to Cp lanes (padded channels
    # stay exactly zero through the whole branch since gamma/beta pad to zero).
    w1p = jnp.zeros((Cp, Cp), f32).at[:C2, :C2].set(
        jnp.transpose(w1[:, :, 0, 0]).astype(f32)).astype(bf16)
    w3p = jnp.zeros((Cp, Cp), f32).at[:C2, :C2].set(
        jnp.transpose(w3[:, :, 0, 0]).astype(f32))
    w2p = _pad_last(jnp.transpose(w2[:, 0, :, :], (1, 2, 0)).astype(f32), Cp)
    g1p, b1p = _pad_last(g1.astype(f32), Cp), _pad_last(b1.astype(f32), Cp)
    g2p, b2p = _pad_last(g2.astype(f32), Cp), _pad_last(b2.astype(f32), Cp)
    g3p, b3p = _pad_last(g3.astype(f32), Cp), _pad_last(b3.astype(f32), Cp)
    zero_bias = jnp.zeros((1, Cp), f32)

    # pass 1: conv1 (1x1, MXU matmul) + BN1 partial stats.
    y1, st1 = _matmul_pass(x2p, w1p, zero_bias, Mt)
    p1 = _bn_scale_shift(st1, count, g1p, b1p)

    # pass 2: BN1-apply + ReLU + 3x3 depthwise conv + BN2 partial stats,
    # H-strip tiled with 1-row halos.
    y1_img = y1[:M].reshape(N, H, W, Cp)
    y2, st2 = _depthwise_pass(y1_img, w2p, p1, Th)
    p2 = _bn_scale_shift(st2, count, g2p, b2p)

    # Fold BN2 into conv3: (y2*s2 + t2) @ W3 == y2 @ (diag(s2) W3) + t2 @ W3.
    w3_eff = (p2[0][:, None] * w3p).astype(bf16)
    bias3 = (p2[1] @ w3p).reshape(1, Cp)

    y2f = y2.reshape(M, Cp)
    if Mp != M:
        y2f = jnp.pad(y2f, ((0, Mp - M), (0, 0)))
    # pass 3: conv3 (1x1, MXU matmul, BN2 pre-folded) + BN3 partial stats.
    y3, st3 = _matmul_pass(y2f, w3_eff, bias3, Mt)
    p3 = _bn_scale_shift(st3, count, g3p, b3p, bias=bias3[0])

    # BN3 + ReLU applied here (no 4th Pallas pass) so XLA fuses it into the
    # reshape/transpose/concat/channel-shuffle layout epilogue.
    br = jnp.maximum(y3[:M, :C2].astype(f32) * p3[0, :C2] + p3[1, :C2], 0.0)
    br_nchw = jnp.transpose(br.reshape(N, H, W, C2), (0, 3, 1, 2)).astype(x.dtype)

    cat = jnp.concatenate([x1, br_nchw], axis=1)
    Cg = C // groups
    out = (cat.reshape(N, groups, Cg, H, W)
              .transpose(0, 2, 1, 3, 4)
              .reshape(N, C, H, W))
    return out


# ---------------------------------------------------------------------------
# Pure-JAX reference (mirrors the PyTorch forward, training-mode BN)
# ---------------------------------------------------------------------------
def _reference_forward(x, w1, w2, w3, g1, b1, g2, b2, g3, b3,
                       split_ratio=0.5, groups=2):
    N, C, H, W = x.shape
    c = int(C * split_ratio)
    x1, x2 = x[:, :c], x[:, c:]
    C2 = C - c
    dn = ("NCHW", "OIHW", "NCHW")

    def bn(y, g, b):
        mean = y.mean(axis=(0, 2, 3), keepdims=True)
        var = ((y - mean) ** 2).mean(axis=(0, 2, 3), keepdims=True)
        return ((y - mean) / jnp.sqrt(var + _EPS)
                * g.reshape(1, -1, 1, 1) + b.reshape(1, -1, 1, 1))

    out = jax.lax.conv_general_dilated(x2, w1, (1, 1), "VALID",
                                       dimension_numbers=dn)
    out = jax.nn.relu(bn(out, g1, b1))
    out = jax.lax.conv_general_dilated(out, w2, (1, 1), ((1, 1), (1, 1)),
                                       feature_group_count=C2,
                                       dimension_numbers=dn)
    out = bn(out, g2, b2)
    out = jax.lax.conv_general_dilated(out, w3, (1, 1), "VALID",
                                       dimension_numbers=dn)
    out = jax.nn.relu(bn(out, g3, b3))
    cat = jnp.concatenate([x1, out], axis=1)
    Cg = C // groups
    return (cat.reshape(N, groups, Cg, H, W)
               .transpose(0, 2, 1, 3, 4)
               .reshape(N, C, H, W))


if __name__ == "__main__":
    N, C, H, W = 2, 16, 32, 32
    split_ratio, groups = 0.5, 2
    C2 = C - int(C * split_ratio)

    key = jax.random.PRNGKey(0)
    kx, k1, k2, k3, kg = jax.random.split(key, 5)
    x = jax.random.normal(kx, (N, C, H, W), jnp.float32)

    # Deterministic synthetic parameters (PyTorch shapes).
    w1 = jax.random.normal(k1, (C2, C2, 1, 1), jnp.float32) / jnp.sqrt(C2)
    w2 = jax.random.normal(k2, (C2, 1, 3, 3), jnp.float32) / 3.0
    w3 = jax.random.normal(k3, (C2, C2, 1, 1), jnp.float32) / jnp.sqrt(C2)
    kg1, kb1, kg2, kb2, kg3, kb3 = jax.random.split(kg, 6)
    g1 = 1.0 + 0.1 * jax.random.normal(kg1, (C2,), jnp.float32)
    b1 = 0.1 * jax.random.normal(kb1, (C2,), jnp.float32)
    g2 = 1.0 + 0.1 * jax.random.normal(kg2, (C2,), jnp.float32)
    b2 = 0.1 * jax.random.normal(kb2, (C2,), jnp.float32)
    g3 = 1.0 + 0.1 * jax.random.normal(kg3, (C2,), jnp.float32)
    b3 = 0.1 * jax.random.normal(kb3, (C2,), jnp.float32)

    fwd = jax.jit(functools.partial(basic_block_forward,
                                    split_ratio=split_ratio, groups=groups))
    out = jax.block_until_ready(fwd(x, w1, w2, w3, g1, b1, g2, b2, g3, b3))
    assert out.shape == (N, C, H, W)

    ref = _reference_forward(x, w1, w2, w3, g1, b1, g2, b2, g3, b3,
                             split_ratio=split_ratio, groups=groups)
    ref = jax.block_until_ready(ref)
    # bf16 intermediates -> ~2-3 significant decimal digits end to end.
    max_diff = float(jnp.max(jnp.abs(out - ref)))
    assert jnp.allclose(out, ref, atol=5e-2, rtol=5e-2), (
        "max abs diff = %e" % max_diff)

    print("KERNEL_OK")
</pallas_src>

<mosaic_0001>
module attributes {stable_mosaic.version = 11 : i64} {
  func.func @_matmul_bias_stats_kernel(%arg0: i32, %arg1: memref<1024x128xbf16, #tpu.memory_space<vmem>>, %arg2: memref<128x128xbf16, #tpu.memory_space<vmem>>, %arg3: memref<1x128xf32, #tpu.memory_space<vmem>>, %arg4: memref<1024x128xbf16, #tpu.memory_space<vmem>>, %arg5: memref<1x2x128xf32, #tpu.memory_space<vmem>>) attributes {dimension_semantics = [#tpu.dimension_semantics<parallel>], iteration_bounds = array<i64: 2>, scalar_prefetch = 0 : i64, scratch_operands = 0 : i64, tpu.core_type = #tpu.core_type<tc>, window_params = [{transform_indices = @transform_0, window_bounds = array<i64: 1024, 128>}, {pipeline_mode = #tpu.pipeline_mode<synchronous>, transform_indices = @transform_1, window_bounds = array<i64: 128, 128>}, {pipeline_mode = #tpu.pipeline_mode<synchronous>, transform_indices = @transform_2, window_bounds = array<i64: 1, 128>}, {transform_indices = @transform_3, window_bounds = array<i64: 1024, 128>}, {transform_indices = @transform_4, window_bounds = array<i64: 1, 2, 128>}]} {
    %c0 = arith.constant 0 : index
    %c0_0 = arith.constant 0 : index
    %0 = vector.load %arg1[%c0, %c0_0] : memref<1024x128xbf16, #tpu.memory_space<vmem>>, vector<1024x128xbf16>
    %c0_1 = arith.constant 0 : index
    %c0_2 = arith.constant 0 : index
    %1 = vector.load %arg2[%c0_1, %c0_2] : memref<128x128xbf16, #tpu.memory_space<vmem>>, vector<128x128xbf16>
    %cst = arith.constant dense<0.000000e+00> : vector<1024x128xf32>
    %2 = tpu.matmul %0, %1, %cst {dimension_numbers = #tpu.dot_dimension_numbers<[1], [0], [0], [1], [0, 0, 1, 1], [], []>} : vector<1024x128xbf16>, vector<128x128xbf16>, vector<1024x128xf32> -> vector<1024x128xf32>
    %c0_3 = arith.constant 0 : index
    %c0_4 = arith.constant 0 : index
    %3 = vector.load %arg3[%c0_3, %c0_4] : memref<1x128xf32, #tpu.memory_space<vmem>>, vector<1x128xf32>
    %4 = vector.broadcast %3 : vector<1x128xf32> to vector<1024x128xf32>
    %5 = arith.addf %2, %4 : vector<1024x128xf32>
    %6 = arith.truncf %5 : vector<1024x128xf32> to vector<1024x128xbf16>
    %c0_5 = arith.constant 0 : index
    %c0_6 = arith.constant 0 : index
    %7 = vector.load %arg4[%c0_5, %c0_6] : memref<1024x128xbf16, #tpu.memory_space<vmem>>, vector<1024x128xbf16>
    tpu.vector_store %arg4[%c0_5, %c0_6], %6 {strides = array<i32>} : memref<1024x128xbf16, #tpu.memory_space<vmem>>, vector<1024x128xbf16>,
    %cst_7 = arith.constant dense<0.000000e+00> : vector<128xf32>
    %8 = vector.multi_reduction <add>, %2, %cst_7 [0] : vector<1024x128xf32> to vector<128xf32>
    %9 = vector.shape_cast %8 : vector<128xf32> to vector<1x128xf32>
    %c0_8 = arith.constant 0 : index
    %c0_9 = arith.constant 0 : index
    %c0_10 = arith.constant 0 : index
    %10 = vector.load %arg5[%c0_8, %c0_9, %c0_10] : memref<1x2x128xf32, #tpu.memory_space<vmem>>, vector<1x1x128xf32>
    %11 = vector.shape_cast %10 : vector<1x1x128xf32> to vector<1x128xf32>
    %12 = vector.shape_cast %9 : vector<1x128xf32> to vector<1x1x128xf32>
    tpu.vector_store %arg5[%c0_8, %c0_9, %c0_10], %12 {strides = array<i32>} : memref<1x2x128xf32, #tpu.memory_space<vmem>>, vector<1x1x128xf32>,
    %13 = arith.mulf %2, %2 : vector<1024x128xf32>
    %cst_11 = arith.constant dense<0.000000e+00> : vector<128xf32>
    %14 = vector.multi_reduction <add>, %13, %cst_11 [0] : vector<1024x128xf32> to vector<128xf32>
    %15 = vector.shape_cast %14 : vector<128xf32> to vector<1x128xf32>
    %c0_12 = arith.constant 0 : index
    %c1 = arith.constant 1 : index
    %c0_13 = arith.constant 0 : index
    %16 = vector.load %arg5[%c0_12, %c1, %c0_13] : memref<1x2x128xf32, #tpu.memory_space<vmem>>, vector<1x1x128xf32>
    %17 = vector.shape_cast %16 : vector<1x1x128xf32> to vector<1x128xf32>
    %18 = vector.shape_cast %15 : vector<1x128xf32> to vector<1x1x128xf32>
    tpu.vector_store %arg5[%c0_12, %c1, %c0_13], %18 {strides = array<i32>} : memref<1x2x128xf32, #tpu.memory_space<vmem>>, vector<1x1x128xf32>,
    return
  }
  func.func @transform_0(%arg0: i32) -> (i32, i32) {
    %c0_i32 = arith.constant 0 : i32
    %c0_i32_0 = arith.constant 0 : i32
    return %arg0, %c0_i32 : i32, i32
  }
  func.func @transform_1(%arg0: i32) -> (i32, i32) {
    %c0_i32 = arith.constant 0 : i32
    %c0_i32_0 = arith.constant 0 : i32
    %c0_i32_1 = arith.constant 0 : i32
    return %c0_i32, %c0_i32_0 : i32, i32
  }
  func.func @transform_2(%arg0: i32) -> (i32, i32) {
    %c0_i32 = arith.constant 0 : i32
    %c0_i32_0 = arith.constant 0 : i32
    %c0_i32_1 = arith.constant 0 : i32
    return %c0_i32, %c0_i32_0 : i32, i32
  }
  func.func @transform_3(%arg0: i32) -> (i32, i32) {
    %c0_i32 = arith.constant 0 : i32
    %c0_i32_0 = arith.constant 0 : i32
    return %arg0, %c0_i32 : i32, i32
  }
  func.func @transform_4(%arg0: i32) -> (i32, i32, i32) {
    %c0_i32 = arith.constant 0 : i32
    %c0_i32_0 = arith.constant 0 : i32
    %c0_i32_1 = arith.constant 0 : i32
    return %arg0, %c0_i32, %c0_i32_0 : i32, i32, i32
  }
}

module attributes {stable_mosaic.version = 11 : i64} {
  func.func @_dw_conv_stats_kernel(%arg0: i32, %arg1: i32, %arg2: memref<1x16x32x128xbf16, #tpu.memory_space<vmem>>, %arg3: memref<1x1x32x128xbf16, #tpu.memory_space<vmem>>, %arg4: memref<1x1x32x128xbf16, #tpu.memory_space<vmem>>, %arg5: memref<3x3x128xf32, #tpu.memory_space<vmem>>, %arg6: memref<2x128xf32, #tpu.memory_space<vmem>>, %arg7: memref<1x16x32x128xbf16, #tpu.memory_space<vmem>>, %arg8: memref<1x2x128xf32, #tpu.memory_space<vmem>>) attributes {dimension_semantics = [#tpu.dimension_semantics<parallel>, #tpu.dimension_semantics<parallel>], iteration_bounds = array<i64: 2, 2>, scalar_prefetch = 0 : i64, scratch_operands = 0 : i64, tpu.core_type = #tpu.core_type<tc>, window_params = [{transform_indices = @transform_0, window_bounds = array<i64: 1, 16, 32, 128>}, {transform_indices = @transform_1, window_bounds = array<i64: 1, 1, 32, 128>}, {transform_indices = @transform_2, window_bounds = array<i64: 1, 1, 32, 128>}, {pipeline_mode = #tpu.pipeline_mode<synchronous>, transform_indices = @transform_3, window_bounds = array<i64: 3, 3, 128>}, {pipeline_mode = #tpu.pipeline_mode<synchronous>, transform_indices = @transform_4, window_bounds = array<i64: 2, 128>}, {transform_indices = @transform_5, window_bounds = array<i64: 1, 16, 32, 128>}, {transform_indices = @transform_6, window_bounds = array<i64: 1, 2, 128>}]} {
    %c0 = arith.constant 0 : index
    %c0_0 = arith.constant 0 : index
    %0 = vector.load %arg6[%c0, %c0_0] : memref<2x128xf32, #tpu.memory_space<vmem>>, vector<1x128xf32>
    %1 = vector.shape_cast %0 : vector<1x128xf32> to vector<1x1x128xf32>
    %c1 = arith.constant 1 : index
    %c0_1 = arith.constant 0 : index
    %2 = vector.load %arg6[%c1, %c0_1] : memref<2x128xf32, #tpu.memory_space<vmem>>, vector<1x128xf32>
    %3 = vector.shape_cast %2 : vector<1x128xf32> to vector<1x1x128xf32>
    %c0_i32 = arith.constant 0 : i32
    %4 = arith.cmpi eq, %arg1, %c0_i32 : i32
    %c0_2 = arith.constant 0 : index
    %c0_3 = arith.constant 0 : index
    %c0_4 = arith.constant 0 : index
    %c0_5 = arith.constant 0 : index
    %5 = vector.load %arg3[%c0_2, %c0_3, %c0_4, %c0_5] : memref<1x1x32x128xbf16, #tpu.memory_space<vmem>>, vector<1x1x32x128xbf16>
    %6 = vector.shape_cast %5 : vector<1x1x32x128xbf16> to vector<1x32x128xbf16>
    %7 = arith.extf %6 : vector<1x32x128xbf16> to vector<1x32x128xf32>
    %8 = vector.broadcast %1 : vector<1x1x128xf32> to vector<1x32x128xf32>
    %9 = arith.mulf %7, %8 : vector<1x32x128xf32>
    %10 = vector.broadcast %3 : vector<1x1x128xf32> to vector<1x32x128xf32>
    %11 = arith.addf %9, %10 : vector<1x32x128xf32>
    %cst = arith.constant 0.000000e+00 : f32
    %12 = vector.broadcast %cst : f32 to vector<1x32x128xf32>
    %13 = arith.maximumf %11, %12 : vector<1x32x128xf32>
    %cst_6 = arith.constant 0.000000e+00 : f32
    %14 = vector.broadcast %cst_6 : f32 to vector<1x32x128xf32>
    %15 = arith.select %4, %14, %13 : vector<1x32x128xf32>
    %c1_i32 = arith.constant 1 : i32
    %16 = arith.cmpi eq, %arg1, %c1_i32 : i32
    %c0_7 = arith.constant 0 : index
    %c0_8 = arith.constant 0 : index
    %c0_9 = arith.constant 0 : index
    %c0_10 = arith.constant 0 : index
    %17 = vector.load %arg4[%c0_7, %c0_8, %c0_9, %c0_10] : memref<1x1x32x128xbf16, #tpu.memory_space<vmem>>, vector<1x1x32x128xbf16>
    %18 = vector.shape_cast %17 : vector<1x1x32x128xbf16> to vector<1x32x128xbf16>
    %19 = arith.extf %18 : vector<1x32x128xbf16> to vector<1x32x128xf32>
    %20 = vector.broadcast %1 : vector<1x1x128xf32> to vector<1x32x128xf32>
    %21 = arith.mulf %19, %20 : vector<1x32x128xf32>
    %22 = vector.broadcast %3 : vector<1x1x128xf32> to vector<1x32x128xf32>
    %23 = arith.addf %21, %22 : vector<1x32x128xf32>
    %cst_11 = arith.constant 0.000000e+00 : f32
    %24 = vector.broadcast %cst_11 : f32 to vector<1x32x128xf32>
    %25 = arith.maximumf %23, %24 : vector<1x32x128xf32>
    %cst_12 = arith.constant 0.000000e+00 : f32
    %26 = vector.broadcast %cst_12 : f32 to vector<1x32x128xf32>
    %27 = arith.select %16, %26, %25 : vector<1x32x128xf32>
    %c0_13 = arith.constant 0 : index
    %c0_14 = arith.constant 0 : index
    %c0_15 = arith.constant 0 : index
    %c0_16 = arith.constant 0 : index
    %28 = vector.load %arg2[%c0_13, %c0_14, %c0_15, %c0_16] : memref<1x16x32x128xbf16, #tpu.memory_space<vmem>>, vector<1x16x32x128xbf16>
    %29 = vector.shape_cast %28 : vector<1x16x32x128xbf16> to vector<16x32x128xbf16>
    %30 = arith.extf %29 : vector<16x32x128xbf16> to vector<16x32x128xf32>
    %31 = vector.broadcast %1 : vector<1x1x128xf32> to vector<16x32x128xf32>
    %32 = arith.mulf %30, %31 : vector<16x32x128xf32>
    %33 = vector.broadcast %3 : vector<1x1x128xf32> to vector<16x32x128xf32>
    %34 = arith.addf %32, %33 : vector<16x32x128xf32>
    %cst_17 = arith.constant 0.000000e+00 : f32
    %35 = vector.broadcast %cst_17 : f32 to vector<16x32x128xf32>
    %36 = arith.maximumf %34, %35 : vector<16x32x128xf32>
    %37 = tpu.concatenate %15, %36, %27 in 0 : vector<1x32x128xf32>, vector<16x32x128xf32>, vector<1x32x128xf32> -> vector<18x32x128xf32>
    %38 = tpu.iota {dimensions = array<i32: 1>} : vector<1x32x1xi32>
    %c0_i32_18 = arith.constant 0 : i32
    %39 = vector.broadcast %c0_i32_18 : i32 to vector<1x32x1xi32>
    %40 = arith.cmpi eq, %38, %39 : vector<1x32x1xi32>
    %c1_i32_19 = arith.constant 1 : i32
    %41 = tpu.dynamic_rotate %37 by %c1_i32_19 dim 1 : vector<18x32x128xf32>, i32 -> vector<18x32x128xf32>
    %cst_20 = arith.constant 0.000000e+00 : f32
    %42 = vector.shape_cast %40 : vector<1x32x1xi1> to vector<1x32x1xi1>
    %43 = vector.broadcast %42 : vector<1x32x1xi1> to vector<18x32x128xi1>
    %44 = vector.broadcast %cst_20 : f32 to vector<18x32x128xf32>
    %45 = arith.select %43, %44, %41 : vector<18x32x128xi1>, vector<18x32x128xf32>
    %c31_i32 = arith.constant 31 : i32
    %46 = vector.broadcast %c31_i32 : i32 to vector<1x32x1xi32>
    %47 = arith.cmpi eq, %38, %46 : vector<1x32x1xi32>
    %c31_i32_21 = arith.constant 31 : i32
    %48 = tpu.dynamic_rotate %37 by %c31_i32_21 dim 1 : vector<18x32x128xf32>, i32 -> vector<18x32x128xf32>
    %cst_22 = arith.constant 0.000000e+00 : f32
    %49 = vector.shape_cast %47 : vector<1x32x1xi1> to vector<1x32x1xi1>
    %50 = vector.broadcast %49 : vector<1x32x1xi1> to vector<18x32x128xi1>
    %51 = vector.broadcast %cst_22 : f32 to vector<18x32x128xf32>
    %52 = arith.select %50, %51, %48 : vector<18x32x128xi1>, vector<18x32x128xf32>
    %c0_23 = arith.constant 0 : index
    %c0_24 = arith.constant 0 : index
    %c0_25 = arith.constant 0 : index
    %53 = vector.load %arg5[%c0_23, %c0_24, %c0_25] : memref<3x3x128xf32, #tpu.memory_space<vmem>>, vector<3x3x128xf32>
    %cst_26 = arith.constant 0.000000e+00 : f32
    %54 = vector.broadcast %cst_26 : f32 to vector<16x32x128xf32>
    %55 = vector.extract_strided_slice %45 {offsets = [0, 0, 0], sizes = [16, 32, 128], strides = [1, 1, 1]} : vector<18x32x128xf32> to vector<16x32x128xf32>
    %56 = vector.extract_strided_slice %53 {offsets = [0, 0, 0], sizes = [1, 1, 128], strides = [1, 1, 1]} : vector<3x3x128xf32> to vector<1x1x128xf32>
    %57 = vector.broadcast %56 : vector<1x1x128xf32> to vector<16x32x128xf32>
    %58 = arith.mulf %55, %57 : vector<16x32x128xf32>
    %59 = arith.addf %54, %58 : vector<16x32x128xf32>
    %60 = vector.extract_strided_slice %37 {offsets = [0, 0, 0], sizes = [16, 32, 128], strides = [1, 1, 1]} : vector<18x32x128xf32> to vector<16x32x128xf32>
    %61 = vector.extract_strided_slice %53 {offsets = [0, 1, 0], sizes = [1, 1, 128], strides = [1, 1, 1]} : vector<3x3x128xf32> to vector<1x1x128xf32>
    %62 = vector.broadcast %61 : vector<1x1x128xf32> to vector<16x32x128xf32>
    %63 = arith.mulf %60, %62 : vector<16x32x128xf32>
    %64 = arith.addf %59, %63 : vector<16x32x128xf32>
    %65 = vector.extract_strided_slice %52 {offsets = [0, 0, 0], sizes = [16, 32, 128], strides = [1, 1, 1]} : vector<18x32x128xf32> to vector<16x32x128xf32>
    %66 = vector.extract_strided_slice %53 {offsets = [0, 2, 0], sizes = [1, 1, 128], strides = [1, 1, 1]} : vector<3x3x128xf32> to vector<1x1x128xf32>
    %67 = vector.broadcast %66 : vector<1x1x128xf32> to vector<16x32x128xf32>
    %68 = arith.mulf %65, %67 : vector<16x32x128xf32>
    %69 = arith.addf %64, %68 : vector<16x32x128xf32>
    %70 = vector.extract_strided_slice %45 {offsets = [1, 0, 0], sizes = [16, 32, 128], strides = [1, 1, 1]} : vector<18x32x128xf32> to vector<16x32x128xf32>
    %71 = vector.extract_strided_slice %53 {offsets = [1, 0, 0], sizes = [1, 1, 128], strides = [1, 1, 1]} : vector<3x3x128xf32> to vector<1x1x128xf32>
    %72 = vector.broadcast %71 : vector<1x1x128xf32> to vector<16x32x128xf32>
    %73 = arith.mulf %70, %72 : vector<16x32x128xf32>
    %74 = arith.addf %69, %73 : vector<16x32x128xf32>
    %75 = vector.extract_strided_slice %37 {offsets = [1, 0, 0], sizes = [16, 32, 128], strides = [1, 1, 1]} : vector<18x32x128xf32> to vector<16x32x128xf32>
    %76 = vector.extract_strided_slice %53 {offsets = [1, 1, 0], sizes = [1, 1, 128], strides = [1, 1, 1]} : vector<3x3x128xf32> to vector<1x1x128xf32>
    %77 = vector.broadcast %76 : vector<1x1x128xf32> to vector<16x32x128xf32>
    %78 = arith.mulf %75, %77 : vector<16x32x128xf32>
    %79 = arith.addf %74, %78 : vector<16x32x128xf32>
    %80 = vector.extract_strided_slice %52 {offsets = [1, 0, 0], sizes = [16, 32, 128], strides = [1, 1, 1]} : vector<18x32x128xf32> to vector<16x32x128xf32>
    %81 = vector.extract_strided_slice %53 {offsets = [1, 2, 0], sizes = [1, 1, 128], strides = [1, 1, 1]} : vector<3x3x128xf32> to vector<1x1x128xf32>
    %82 = vector.broadcast %81 : vector<1x1x128xf32> to vector<16x32x128xf32>
    %83 = arith.mulf %80, %82 : vector<16x32x128xf32>
    %84 = arith.addf %79, %83 : vector<16x32x128xf32>
    %85 = vector.extract_strided_slice %45 {offsets = [2, 0, 0], sizes = [16, 32, 128], strides = [1, 1, 1]} : vector<18x32x128xf32> to vector<16x32x128xf32>
    %86 = vector.extract_strided_slice %53 {offsets = [2, 0, 0], sizes = [1, 1, 128], strides = [1, 1, 1]} : vector<3x3x128xf32> to vector<1x1x128xf32>
    %87 = vector.broadcast %86 : vector<1x1x128xf32> to vector<16x32x128xf32>
    %88 = arith.mulf %85, %87 : vector<16x32x128xf32>
    %89 = arith.addf %84, %88 : vector<16x32x128xf32>
    %90 = vector.extract_strided_slice %37 {offsets = [2, 0, 0], sizes = [16, 32, 128], strides = [1, 1, 1]} : vector<18x32x128xf32> to vector<16x32x128xf32>
    %91 = vector.extract_strided_slice %53 {offsets = [2, 1, 0], sizes = [1, 1, 128], strides = [1, 1, 1]} : vector<3x3x128xf32> to vector<1x1x128xf32>
    %92 = vector.broadcast %91 : vector<1x1x128xf32> to vector<16x32x128xf32>
    %93 = arith.mulf %90, %92 : vector<16x32x128xf32>
    %94 = arith.addf %89, %93 : vector<16x32x128xf32>
    %95 = vector.extract_strided_slice %52 {offsets = [2, 0, 0], sizes = [16, 32, 128], strides = [1, 1, 1]} : vector<18x32x128xf32> to vector<16x32x128xf32>
    %96 = vector.extract_strided_slice %53 {offsets = [2, 2, 0], sizes = [1, 1, 128], strides = [1, 1, 1]} : vector<3x3x128xf32> to vector<1x1x128xf32>
    %97 = vector.broadcast %96 : vector<1x1x128xf32> to vector<16x32x128xf32>
    %98 = arith.mulf %95, %97 : vector<16x32x128xf32>
    %99 = arith.addf %94, %98 : vector<16x32x128xf32>
    %100 = arith.truncf %99 : vector<16x32x128xf32> to vector<16x32x128xbf16>
    %c0_27 = arith.constant 0 : index
    %c0_28 = arith.constant 0 : index
    %c0_29 = arith.constant 0 : index
    %c0_30 = arith.constant 0 : index
    %101 = vector.load %arg7[%c0_27, %c0_28, %c0_29, %c0_30] : memref<1x16x32x128xbf16, #tpu.memory_space<vmem>>, vector<1x16x32x128xbf16>
    %102 = vector.shape_cast %101 : vector<1x16x32x128xbf16> to vector<16x32x128xbf16>
    %103 = vector.shape_cast %100 : vector<16x32x128xbf16> to vector<1x16x32x128xbf16>
    tpu.vector_store %arg7[%c0_27, %c0_28, %c0_29, %c0_30], %103 {strides = array<i32>} : memref<1x16x32x128xbf16, #tpu.memory_space<vmem>>, vector<1x16x32x128xbf16>,
    %cst_31 = arith.constant dense<0.000000e+00> : vector<32x128xf32>
    %104 = vector.multi_reduction <add>, %99, %cst_31 [0] : vector<16x32x128xf32> to vector<32x128xf32>
    %cst_32 = arith.constant dense<0.000000e+00> : vector<128xf32>
    %105 = vector.multi_reduction <add>, %104, %cst_32 [0] : vector<32x128xf32> to vector<128xf32>
    %106 = vector.shape_cast %105 : vector<128xf32> to vector<1x128xf32>
    %c0_33 = arith.constant 0 : index
    %c0_34 = arith.constant 0 : index
    %c0_35 = arith.constant 0 : index
    %107 = vector.load %arg8[%c0_33, %c0_34, %c0_35] : memref<1x2x128xf32, #tpu.memory_space<vmem>>, vector<1x1x128xf32>
    %108 = vector.shape_cast %107 : vector<1x1x128xf32> to vector<1x128xf32>
    %109 = vector.shape_cast %106 : vector<1x128xf32> to vector<1x1x128xf32>
    tpu.vector_store %arg8[%c0_33, %c0_34, %c0_35], %109 {strides = array<i32>} : memref<1x2x128xf32, #tpu.memory_space<vmem>>, vector<1x1x128xf32>,
    %110 = arith.mulf %99, %99 : vector<16x32x128xf32>
    %cst_36 = arith.constant dense<0.000000e+00> : vector<32x128xf32>
    %111 = vector.multi_reduction <add>, %110, %cst_36 [0] : vector<16x32x128xf32> to vector<32x128xf32>
    %cst_37 = arith.constant dense<0.000000e+00> : vector<128xf32>
    %112 = vector.multi_reduction <add>, %111, %cst_37 [0] : vector<32x128xf32> to vector<128xf32>
    %113 = vector.shape_cast %112 : vector<128xf32> to vector<1x128xf32>
    %c0_38 = arith.constant 0 : index
    %c1_39 = arith.constant 1 : index
    %c0_40 = arith.constant 0 : index
    %114 = vector.load %arg8[%c0_38, %c1_39, %c0_40] : memref<1x2x128xf32, #tpu.memory_space<vmem>>, vector<1x1x128xf32>
    %115 = vector.shape_cast %114 : vector<1x1x128xf32> to vector<1x128xf32>
    %116 = vector.shape_cast %113 : vector<1x128xf32> to vector<1x1x128xf32>
    tpu.vector_store %arg8[%c0_38, %c1_39, %c0_40], %116 {strides = array<i32>} : memref<1x2x128xf32, #tpu.memory_space<vmem>>, vector<1x1x128xf32>,
    return
  }
  func.func @transform_0(%arg0: i32, %arg1: i32) -> (i32, i32, i32, i32) {
    %c0_i32 = arith.constant 0 : i32
    %c0_i32_0 = arith.constant 0 : i32
    %c0_i32_1 = arith.constant 0 : i32
    return %arg0, %arg1, %c0_i32, %c0_i32_0 : i32, i32, i32, i32
  }
  func.func @transform_1(%arg0: i32, %arg1: i32) -> (i32, i32, i32, i32) {
    %c16_i32 = arith.constant 16 : i32
    %0 = arith.muli %arg1, %c16_i32 : i32
    %c1_i32 = arith.constant 1 : i32
    %1 = arith.subi %0, %c1_i32 : i32
    %c0_i32 = arith.constant 0 : i32
    %2 = arith.maxsi %1, %c0_i32 : i32
    %c0_i32_0 = arith.constant 0 : i32
    %c0_i32_1 = arith.constant 0 : i32
    %c0_i32_2 = arith.constant 0 : i32
    return %arg0, %2, %c0_i32_0, %c0_i32_1 : i32, i32, i32, i32
  }
  func.func @transform_2(%arg0: i32, %arg1: i32) -> (i32, i32, i32, i32) {
    %c1_i32 = arith.constant 1 : i32
    %0 = arith.addi %arg1, %c1_i32 : i32
    %c16_i32 = arith.constant 16 : i32
    %1 = arith.muli %0, %c16_i32 : i32
    %c31_i32 = arith.constant 31 : i32
    %2 = arith.minsi %1, %c31_i32 : i32
    %c0_i32 = arith.constant 0 : i32
    %c0_i32_0 = arith.constant 0 : i32
    %c0_i32_1 = arith.constant 0 : i32
    return %arg0, %2, %c0_i32, %c0_i32_0 : i32, i32, i32, i32
  }
  func.func @transform_3(%arg0: i32, %arg1: i32) -> (i32, i32, i32) {
    %c0_i32 = arith.constant 0 : i32
    %c0_i32_0 = arith.constant 0 : i32
    %c0_i32_1 = arith.constant 0 : i32
    %c0_i32_2 = arith.constant 0 : i32
    return %c0_i32, %c0_i32_0, %c0_i32_1 : i32, i32, i32
  }
  func.func @transform_4(%arg0: i32, %arg1: i32) -> (i32, i32) {
    %c0_i32 = arith.constant 0 : i32
    %c0_i32_0 = arith.constant 0 : i32
    %c0_i32_1 = arith.constant 0 : i32
    return %c0_i32, %c0_i32_0 : i32, i32
  }
  func.func @transform_5(%arg0: i32, %arg1: i32) -> (i32, i32, i32, i32) {
    %c0_i32 = arith.constant 0 : i32
    %c0_i32_0 = arith.constant 0 : i32
    %c0_i32_1 = arith.constant 0 : i32
    return %arg0, %arg1, %c0_i32, %c0_i32_0 : i32, i32, i32, i32
  }
  func.func @transform_6(%arg0: i32, %arg1: i32) -> (i32, i32, i32) {
    %c2_i32 = arith.constant 2 : i32
    %0 = arith.muli %arg0, %c2_i32 : i32
    %1 = arith.addi %0, %arg1 : i32
    %c0_i32 = arith.constant 0 : i32
    %c0_i32_0 = arith.constant 0 : i32
    %c0_i32_1 = arith.constant 0 : i32
    return %1, %c0_i32, %c0_i32_0 : i32, i32, i32
  }
}

</mosaic_0001>

<bundles_post_ra>
// kernel: basic_block_forward.3
= control target key start
LH: loop header
LB: loop body
LE: loop exit
PB: predicated region body
PF: predicated region fallthrough
CT: control target
= control target key end

     0   :  { %s3662_s15 = smov 0   ;;  %s4357_s0 = inlined_call_operand.vmem [shape: bf16[2048,128], index: 0, kind: input, shape index: {}]   ;;  %s4358_s1 = inlined_call_operand.vmem [shape: bf16[128,128], index: 1, kind: input, shape index: {}]   ;;  %s4359_s2 = inlined_call_operand.vmem [shape: f32[1,128], index: 2, kind: input, shape index: {}]   ;;  %s4360_s3 = inlined_call_operand.vmem [shape: bf16[2048,128], index: 3, kind: output, shape index: {0}]   ;;  %s4361_s4 = inlined_call_operand.vmem [shape: f32[2,2,128], index: 4, kind: output, shape index: {1}]  }
   0x1 LB: > { %s3668_s16 = sadd.s32 4294967295, %s3635_s15   ;;  %p2596_p0 = scmp.ge.s32.totalorder %s3635_s15, 1  ;;  %s3635_s15 = sphi %s3662_s15, %s15_s15  }
   0x2   : > { %p166_p1 = scmp.lt.s32.totalorder %s3635_s15, 3 }
   0x4   : > { %p167_p2 = pnand %p2596_p0, %p166_p1 }
   0x6   : > { %170 = sbr.rel (%p167_p2) target bundleno = 530 (0x212), region = 32 }
   0xd   : > { %v3556_v0 = vld [vmem:[%s4358_s1] sm:$0xff]   ;;  %s2597_s19 = sshll.u32 %s3668_s16, 7  ;;  %v3557_v1 = vld [vmem:[%s4358_s1 + $0x8] sm:$0xff]   ;;  %v3558_v2 = vld [vmem:[%s4358_s1 + $0x10] sm:$0xff]   ;;  %p208_p4 = scmp.lt.s32.totalorder %s3668_s16, 1 }
   0xe   : > { %p197_p3 = scmp.lt.s32.totalorder %s2597_s19, 255  ;;  %3388 = vmatprep.subr.bf16.mxu0 %v3556_v0  ;;  %3532 = vmatprep.subr.bf16.mxu1 %v3556_v0  ;;  %v3559_v3 = vld [vmem:[%s4358_s1 + $0x18] sm:$0xff]   ;;  %v3560_v5 = vld [vmem:[%s4358_s1 + $0x20] sm:$0xff]   ;;  %v3561_v6 = vld [vmem:[%s4358_s1 + $0x28] sm:$0xff]  }
   0xf   : > { %3389 = vmatpush3.bf16.msra.mxu0 %v3556_v0  ;;  %3540 = vmatpush3.bf16.msra.mxu1 %v3556_v0  ;;  %v3562_v7 = vld [vmem:[%s4358_s1 + $0x30] sm:$0xff]   ;;  %v3563_v8 = vld [vmem:[%s4358_s1 + $0x38] sm:$0xff]   ;;  %s4449_s16 = smov (!%p208_p4, %s3668_s16), 1 }
  0x10   : > { %s4447_s19 = smov (!%p197_p3, %s2597_s19), 255  ;;  %3390 = vmatprep.subr.bf16.mxu0 %v3557_v1  ;;  %3533 = vmatprep.subr.bf16.mxu1 %v3557_v1  ;;  %s2601_s21 = sshll.u32 %s4449_s16, 1 }
  0x11   : > { %s2598_s24 = sshll.u32 %s4447_s19, 2 }
  0x12   : > { %s3690_s27 = scalar_lea.vmem %s4357_s0, %s2598_s24  ;;  %s3784_s18 = scalar_lea.vmem %s4360_s3, %s2598_s24 }
  0x13   : > { %3391 = vmatpush3.bf16.msra.mxu0 %v3557_v1  ;;  %3541 = vmatpush3.bf16.msra.mxu1 %v3557_v1  ;;  %v3564_v4 = vld [vmem:[%s3690_s27] sm:$0xff]   ;;  %v3565_v9 = vld [vmem:[%s3690_s27 + $0x8] sm:$0xff]   ;;  %v3566_v10 = vld [vmem:[%s3690_s27 + $0x10] sm:$0xff]   ;;  %s211_s24 = scalar_lea.vmem %s4361_s4, %s2601_s21 }
  0x14   : > { %3392 = vmatprep.subr.bf16.mxu0 %v3558_v2  ;;  %3534 = vmatprep.subr.bf16.mxu1 %v3558_v2  ;;  %v3567_v11 = vld [vmem:[%s3690_s27 + $0x18] sm:$0xff]   ;;  %v3568_v12 = vld [vmem:[%s3690_s27 + $0x20] sm:$0xff]   ;;  %v3597_v14 = vld [vmem:[%s3690_s27 + $0x108] sm:$0xff]  }
  0x15   : > { %3404 = vmatprep.mubr.bf16.mxu0 %v3564_v4  ;;  %v3596_v13 = vld [vmem:[%s3690_s27 + $0x100] sm:$0xff]   ;;  %v3598_v15 = vld [vmem:[%s3690_s27 + $0x110] sm:$0xff]   ;;  %v3569_v16 = vld [vmem:[%s3690_s27 + $0x28] sm:$0xff]  }
  0x16   : > { %3468 = vmatprep.mubr.bf16.mxu1 %v3596_v13  ;;  %v3570_v17 = vld [vmem:[%s3690_s27 + $0x30] sm:$0xff]   ;;  %v3599_v18 = vld [vmem:[%s3690_s27 + $0x118] sm:$0xff]   ;;  %v3600_v19 = vld [vmem:[%s3690_s27 + $0x120] sm:$0xff]  }
  0x17   : > { %3393 = vmatpush3.bf16.msra.mxu0 %v3558_v2  ;;  %3542 = vmatpush3.bf16.msra.mxu1 %v3558_v2  ;;  %v3571_v20 = vld [vmem:[%s3690_s27 + $0x38] sm:$0xff]   ;;  %v3572_v21 = vld [vmem:[%s3690_s27 + $0x40] sm:$0xff]   ;;  %v3601_v22 = vld [vmem:[%s3690_s27 + $0x128] sm:$0xff]  }
  0x18   : > { %3394 = vmatprep.subr.bf16.mxu0 %v3559_v3  ;;  %3535 = vmatprep.subr.bf16.mxu1 %v3559_v3  ;;  %v3602_v23 = vld [vmem:[%s3690_s27 + $0x130] sm:$0xff]   ;;  %v3573_v24 = vld [vmem:[%s3690_s27 + $0x48] sm:$0xff]   ;;  %v3603_v26 = vld [vmem:[%s3690_s27 + $0x138] sm:$0xff]  }
  0x19   : > { %v3574_v25 = vld [vmem:[%s3690_s27 + $0x50] sm:$0xff]   ;;  %v3604_v27 = vld [vmem:[%s3690_s27 + $0x140] sm:$0xff]   ;;  %v3575_v28 = vld [vmem:[%s3690_s27 + $0x58] sm:$0xff]  }
  0x1a   : > { %v3576_v29 = vld [vmem:[%s3690_s27 + $0x60] sm:$0xff]   ;;  %v3605_v30 = vld [vmem:[%s3690_s27 + $0x148] sm:$0xff]   ;;  %v3606_v31 = vld [vmem:[%s3690_s27 + $0x150] sm:$0xff]  }
  0x1b   : > { %3395 = vmatpush3.bf16.msra.mxu0 %v3559_v3  ;;  %3543 = vmatpush3.bf16.msra.mxu1 %v3559_v3  ;;  %v3577_v32 = vld [vmem:[%s3690_s27 + $0x68] sm:$0xff]   ;;  %v3578_v33 = vld [vmem:[%s3690_s27 + $0x70] sm:$0xff]   ;;  %v3607_v34 = vld [vmem:[%s3690_s27 + $0x158] sm:$0xff]  }
  0x1c   : > { %3396 = vmatprep.subr.bf16.mxu0 %v3560_v5  ;;  %3536 = vmatprep.subr.bf16.mxu1 %v3560_v5  ;;  %v3608_v35 = vld [vmem:[%s3690_s27 + $0x160] sm:$0xff]   ;;  %v3579_v36 = vld [vmem:[%s3690_s27 + $0x78] sm:$0xff]   ;;  %v3609_v38 = vld [vmem:[%s3690_s27 + $0x168] sm:$0xff]  }
  0x1d   : > { %v3580_v37 = vld [vmem:[%s3690_s27 + $0x80] sm:$0xff]   ;;  %v3610_v39 = vld [vmem:[%s3690_s27 + $0x170] sm:$0xff]   ;;  %v3581_v40 = vld [vmem:[%s3690_s27 + $0x88] sm:$0xff]  }
  0x1e   : > { %v3582_v41 = vld [vmem:[%s3690_s27 + $0x90] sm:$0xff]   ;;  %v3611_v42 = vld [vmem:[%s3690_s27 + $0x178] sm:$0xff]   ;;  %v3612_v43 = vld [vmem:[%s3690_s27 + $0x180] sm:$0xff]  }
  0x1f   : > { %3397 = vmatpush3.bf16.msra.mxu0 %v3560_v5  ;;  %3544 = vmatpush3.bf16.msra.mxu1 %v3560_v5  ;;  %v3583_v44 = vld [vmem:[%s3690_s27 + $0x98] sm:$0xff]   ;;  %v3584_v45 = vld [vmem:[%s3690_s27 + $0xa0] sm:$0xff]   ;;  %v3613_v46 = vld [vmem:[%s3690_s27 + $0x188] sm:$0xff]  }
  0x20   : > { %3398 = vmatprep.subr.bf16.mxu0 %v3561_v6  ;;  %3537 = vmatprep.subr.bf16.mxu1 %v3561_v6  ;;  %v3614_v47 = vld [vmem:[%s3690_s27 + $0x190] sm:$0xff]   ;;  %v3585_v48 = vld [vmem:[%s3690_s27 + $0xa8] sm:$0xff]   ;;  %v3615_v50 = vld [vmem:[%s3690_s27 + $0x198] sm:$0xff]  }
  0x21   : > { %v3586_v49 = vld [vmem:[%s3690_s27 + $0xb0] sm:$0xff]   ;;  %v3616_v51 = vld [vmem:[%s3690_s27 + $0x1a0] sm:$0xff]   ;;  %v3587_v52 = vld [vmem:[%s3690_s27 + $0xb8] sm:$0xff]  }
  0x22   : > { %v3588_v53 = vld [vmem:[%s3690_s27 + $0xc0] sm:$0xff]   ;;  %v3617_v54 = vld [vmem:[%s3690_s27 + $0x1a8] sm:$0xff]   ;;  %v3618_v55 = vld [vmem:[%s3690_s27 + $0x1b0] sm:$0xff]  }
  0x23   : > { %3399 = vmatpush3.bf16.msra.mxu0 %v3561_v6  ;;  %3545 = vmatpush3.bf16.msra.mxu1 %v3561_v6  ;;  %v3589_v56 = vld [vmem:[%s3690_s27 + $0xc8] sm:$0xff]   ;;  %v3590_v57 = vld [vmem:[%s3690_s27 + $0xd0] sm:$0xff]   ;;  %v3619_v58 = vld [vmem:[%s3690_s27 + $0x1b8] sm:$0xff]  }
  0x24   : > { %3400 = vmatprep.subr.bf16.mxu0 %v3562_v7  ;;  %3538 = vmatprep.subr.bf16.mxu1 %v3562_v7  ;;  %v3620_v59 = vld [vmem:[%s3690_s27 + $0x1c0] sm:$0xff]   ;;  %v3591_v60 = vld [vmem:[%s3690_s27 + $0xd8] sm:$0xff]   ;;  %v3621_v62 = vld [vmem:[%s3690_s27 + $0x1c8] sm:$0xff]  }
  0x25   : > { %v3592_v61 = vld [vmem:[%s3690_s27 + $0xe0] sm:$0xff]   ;;  %v3622_v63 = vld [vmem:[%s3690_s27 + $0x1d0] sm:$0xff]   ;;  %v3593_v0 = vld [vmem:[%s3690_s27 + $0xe8] sm:$0xff]  }
  0x26   : > { %v3594_v1 = vld [vmem:[%s3690_s27 + $0xf0] sm:$0xff]   ;;  %v3623_v2 = vld [vmem:[%s3690_s27 + $0x1d8] sm:$0xff]   ;;  %v3624_v3 = vld [vmem:[%s3690_s27 + $0x1e0] sm:$0xff]  }
  0x27   : > { %3401 = vmatpush3.bf16.msra.mxu0 %v3562_v7  ;;  %3546 = vmatpush3.bf16.msra.mxu1 %v3562_v7  ;;  %v3595_v4 = vld [vmem:[%s3690_s27 + $0xf8] sm:$0xff]   ;;  %v3625_v5 = vld [vmem:[%s3690_s27 + $0x1e8] sm:$0xff]   ;;  %v3626_v6 = vld [vmem:[%s3690_s27 + $0x1f0] sm:$0xff]  }
  0x28   : > { %3402 = vmatprep.subr.bf16.mxu0 %v3563_v8  ;;  %3539 = vmatprep.subr.bf16.mxu1 %v3563_v8  ;;  %v3627_v7 = vld [vmem:[%s3690_s27 + $0x1f8] sm:$0xff]  }
  0x2b   : > { %3403 = vmatpush3.bf16.msra.mxu0 %v3563_v8  ;;  %3547 = vmatpush3.bf16.msra.mxu1 %v3563_v8 }
  0x2e   : > { %3405 = vmatmul.mubr.bf16.vlgmr.msra.gmra.mrb[0].mxu0 %v3565_v9  ;;  %3469 = vmatmul.mubr.bf16.vlgmr.msra.gmra.mrb[0].mxu1 %v3597_v14  ;;  %v3774_v9 = vld [vmem:[%s4359_s2] ss:$0 sm:$0xff] }
  0x2f   : > { %3408 = vmatprep.mubr.bf16.mxu0 %v3566_v10  ;;  %3472 = vmatprep.mubr.bf16.mxu1 %v3598_v15 }
  0x36   : > { %3409 = vmatmul.mubr.bf16.gmra.mrb[4].mxu0 %v3567_v11  ;;  %3473 = vmatmul.mubr.bf16.gmra.mrb[4].mxu1 %v3599_v18 }
  0x37   : > { %3412 = vmatprep.mubr.bf16.mxu0 %v3568_v12  ;;  %3476 = vmatprep.mubr.bf16.mxu1 %v3600_v19 }
  0x3e   : > { %3413 = vmatmul.mubr.bf16.gmra.mrb[8].mxu0 %v3569_v16  ;;  %3477 = vmatmul.mubr.bf16.gmra.mrb[8].mxu1 %v3601_v22 }
  0x3f   : > { %3416 = vmatprep.mubr.bf16.mxu0 %v3570_v17  ;;  %3480 = vmatprep.mubr.bf16.mxu1 %v3602_v23 }
  0x46   : > { %3417 = vmatmul.mubr.bf16.gmra.mrb[12].mxu0 %v3571_v20  ;;  %3481 = vmatmul.mubr.bf16.gmra.mrb[12].mxu1 %v3603_v26 }
  0x47   : > { %3420 = vmatprep.mubr.bf16.mxu0 %v3572_v21  ;;  %3484 = vmatprep.mubr.bf16.mxu1 %v3604_v27 }
  0x4e   : > { %3421 = vmatmul.mubr.bf16.gmra.mrb[16].mxu0 %v3573_v24  ;;  %3485 = vmatmul.mubr.bf16.gmra.mrb[16].mxu1 %v3605_v30 }
  0x4f   : > { %3424 = vmatprep.mubr.bf16.mxu0 %v3574_v25  ;;  %3488 = vmatprep.mubr.bf16.mxu1 %v3606_v31 }
  0x56   : > { %3425 = vmatmul.mubr.bf16.gmra.mrb[20].mxu0 %v3575_v28  ;;  %3489 = vmatmul.mubr.bf16.gmra.mrb[20].mxu1 %v3607_v34 }
  0x57   : > { %3428 = vmatprep.mubr.bf16.mxu0 %v3576_v29  ;;  %3492 = vmatprep.mubr.bf16.mxu1 %v3608_v35 }
  0x5e   : > { %3429 = vmatmul.mubr.bf16.gmra.mrb[24].mxu0 %v3577_v32  ;;  %3493 = vmatmul.mubr.bf16.gmra.mrb[24].mxu1 %v3609_v38 }
  0x5f   : > { %3432 = vmatprep.mubr.bf16.mxu0 %v3578_v33  ;;  %3496 = vmatprep.mubr.bf16.mxu1 %v3610_v39 }
  0x66   : > { %3433 = vmatmul.mubr.bf16.gmra.mrb[28].mxu0 %v3579_v36  ;;  %3497 = vmatmul.mubr.bf16.gmra.mrb[28].mxu1 %v3611_v42 }
  0x67   : > { %3436 = vmatprep.mubr.bf16.mxu0 %v3580_v37  ;;  %3500 = vmatprep.mubr.bf16.mxu1 %v3612_v43 }
  0x6e   : > { %3437 = vmatmul.mubr.bf16.gmra.mrb[32].mxu0 %v3581_v40  ;;  %3501 = vmatmul.mubr.bf16.gmra.mrb[32].mxu1 %v3613_v46 }
  0x6f   : > { %3440 = vmatprep.mubr.bf16.mxu0 %v3582_v41  ;;  %3504 = vmatprep.mubr.bf16.mxu1 %v3614_v47 }
  0x76   : > { %3441 = vmatmul.mubr.bf16.gmra.mrb[36].mxu0 %v3583_v44  ;;  %3505 = vmatmul.mubr.bf16.gmra.mrb[36].mxu1 %v3615_v50 }
  0x77   : > { %3444 = vmatprep.mubr.bf16.mxu0 %v3584_v45  ;;  %3508 = vmatprep.mubr.bf16.mxu1 %v3616_v51 }
  0x7e   : > { %3445 = vmatmul.mubr.bf16.gmra.mrb[40].mxu0 %v3585_v48  ;;  %3509 = vmatmul.mubr.bf16.gmra.mrb[40].mxu1 %v3617_v54 }
  0x7f   : > { %3448 = vmatprep.mubr.bf16.mxu0 %v3586_v49  ;;  %3512 = vmatprep.mubr.bf16.mxu1 %v3618_v55 }
  0x86   : > { %3449 = vmatmul.mubr.bf16.gmra.mrb[44].mxu0 %v3587_v52  ;;  %3513 = vmatmul.mubr.bf16.gmra.mrb[44].mxu1 %v3619_v58 }
  0x87   : > { %3452 = vmatprep.mubr.bf16.mxu0 %v3588_v53  ;;  %3516 = vmatprep.mubr.bf16.mxu1 %v3620_v59 }
  0x8e   : > { %3453 = vmatmul.mubr.bf16.gmra.mrb[48].mxu0 %v3589_v56  ;;  %3517 = vmatmul.mubr.bf16.gmra.mrb[48].mxu1 %v3621_v62 }
  0x8f   : > { %3456 = vmatprep.mubr.bf16.mxu0 %v3590_v57  ;;  %3520 = vmatprep.mubr.bf16.mxu1 %v3622_v63 }
  0x96   : > { %3457 = vmatmul.mubr.bf16.gmra.mrb[52].mxu0 %v3591_v60  ;;  %3521 = vmatmul.mubr.bf16.gmra.mrb[52].mxu1 %v3623_v2 }
  0x97   : > { %3460 = vmatprep.mubr.bf16.mxu0 %v3592_v61  ;;  %3524 = vmatprep.mubr.bf16.mxu1 %v3624_v3 }
  0x9e   : > { %3461 = vmatmul.mubr.bf16.gmra.mrb[56].mxu0 %v3593_v0  ;;  %3525 = vmatmul.mubr.bf16.gmra.mrb[56].mxu1 %v3625_v5 }
  0x9f   : > { %3464 = vmatprep.mubr.bf16.mxu0 %v3594_v1  ;;  %3528 = vmatprep.mubr.bf16.mxu1 %v3626_v6 }
  0xa6   : > { %3465 = vmatmul.mubr.bf16.gmra.mrb[60].mxu0 %v3595_v4  ;;  %3529 = vmatmul.mubr.bf16.gmra.mrb[60].mxu1 %v3627_v7 }
 0x101   : > { %v3406_v8 = vpop.f32.mrb[0].mxu0  ;;  %v3789_v30 = vpop.f32.mrb[0].mxu1 }
 0x102   : > { %v823_v10 = vpop.f32.mrb[1].mxu0  ;;  %v1343_v12 = vadd.f32 %v3406_v8, %v3774_v9  ;;  %v2245_v21 = vmul.f32 %v3406_v8, %v3406_v8  ;;  %v3791_v35 = vpop.f32.mrb[1].mxu1  ;;  %v1407_v40 = vadd.f32 %v3789_v30, %v3774_v9 }
 0x103   : > { %v3407_v11 = vpop.f32.mrb[2].mxu0  ;;  %v1341_v13 = vadd.f32 %v3774_v9, %v823_v10  ;;  %v2243_v16 = vmul.f32 %v823_v10, %v823_v10  ;;  %v3798_v41 = vpop.f32.mrb[2].mxu1  ;;  %v1405_v48 = vadd.f32 %v3774_v9, %v3791_v35 }
 0x104   : > { %v1344_v14 = vadd.f32 %v3407_v11, %v3774_v9  ;;  %v826_v15 = vpop.f32.mrb[3].mxu0  ;;  %v2246_v25 = vmul.f32 %v3407_v11, %v3407_v11  ;;  %v3801_v46 = vpop.f32.mrb[3].mxu1  ;;  %v1408_v49 = vadd.f32 %v3798_v41, %v3774_v9 }
 0x105   : > { %v1342_v17 = vadd.f32 %v3774_v9, %v826_v15  ;;  %v2109_v18 = vadd.f32 %v826_v15, %v823_v10  ;;  %v2244_v19 = vmul.f32 %v826_v15, %v826_v15  ;;  %v1406_v55 = vadd.f32 %v3774_v9, %v3801_v46 }
 0x106   : > { %v2941_v20 = vpack.c.bf16 %v1344_v14, %v1343_v12  ;;  %v3101_v54 = vpack.c.bf16 %v1408_v49, %v1407_v40 }
 0x107   : > { %v2936_v22 = vpack.c.bf16 %v1342_v17, %v1341_v13  ;;  %v2110_v23 = vadd.f32 %v3406_v8, %v2109_v18  ;;  %v2371_v24 = vadd.f32 %v2244_v19, %v2243_v16  ;;  %v3096_v61 = vpack.c.bf16 %v1406_v55, %v1405_v48 }
 0x108   : > { %3253 = vst [vmem:[%s3784_s18 + $0x8] sm:$0xff] %v2941_v20   ;;  %3285 = vst [vmem:[%s3784_s18 + $0x108] sm:$0xff] %v3101_v54  }
 0x109   : > { %2937 = vst [vmem:[%s3784_s18] sm:$0xff] %v2936_v22   ;;  %v2372_v26 = vadd.f32 %v2371_v24, %v2245_v21  ;;  %v3410_v27 = vpop.f32.mrb[4].mxu0  ;;  %v2111_v28 = vadd.f32 %v3407_v11, %v2110_v23  ;;  %v3812_v62 = vpop.f32.mrb[4].mxu1  ;;  %3284 = vst [vmem:[%s3784_s18 + $0x100] sm:$0xff] %v3096_v61  }
 0x10a   : > { %v839_v29 = vpop.f32.mrb[5].mxu0  ;;  %v1347_v36 = vadd.f32 %v3410_v27, %v3774_v9  ;;  %v2249_v50 = vmul.f32 %v3410_v27, %v3410_v27  ;;  %v3814_v3 = vpop.f32.mrb[5].mxu1  ;;  %v1411_v8 = vadd.f32 %v3812_v62, %v3774_v9 }
 0x10b   : > { %v2112_v31 = vadd.f32 %v2111_v28, %v839_v29  ;;  %v2247_v32 = vmul.f32 %v839_v29, %v839_v29  ;;  %v2373_v33 = vadd.f32 %v2372_v26, %v2246_v25  ;;  %v3411_v34 = vpop.f32.mrb[6].mxu0  ;;  %v1345_v37 = vadd.f32 %v3774_v9, %v839_v29  ;;  %v3822_v10 = vpop.f32.mrb[6].mxu1 }
 0x10c   : > { %v1348_v38 = vadd.f32 %v3411_v34, %v3774_v9  ;;  %v842_v39 = vpop.f32.mrb[7].mxu0  ;;  %v2250_v56 = vmul.f32 %v3411_v34, %v3411_v34  ;;  %v3825_v15 = vpop.f32.mrb[7].mxu1  ;;  %v1409_v17 = vadd.f32 %v3774_v9, %v3814_v3  ;;  %v1412_v18 = vadd.f32 %v3822_v10, %v3774_v9 }
 0x10d   : > { %v2374_v42 = vadd.f32 %v2373_v33, %v2247_v32  ;;  %v1346_v43 = vadd.f32 %v3774_v9, %v842_v39  ;;  %v2113_v44 = vadd.f32 %v2112_v31, %v842_v39  ;;  %v2248_v45 = vmul.f32 %v842_v39, %v842_v39 }
 0x10e   : > { %v2951_v47 = vpack.c.bf16 %v1348_v38, %v1347_v36  ;;  %v3111_v23 = vpack.c.bf16 %v1412_v18, %v1411_v8  ;;  %v1410_v24 = vadd.f32 %v3774_v9, %v3825_v15 }
 0x10f   : > { %v2946_v51 = vpack.c.bf16 %v1346_v43, %v1345_v37  ;;  %v2114_v52 = vadd.f32 %v3410_v27, %v2113_v44  ;;  %v2375_v53 = vadd.f32 %v2374_v42, %v2248_v45 }
 0x110   : > { %3255 = vst [vmem:[%s3784_s18 + $0x18] sm:$0xff] %v2951_v47   ;;  %3287 = vst [vmem:[%s3784_s18 + $0x118] sm:$0xff] %v3111_v23   ;;  %v3106_v31 = vpack.c.bf16 %v1410_v24, %v1409_v17 }
 0x111   : > { %3254 = vst [vmem:[%s3784_s18 + $0x10] sm:$0xff] %v2946_v51   ;;  %v2376_v57 = vadd.f32 %v2375_v53, %v2249_v50  ;;  %v3414_v58 = vpop.f32.mrb[8].mxu0  ;;  %v2115_v59 = vadd.f32 %v3411_v34, %v2114_v52  ;;  %v3836_v32 = vpop.f32.mrb[8].mxu1 }
 0x112   : > { %v855_v60 = vpop.f32.mrb[9].mxu0  ;;  %v1351_v4 = vadd.f32 %v3414_v58, %v3774_v9  ;;  %v2253_v19 = vmul.f32 %v3414_v58, %v3414_v58  ;;  %v3838_v38 = vpop.f32.mrb[9].mxu1  ;;  %3286 = vst [vmem:[%s3784_s18 + $0x110] sm:$0xff] %v3106_v31   ;;  %v1415_v44 = vadd.f32 %v3836_v32, %v3774_v9 }
 0x113   : > { %v2116_v63 = vadd.f32 %v2115_v59, %v855_v60  ;;  %v2251_v0 = vmul.f32 %v855_v60, %v855_v60  ;;  %v2377_v1 = vadd.f32 %v2376_v57, %v2250_v56  ;;  %v3415_v2 = vpop.f32.mrb[10].mxu0  ;;  %v1349_v5 = vadd.f32 %v3774_v9, %v855_v60  ;;  %v3846_v45 = vpop.f32.mrb[10].mxu1 }
 0x114   : > { %v1352_v6 = vadd.f32 %v3415_v2, %v3774_v9  ;;  %v858_v7 = vpop.f32.mrb[11].mxu0  ;;  %v2254_v25 = vmul.f32 %v3415_v2, %v3415_v2  ;;  %v3849_v51 = vpop.f32.mrb[11].mxu1  ;;  %v1413_v53 = vadd.f32 %v3774_v9, %v3838_v38  ;;  %v1416_v54 = vadd.f32 %v3846_v45, %v3774_v9 }
 0x115   : > { %v2378_v11 = vadd.f32 %v2377_v1, %v2251_v0  ;;  %v1350_v12 = vadd.f32 %v3774_v9, %v858_v7  ;;  %v2117_v13 = vadd.f32 %v2116_v63, %v858_v7  ;;  %v2252_v14 = vmul.f32 %v858_v7, %v858_v7 }
 0x116   : > { %v2961_v16 = vpack.c.bf16 %v1352_v6, %v1351_v4  ;;  %v3121_v59 = vpack.c.bf16 %v1416_v54, %v1415_v44  ;;  %v1414_v60 = vadd.f32 %v3774_v9, %v3849_v51 }
 0x117   : > { %v2956_v20 = vpack.c.bf16 %v1350_v12, %v1349_v5  ;;  %v2118_v21 = vadd.f32 %v3414_v58, %v2117_v13  ;;  %v2379_v22 = vadd.f32 %v2378_v11, %v2252_v14 }
 0x118   : > { %3257 = vst [vmem:[%s3784_s18 + $0x28] sm:$0xff] %v2961_v16   ;;  %3289 = vst [vmem:[%s3784_s18 + $0x128] sm:$0xff] %v3121_v59   ;;  %v3116_v4 = vpack.c.bf16 %v1414_v60, %v1413_v53 }
 0x119   : > { %3256 = vst [vmem:[%s3784_s18 + $0x20] sm:$0xff] %v2956_v20   ;;  %v2380_v26 = vadd.f32 %v2379_v22, %v2253_v19  ;;  %v3418_v27 = vpop.f32.mrb[12].mxu0  ;;  %v2119_v28 = vadd.f32 %v3415_v2, %v2118_v21  ;;  %v3860_v5 = vpop.f32.mrb[12].mxu1 }
 0x11a   : > { %v871_v29 = vpop.f32.mrb[13].mxu0  ;;  %v1355_v39 = vadd.f32 %v3418_v27, %v3774_v9  ;;  %v2257_v55 = vmul.f32 %v3418_v27, %v3418_v27  ;;  %v3862_v12 = vpop.f32.mrb[13].mxu1  ;;  %3288 = vst [vmem:[%s3784_s18 + $0x120] sm:$0xff] %v3116_v4   ;;  %v1419_v18 = vadd.f32 %v3860_v5, %v3774_v9 }
 0x11b   : > { %v2120_v33 = vadd.f32 %v2119_v28, %v871_v29  ;;  %v2255_v34 = vmul.f32 %v871_v29, %v871_v29  ;;  %v2381_v36 = vadd.f32 %v2380_v26, %v2254_v25  ;;  %v3419_v37 = vpop.f32.mrb[14].mxu0  ;;  %v1353_v40 = vadd.f32 %v3774_v9, %v871_v29  ;;  %v3870_v19 = vpop.f32.mrb[14].mxu1 }
 0x11c   : > { %v1356_v42 = vadd.f32 %v3419_v37, %v3774_v9  ;;  %v874_v43 = vpop.f32.mrb[15].mxu0  ;;  %v2258_v61 = vmul.f32 %v3419_v37, %v3419_v37  ;;  %v3873_v24 = vpop.f32.mrb[15].mxu1  ;;  %v1417_v26 = vadd.f32 %v3774_v9, %v3862_v12 }
 0x11d   : > { %v2382_v47 = vadd.f32 %v2381_v36, %v2255_v34  ;;  %v1354_v48 = vadd.f32 %v3774_v9, %v874_v43  ;;  %v2121_v49 = vadd.f32 %v2120_v33, %v874_v43  ;;  %v2256_v50 = vmul.f32 %v874_v43, %v874_v43 }
 0x11e   : > { %v2971_v52 = vpack.c.bf16 %v1356_v42, %v1355_v39  ;;  %v1418_v36 = vadd.f32 %v3774_v9, %v3873_v24 }
 0x11f   : > { %v2966_v56 = vpack.c.bf16 %v1354_v48, %v1353_v40  ;;  %v2122_v57 = vadd.f32 %v3418_v27, %v2121_v49  ;;  %v2383_v58 = vadd.f32 %v2382_v47, %v2256_v50  ;;  %v1420_v27 = vadd.f32 %v3870_v19, %v3774_v9 }
 0x120   : > { %3259 = vst [vmem:[%s3784_s18 + $0x38] sm:$0xff] %v2971_v52   ;;  %v3126_v44 = vpack.c.bf16 %v1418_v36, %v1417_v26 }
 0x121   : > { %3258 = vst [vmem:[%s3784_s18 + $0x30] sm:$0xff] %v2966_v56   ;;  %v2384_v63 = vadd.f32 %v2383_v58, %v2257_v55  ;;  %v3422_v0 = vpop.f32.mrb[16].mxu0  ;;  %v2123_v1 = vadd.f32 %v3419_v37, %v2122_v57  ;;  %v3131_v34 = vpack.c.bf16 %v1420_v27, %v1419_v18  ;;  %v3884_v47 = vpop.f32.mrb[16].mxu1 }
 0x122   : > { %v887_v2 = vpop.f32.mrb[17].mxu0  ;;  %v1359_v13 = vadd.f32 %v3422_v0, %v3774_v9  ;;  %v2261_v28 = vmul.f32 %v3422_v0, %v3422_v0  ;;  %v3886_v53 = vpop.f32.mrb[17].mxu1  ;;  %3290 = vst [vmem:[%s3784_s18 + $0x130] sm:$0xff] %v3126_v44   ;;  %v1423_v58 = vadd.f32 %v3884_v47, %v3774_v9 }
 0x123   : > { %v2124_v6 = vadd.f32 %v2123_v1, %v887_v2  ;;  %v2259_v7 = vmul.f32 %v887_v2, %v887_v2  ;;  %v2385_v8 = vadd.f32 %v2384_v63, %v2258_v61  ;;  %v3423_v11 = vpop.f32.mrb[18].mxu0  ;;  %v1357_v14 = vadd.f32 %v3774_v9, %v887_v2  ;;  %3291 = vst [vmem:[%s3784_s18 + $0x138] sm:$0xff] %v3131_v34   ;;  %v3894_v59 = vpop.f32.mrb[18].mxu1 }
 0x124   : > { %v1360_v16 = vadd.f32 %v3423_v11, %v3774_v9  ;;  %v890_v17 = vpop.f32.mrb[19].mxu0  ;;  %v2262_v37 = vmul.f32 %v3423_v11, %v3423_v11  ;;  %v3897_v1 = vpop.f32.mrb[19].mxu1  ;;  %v1421_v4 = vadd.f32 %v3774_v9, %v3886_v53 }
 0x125   : > { %v2386_v20 = vadd.f32 %v2385_v8, %v2259_v7  ;;  %v1358_v21 = vadd.f32 %v3774_v9, %v890_v17  ;;  %v2125_v22 = vadd.f32 %v2124_v6, %v890_v17  ;;  %v2260_v23 = vmul.f32 %v890_v17, %v890_v17 }
 0x126   : > { %v2981_v25 = vpack.c.bf16 %v1360_v16, %v1359_v13  ;;  %v1424_v6 = vadd.f32 %v3894_v59, %v3774_v9  ;;  %v1422_v16 = vadd.f32 %v3774_v9, %v3897_v1 }
 0x127   : > { %v2976_v29 = vpack.c.bf16 %v1358_v21, %v1357_v14  ;;  %v2126_v31 = vadd.f32 %v3422_v0, %v2125_v22  ;;  %v2387_v33 = vadd.f32 %v2386_v20, %v2260_v23 }
 0x128   : > { %3261 = vst [vmem:[%s3784_s18 + $0x48] sm:$0xff] %v2981_v25   ;;  %v3141_v14 = vpack.c.bf16 %v1424_v6, %v1423_v58  ;;  %v3136_v23 = vpack.c.bf16 %v1422_v16, %v1421_v4 }
 0x129   : > { %3260 = vst [vmem:[%s3784_s18 + $0x40] sm:$0xff] %v2976_v29   ;;  %v2388_v39 = vadd.f32 %v2387_v33, %v2261_v28  ;;  %v3426_v40 = vpop.f32.mrb[20].mxu0  ;;  %v2127_v42 = vadd.f32 %v3423_v11, %v2126_v31  ;;  %v3908_v25 = vpop.f32.mrb[20].mxu1 }
 0x12a   : > { %v903_v43 = vpop.f32.mrb[21].mxu0  ;;  %v1363_v54 = vadd.f32 %v3426_v40, %v3774_v9  ;;  %v2265_v7 = vmul.f32 %v3426_v40, %v3426_v40  ;;  %3293 = vst [vmem:[%s3784_s18 + $0x148] sm:$0xff] %v3141_v14   ;;  %v3910_v31 = vpop.f32.mrb[21].mxu1  ;;  %3292 = vst [vmem:[%s3784_s18 + $0x140] sm:$0xff] %v3136_v23  }
 0x12b   : > { %v2128_v48 = vadd.f32 %v2127_v42, %v903_v43  ;;  %v2263_v49 = vmul.f32 %v903_v43, %v903_v43  ;;  %v2389_v50 = vadd.f32 %v2388_v39, %v2262_v37  ;;  %v3427_v52 = vpop.f32.mrb[22].mxu0  ;;  %v1361_v55 = vadd.f32 %v3774_v9, %v903_v43 }
 0x12c   : > { %v1364_v56 = vadd.f32 %v3427_v52, %v3774_v9  ;;  %v906_v57 = vpop.f32.mrb[23].mxu0  ;;  %v2266_v17 = vmul.f32 %v3427_v52, %v3427_v52  ;;  %v1427_v39 = vadd.f32 %v3908_v25, %v3774_v9 }
 0x12d   : > { %v2390_v60 = vadd.f32 %v2389_v50, %v2263_v49  ;;  %v1362_v61 = vadd.f32 %v3774_v9, %v906_v57  ;;  %v2129_v63 = vadd.f32 %v2128_v48, %v906_v57  ;;  %v2264_v0 = vmul.f32 %v906_v57, %v906_v57 }
 0x12e   : > { %v2991_v2 = vpack.c.bf16 %v1364_v56, %v1363_v54 }
 0x12f   : > { %v2986_v8 = vpack.c.bf16 %v1362_v61, %v1361_v55  ;;  %v2130_v11 = vadd.f32 %v3426_v40, %v2129_v63  ;;  %v2391_v13 = vadd.f32 %v2390_v60, %v2264_v0  ;;  %v3918_v40 = vpop.f32.mrb[22].mxu1 }
 0x130   : > { %3263 = vst [vmem:[%s3784_s18 + $0x58] sm:$0xff] %v2991_v2   ;;  %v3921_v49 = vpop.f32.mrb[23].mxu1  ;;  %v1428_v54 = vadd.f32 %v3918_v40, %v3774_v9 }
 0x131   : > { %3262 = vst [vmem:[%s3784_s18 + $0x50] sm:$0xff] %v2986_v8   ;;  %v2392_v18 = vadd.f32 %v2391_v13, %v2265_v7  ;;  %v3430_v20 = vpop.f32.mrb[24].mxu0  ;;  %v2131_v21 = vadd.f32 %v3427_v52, %v2130_v11  ;;  %v1425_v52 = vadd.f32 %v3774_v9, %v3910_v31  ;;  %v1426_v61 = vadd.f32 %v3774_v9, %v3921_v49  ;;  %v3932_v8 = vpop.f32.mrb[24].mxu1 }
 0x132   : > { %v919_v22 = vpop.f32.mrb[25].mxu0  ;;  %v1367_v33 = vadd.f32 %v3430_v20, %v3774_v9  ;;  %v2269_v55 = vmul.f32 %v3430_v20, %v3430_v20  ;;  %v3151_v60 = vpack.c.bf16 %v1428_v54, %v1427_v39  ;;  %v1431_v23 = vadd.f32 %v3932_v8, %v3774_v9 }
 0x133   : > { %v2132_v26 = vadd.f32 %v2131_v21, %v919_v22  ;;  %v2267_v27 = vmul.f32 %v919_v22, %v919_v22  ;;  %v2393_v28 = vadd.f32 %v2392_v18, %v2266_v17  ;;  %v3431_v29 = vpop.f32.mrb[26].mxu0  ;;  %v1365_v34 = vadd.f32 %v3774_v9, %v919_v22  ;;  %v3934_v17 = vpop.f32.mrb[25].mxu1 }
 0x134   : > { %v1368_v36 = vadd.f32 %v3431_v29, %v3774_v9  ;;  %v922_v37 = vpop.f32.mrb[27].mxu0  ;;  %v2270_v63 = vmul.f32 %v3431_v29, %v3431_v29  ;;  %3295 = vst [vmem:[%s3784_s18 + $0x158] sm:$0xff] %v3151_v60   ;;  %v3146_v7 = vpack.c.bf16 %v1426_v61, %v1425_v52 }
 0x135   : > { %v2394_v42 = vadd.f32 %v2393_v28, %v2267_v27  ;;  %v1366_v43 = vadd.f32 %v3774_v9, %v922_v37  ;;  %v2133_v44 = vadd.f32 %v2132_v26, %v922_v37  ;;  %v2268_v48 = vmul.f32 %v922_v37, %v922_v37  ;;  %v3942_v26 = vpop.f32.mrb[26].mxu1 }
 0x136   : > { %v3001_v50 = vpack.c.bf16 %v1368_v36, %v1367_v33  ;;  %3294 = vst [vmem:[%s3784_s18 + $0x150] sm:$0xff] %v3146_v7   ;;  %v1429_v37 = vadd.f32 %v3774_v9, %v3934_v17  ;;  %v1432_v39 = vadd.f32 %v3942_v26, %v3774_v9 }
 0x137   : > { %v2996_v56 = vpack.c.bf16 %v1366_v43, %v1365_v34  ;;  %v2134_v57 = vadd.f32 %v3430_v20, %v2133_v44  ;;  %v2395_v58 = vadd.f32 %v2394_v42, %v2268_v48  ;;  %v3945_v34 = vpop.f32.mrb[27].mxu1 }
 0x138   : > { %3265 = vst [vmem:[%s3784_s18 + $0x68] sm:$0xff] %v3001_v50   ;;  %v3161_v50 = vpack.c.bf16 %v1432_v39, %v1431_v23  ;;  %v1430_v52 = vadd.f32 %v3774_v9, %v3945_v34 }
 0x139   : > { %3264 = vst [vmem:[%s3784_s18 + $0x60] sm:$0xff] %v2996_v56   ;;  %v2396_v0 = vadd.f32 %v2395_v58, %v2269_v55  ;;  %v3434_v2 = vpop.f32.mrb[28].mxu0  ;;  %v2135_v4 = vadd.f32 %v3431_v29, %v2134_v57  ;;  %v3956_v61 = vpop.f32.mrb[28].mxu1 }
 0x13a   : > { %v935_v6 = vpop.f32.mrb[29].mxu0  ;;  %v1371_v18 = vadd.f32 %v3434_v2, %v3774_v9  ;;  %v2273_v42 = vmul.f32 %v3434_v2, %v3434_v2  ;;  %3297 = vst [vmem:[%s3784_s18 + $0x168] sm:$0xff] %v3161_v50   ;;  %v3156_v60 = vpack.c.bf16 %v1430_v52, %v1429_v37 }
 0x13b   : > { %v2136_v11 = vadd.f32 %v2135_v4, %v935_v6  ;;  %v2271_v13 = vmul.f32 %v935_v6, %v935_v6  ;;  %v2397_v14 = vadd.f32 %v2396_v0, %v2270_v63  ;;  %v3435_v16 = vpop.f32.mrb[30].mxu0  ;;  %v1369_v20 = vadd.f32 %v3774_v9, %v935_v6  ;;  %v3958_v6 = vpop.f32.mrb[29].mxu1 }
 0x13c   : > { %v1372_v21 = vadd.f32 %v3435_v16, %v3774_v9  ;;  %v938_v22 = vpop.f32.mrb[31].mxu0  ;;  %v2274_v54 = vmul.f32 %v3435_v16, %v3435_v16  ;;  %3296 = vst [vmem:[%s3784_s18 + $0x160] sm:$0xff] %v3156_v60  }
 0x13d   : > { %v2398_v27 = vadd.f32 %v2397_v14, %v2271_v13  ;;  %v1370_v28 = vadd.f32 %v3774_v9, %v938_v22  ;;  %v2137_v29 = vadd.f32 %v2136_v11, %v938_v22  ;;  %v2272_v33 = vmul.f32 %v938_v22, %v938_v22 }
 0x13e   : > { %v3011_v36 = vpack.c.bf16 %v1372_v21, %v1371_v18  ;;  %v3966_v18 = vpop.f32.mrb[30].mxu1 }
 0x13f   : > { %v3006_v43 = vpack.c.bf16 %v1370_v28, %v1369_v20  ;;  %v2138_v44 = vadd.f32 %v3434_v2, %v2137_v29  ;;  %v2399_v48 = vadd.f32 %v2398_v27, %v2272_v33  ;;  %v3969_v27 = vpop.f32.mrb[31].mxu1  ;;  %v1433_v29 = vadd.f32 %v3774_v9, %v3958_v6 }
 0x140   : > { %3267 = vst [vmem:[%s3784_s18 + $0x78] sm:$0xff] %v3011_v36   ;;  %v1436_v33 = vadd.f32 %v3966_v18, %v3774_v9 }
 0x141   : > { %3266 = vst [vmem:[%s3784_s18 + $0x70] sm:$0xff] %v3006_v43   ;;  %v2400_v55 = vadd.f32 %v2399_v48, %v2273_v42  ;;  %v3438_v56 = vpop.f32.mrb[32].mxu0  ;;  %v2139_v57 = vadd.f32 %v3435_v16, %v2138_v44  ;;  %v1435_v16 = vadd.f32 %v3956_v61, %v3774_v9  ;;  %v1434_v44 = vadd.f32 %v3774_v9, %v3969_v27 }
 0x142   : > { %v951_v58 = vpop.f32.mrb[33].mxu0  ;;  %v1375_v7 = vadd.f32 %v3438_v56, %v3774_v9  ;;  %v2277_v36 = vmul.f32 %v3438_v56, %v3438_v56 }
 0x143   : > { %v2140_v63 = vadd.f32 %v2139_v57, %v951_v58  ;;  %v2275_v0 = vmul.f32 %v951_v58, %v951_v58  ;;  %v2401_v2 = vadd.f32 %v2400_v55, %v2274_v54  ;;  %v3439_v4 = vpop.f32.mrb[34].mxu0  ;;  %v1373_v11 = vadd.f32 %v3774_v9, %v951_v58  ;;  %v3980_v58 = vpop.f32.mrb[32].mxu1 }
 0x144   : > { %v1376_v13 = vadd.f32 %v3439_v4, %v3774_v9  ;;  %v954_v14 = vpop.f32.mrb[35].mxu0  ;;  %v3171_v43 = vpack.c.bf16 %v1436_v33, %v1435_v16  ;;  %v2278_v48 = vmul.f32 %v3439_v4, %v3439_v4  ;;  %v3166_v57 = vpack.c.bf16 %v1434_v44, %v1433_v29 }
 0x145   : > { %v2402_v20 = vadd.f32 %v2401_v2, %v2275_v0  ;;  %v1374_v21 = vadd.f32 %v3774_v9, %v954_v14  ;;  %v2141_v22 = vadd.f32 %v2140_v63, %v954_v14  ;;  %v2276_v23 = vmul.f32 %v954_v14, %v954_v14  ;;  %v3982_v2 = vpop.f32.mrb[33].mxu1 }
 0x146   : > { %v3021_v28 = vpack.c.bf16 %v1376_v13, %v1375_v7  ;;  %3299 = vst [vmem:[%s3784_s18 + $0x178] sm:$0xff] %v3171_v43   ;;  %3298 = vst [vmem:[%s3784_s18 + $0x170] sm:$0xff] %v3166_v57   ;;  %v3990_v16 = vpop.f32.mrb[34].mxu1  ;;  %v1437_v33 = vadd.f32 %v3774_v9, %v3982_v2 }
 0x147   : > { %v3016_v37 = vpack.c.bf16 %v1374_v21, %v1373_v11  ;;  %v2142_v39 = vadd.f32 %v3438_v56, %v2141_v22  ;;  %v2403_v42 = vadd.f32 %v2402_v20, %v2276_v23 }
 0x148   : > { %3269 = vst [vmem:[%s3784_s18 + $0x88] sm:$0xff] %v3021_v28   ;;  %v3993_v28 = vpop.f32.mrb[35].mxu1 }
 0x149   : > { %3268 = vst [vmem:[%s3784_s18 + $0x80] sm:$0xff] %v3016_v37   ;;  %v2404_v50 = vadd.f32 %v2403_v42, %v2277_v36  ;;  %v3442_v52 = vpop.f32.mrb[36].mxu0  ;;  %v2143_v54 = vadd.f32 %v3439_v4, %v2142_v39  ;;  %v1439_v4 = vadd.f32 %v3980_v58, %v3774_v9  ;;  %v1440_v36 = vadd.f32 %v3990_v16, %v3774_v9 }
 0x14a   : > { %v967_v55 = vpop.f32.mrb[37].mxu0  ;;  %v1379_v7 = vadd.f32 %v3442_v52, %v3774_v9  ;;  %v2281_v37 = vmul.f32 %v3442_v52, %v3442_v52 }
 0x14b   : > { %v2144_v60 = vadd.f32 %v2143_v54, %v967_v55  ;;  %v2279_v63 = vmul.f32 %v967_v55, %v967_v55  ;;  %v2405_v56 = vadd.f32 %v2404_v50, %v2278_v48  ;;  %v3443_v0 = vpop.f32.mrb[38].mxu0  ;;  %v1377_v11 = vadd.f32 %v3774_v9, %v967_v55 }
 0x14c   : > { %v1380_v13 = vadd.f32 %v3443_v0, %v3774_v9  ;;  %v970_v14 = vpop.f32.mrb[39].mxu0  ;;  %v3181_v44 = vpack.c.bf16 %v1440_v36, %v1439_v4  ;;  %v1438_v48 = vadd.f32 %v3774_v9, %v3993_v28  ;;  %v2282_v50 = vmul.f32 %v3443_v0, %v3443_v0 }
 0x14d   : > { %v2406_v20 = vadd.f32 %v2405_v56, %v2279_v63  ;;  %v1378_v21 = vadd.f32 %v3774_v9, %v970_v14  ;;  %v2145_v22 = vadd.f32 %v2144_v60, %v970_v14  ;;  %v2280_v23 = vmul.f32 %v970_v14, %v970_v14  ;;  %v4004_v56 = vpop.f32.mrb[36].mxu1 }
 0x14e   : > { %v3031_v29 = vpack.c.bf16 %v1380_v13, %v1379_v7  ;;  %3301 = vst [vmem:[%s3784_s18 + $0x188] sm:$0xff] %v3181_v44   ;;  %v3176_v63 = vpack.c.bf16 %v1438_v48, %v1437_v33  ;;  %4404 = vst [vmem:[#allocation2_spill] sm:$0xff] %v4004_v56  ;;  %v4006_v14 = vpop.f32.mrb[37].mxu1 }
 0x14f   : > { %v3026_v39 = vpack.c.bf16 %v1378_v21, %v1377_v11  ;;  %v2146_v42 = vadd.f32 %v3442_v52, %v2145_v22  ;;  %v2407_v43 = vadd.f32 %v2406_v20, %v2280_v23  ;;  %v4014_v23 = vpop.f32.mrb[38].mxu1 }
 0x150   : > { %3271 = vst [vmem:[%s3784_s18 + $0x98] sm:$0xff] %v3031_v29   ;;  %3300 = vst [vmem:[%s3784_s18 + $0x180] sm:$0xff] %v3176_v63   ;;  %v1444_v44 = vadd.f32 %v4014_v23, %v3774_v9 }
 0x151   : > { %3270 = vst [vmem:[%s3784_s18 + $0x90] sm:$0xff] %v3026_v39   ;;  %v2408_v54 = vadd.f32 %v2407_v43, %v2281_v37  ;;  %v3446_v55 = vpop.f32.mrb[40].mxu0  ;;  %v2147_v57 = vadd.f32 %v3443_v0, %v2146_v42  ;;  %v1443_v0 = vadd.f32 %v4004_v56, %v3774_v9  ;;  %4405 = vst [vmem:[#allocation3_spill] sm:$0xff] %v4014_v23  ;;  %v4017_v39 = vpop.f32.mrb[39].mxu1 }
 0x152   : > { %v983_v60 = vpop.f32.mrb[41].mxu0  ;;  %v1383_v4 = vadd.f32 %v3446_v55, %v3774_v9  ;;  %4406 = vst [vmem:[#allocation4_spill] sm:$0xff] %v4017_v39  ;;  %v1441_v43 = vadd.f32 %v3774_v9, %v4006_v14  ;;  %v2285_v48 = vmul.f32 %v3446_v55, %v3446_v55  ;;  %v1442_v63 = vadd.f32 %v3774_v9, %v4017_v39  ;;  %v4028_v56 = vpop.f32.mrb[40].mxu1 }
 0x153   : > { %v2148_v7 = vadd.f32 %v2147_v57, %v983_v60  ;;  %v2283_v11 = vmul.f32 %v983_v60, %v983_v60  ;;  %v2409_v52 = vadd.f32 %v2408_v54, %v2282_v50  ;;  %v3447_v13 = vpop.f32.mrb[42].mxu0  ;;  %v1381_v20 = vadd.f32 %v3774_v9, %v983_v60  ;;  %4407 = vst [vmem:[#allocation5_spill] sm:$0xff] %v4028_v56 }
 0x154   : > { %v1384_v21 = vadd.f32 %v3447_v13, %v3774_v9  ;;  %v986_v22 = vpop.f32.mrb[43].mxu0  ;;  %v3191_v60 = vpack.c.bf16 %v1444_v44, %v1443_v0 }
 0x155   : > { %v2410_v29 = vadd.f32 %v2409_v52, %v2283_v11  ;;  %v1382_v33 = vadd.f32 %v3774_v9, %v986_v22  ;;  %v2149_v36 = vadd.f32 %v2148_v7, %v986_v22  ;;  %v2284_v37 = vmul.f32 %v986_v22, %v986_v22 }
 0x156   : > { %v3041_v42 = vpack.c.bf16 %v1384_v21, %v1383_v4  ;;  %v2286_v7 = vmul.f32 %v3447_v13, %v3447_v13  ;;  %3303 = vst [vmem:[%s3784_s18 + $0x198] sm:$0xff] %v3191_v60   ;;  %v3186_v22 = vpack.c.bf16 %v1442_v63, %v1441_v43 }
 0x157   : > { %v3036_v50 = vpack.c.bf16 %v1382_v33, %v1381_v20  ;;  %v2150_v54 = vadd.f32 %v3446_v55, %v2149_v36  ;;  %v2411_v57 = vadd.f32 %v2410_v29, %v2284_v37  ;;  %v4030_v33 = vpop.f32.mrb[41].mxu1 }
 0x158   : > { %3273 = vst [vmem:[%s3784_s18 + $0xa8] sm:$0xff] %v3041_v42   ;;  %4408 = vst [vmem:[#allocation6_spill] sm:$0xff] %v4030_v33  ;;  %v4038_v43 = vpop.f32.mrb[42].mxu1  ;;  %v1445_v63 = vadd.f32 %v3774_v9, %v4030_v33 }
 0x159   : > { %3272 = vst [vmem:[%s3784_s18 + $0xa0] sm:$0xff] %v3036_v50   ;;  %v2412_v11 = vadd.f32 %v2411_v57, %v2285_v48  ;;  %v3450_v52 = vpop.f32.mrb[44].mxu0  ;;  %v2151_v4 = vadd.f32 %v3447_v13, %v2150_v54  ;;  %3302 = vst [vmem:[%s3784_s18 + $0x190] sm:$0xff] %v3186_v22   ;;  %v1447_v13 = vadd.f32 %v4028_v56, %v3774_v9  ;;  %v4041_v57 = vpop.f32.mrb[43].mxu1 }
 0x15a   : > { %v999_v21 = vpop.f32.mrb[45].mxu0  ;;  %v1387_v0 = vadd.f32 %v3450_v52, %v3774_v9  ;;  %4409 = vst [vmem:[#allocation7_spill] sm:$0xff] %v4038_v43  ;;  %4410 = vst [vmem:[#allocation8_spill] sm:$0xff] %v4041_v57  ;;  %v4052_v39 = vpop.f32.mrb[44].mxu1 }
 0x15b   : > { %v2152_v23 = vadd.f32 %v2151_v4, %v999_v21  ;;  %v2287_v20 = vmul.f32 %v999_v21, %v999_v21  ;;  %v2413_v55 = vadd.f32 %v2412_v11, %v2286_v7  ;;  %v3451_v29 = vpop.f32.mrb[46].mxu0  ;;  %v1385_v36 = vadd.f32 %v3774_v9, %v999_v21  ;;  %4411 = vst [vmem:[#allocation9_spill] sm:$0xff] %v4052_v39 }
 0x15c   : > { %v1388_v37 = vadd.f32 %v3451_v29, %v3774_v9  ;;  %v1002_v42 = vpop.f32.mrb[47].mxu0  ;;  %v1448_v7 = vadd.f32 %v4038_v43, %v3774_v9  ;;  %v2289_v11 = vmul.f32 %v3450_v52, %v3450_v52 }
 0x15d   : > { %v2414_v44 = vadd.f32 %v2413_v55, %v2287_v20  ;;  %v1386_v48 = vadd.f32 %v3774_v9, %v1002_v42  ;;  %v2153_v50 = vadd.f32 %v2152_v23, %v1002_v42  ;;  %v2288_v54 = vmul.f32 %v1002_v42, %v1002_v42 }
 0x15e   : > { %v3051_v60 = vpack.c.bf16 %v1388_v37, %v1387_v0  ;;  %v3201_v20 = vpack.c.bf16 %v1448_v7, %v1447_v13  ;;  %v1446_v23 = vadd.f32 %v3774_v9, %v4041_v57  ;;  %v2290_v55 = vmul.f32 %v3451_v29, %v3451_v29 }
 0x15f   : > { %v3046_v4 = vpack.c.bf16 %v1386_v48, %v1385_v36  ;;  %v2154_v21 = vadd.f32 %v3450_v52, %v2153_v50  ;;  %v2415_v22 = vadd.f32 %v2414_v44, %v2288_v54  ;;  %v4054_v48 = vpop.f32.mrb[45].mxu1 }
 0x160   : > { %3275 = vst [vmem:[%s3784_s18 + $0xb8] sm:$0xff] %v3051_v60   ;;  %3305 = vst [vmem:[%s3784_s18 + $0x1a8] sm:$0xff] %v3201_v20   ;;  %v3196_v33 = vpack.c.bf16 %v1446_v23, %v1445_v63  ;;  %v4062_v63 = vpop.f32.mrb[46].mxu1 }
 0x161   : > { %3274 = vst [vmem:[%s3784_s18 + $0xb0] sm:$0xff] %v3046_v4   ;;  %v2416_v42 = vadd.f32 %v2415_v22, %v2289_v11  ;;  %v3454_v0 = vpop.f32.mrb[48].mxu0  ;;  %v2155_v37 = vadd.f32 %v3451_v29, %v2154_v21  ;;  %4412 = vst [vmem:[#allocation10_spill] sm:$0xff] %v4054_v48  ;;  %v1451_v29 = vadd.f32 %v4052_v39, %v3774_v9  ;;  %v4065_v22 = vpop.f32.mrb[47].mxu1 }
 0x162   : > { %v1015_v56 = vpop.f32.mrb[49].mxu0  ;;  %v1391_v13 = vadd.f32 %v3454_v0, %v3774_v9  ;;  %3304 = vst [vmem:[%s3784_s18 + $0x1a0] sm:$0xff] %v3196_v33   ;;  %4413 = vst [vmem:[#allocation11_spill] sm:$0xff] %v4062_v63  ;;  %v1452_v33 = vadd.f32 %v4062_v63, %v3774_v9  ;;  %v2293_v23 = vmul.f32 %v3454_v0, %v3454_v0  ;;  %v4076_v57 = vpop.f32.mrb[48].mxu1 }
 0x163   : > { %v2156_v43 = vadd.f32 %v2155_v37, %v1015_v56  ;;  %v2291_v36 = vmul.f32 %v1015_v56, %v1015_v56  ;;  %v2417_v52 = vadd.f32 %v2416_v42, %v2290_v55  ;;  %v3455_v44 = vpop.f32.mrb[50].mxu0  ;;  %v1389_v50 = vadd.f32 %v3774_v9, %v1015_v56  ;;  %4414 = vst [vmem:[#allocation12_spill] sm:$0xff] %v4065_v22 }
 0x164   : > { %v1392_v54 = vadd.f32 %v3455_v44, %v3774_v9  ;;  %v1018_v60 = vpop.f32.mrb[51].mxu0  ;;  %v1449_v56 = vadd.f32 %v3774_v9, %v4054_v48  ;;  %4415 = vst [vmem:[#allocation13_spill] sm:$0xff] %v4076_v57 }
 0x165   : > { %v2418_v7 = vadd.f32 %v2417_v52, %v2291_v36  ;;  %v1390_v11 = vadd.f32 %v3774_v9, %v1018_v60  ;;  %v2157_v4 = vadd.f32 %v2156_v43, %v1018_v60  ;;  %v2292_v21 = vmul.f32 %v1018_v60, %v1018_v60 }
 0x166   : > { %v3061_v20 = vpack.c.bf16 %v1392_v54, %v1391_v13  ;;  %v3211_v36 = vpack.c.bf16 %v1452_v33, %v1451_v29  ;;  %v1450_v43 = vadd.f32 %v3774_v9, %v4065_v22  ;;  %v2294_v52 = vmul.f32 %v3455_v44, %v3455_v44 }
 0x167   : > { %v3056_v55 = vpack.c.bf16 %v1390_v11, %v1389_v50  ;;  %v2158_v42 = vadd.f32 %v3454_v0, %v2157_v4  ;;  %v2419_v37 = vadd.f32 %v2418_v7, %v2292_v21  ;;  %v4078_v11 = vpop.f32.mrb[49].mxu1 }
 0x168   : > { %3277 = vst [vmem:[%s3784_s18 + $0xc8] sm:$0xff] %v3061_v20   ;;  %3307 = vst [vmem:[%s3784_s18 + $0x1b8] sm:$0xff] %v3211_v36   ;;  %v3206_v48 = vpack.c.bf16 %v1450_v43, %v1449_v56  ;;  %v4086_v56 = vpop.f32.mrb[50].mxu1 }
 0x169   : > { %3276 = vst [vmem:[%s3784_s18 + $0xc0] sm:$0xff] %v3056_v55   ;;  %v2420_v60 = vadd.f32 %v2419_v37, %v2293_v23  ;;  %v3458_v13 = vpop.f32.mrb[52].mxu0  ;;  %v2159_v54 = vadd.f32 %v3455_v44, %v2158_v42  ;;  %4416 = vst [vmem:[#allocation14_spill] sm:$0xff] %v4078_v11  ;;  %v1455_v44 = vadd.f32 %v4076_v57, %v3774_v9  ;;  %v4089_v37 = vpop.f32.mrb[51].mxu1 }
 0x16a   : > { %v1031_v39 = vpop.f32.mrb[53].mxu0  ;;  %v1395_v29 = vadd.f32 %v3458_v13, %v3774_v9  ;;  %3306 = vst [vmem:[%s3784_s18 + $0x1b0] sm:$0xff] %v3206_v48   ;;  %4417 = vst [vmem:[#allocation15_spill] sm:$0xff] %v4086_v56  ;;  %v1456_v48 = vadd.f32 %v4086_v56, %v3774_v9  ;;  %v2297_v43 = vmul.f32 %v3458_v13, %v3458_v13  ;;  %v4100_v22 = vpop.f32.mrb[52].mxu1 }
 0x16b   : > { %v2160_v63 = vadd.f32 %v2159_v54, %v1031_v39  ;;  %v2295_v50 = vmul.f32 %v1031_v39, %v1031_v39  ;;  %v2421_v0 = vadd.f32 %v2420_v60, %v2294_v52  ;;  %v3459_v7 = vpop.f32.mrb[54].mxu0  ;;  %v1393_v4 = vadd.f32 %v3774_v9, %v1031_v39  ;;  %4418 = vst [vmem:[#allocation16_spill] sm:$0xff] %v4100_v22 }
 0x16c   : > { %v1396_v21 = vadd.f32 %v3459_v7, %v3774_v9  ;;  %v1034_v20 = vpop.f32.mrb[55].mxu0  ;;  %v1453_v39 = vadd.f32 %v3774_v9, %v4078_v11 }
 0x16d   : > { %v2422_v33 = vadd.f32 %v2421_v0, %v2295_v50  ;;  %v1394_v23 = vadd.f32 %v3774_v9, %v1034_v20  ;;  %v2161_v55 = vadd.f32 %v2160_v63, %v1034_v20  ;;  %v2296_v42 = vmul.f32 %v1034_v20, %v1034_v20 }
 0x16e   : > { %v3071_v36 = vpack.c.bf16 %v1396_v21, %v1395_v29  ;;  %v3221_v50 = vpack.c.bf16 %v1456_v48, %v1455_v44  ;;  %v1454_v63 = vadd.f32 %v3774_v9, %v4089_v37  ;;  %v2298_v0 = vmul.f32 %v3459_v7, %v3459_v7 }
 0x16f   : > { %v3066_v52 = vpack.c.bf16 %v1394_v23, %v1393_v4  ;;  %v2162_v60 = vadd.f32 %v3458_v13, %v2161_v55  ;;  %v2423_v54 = vadd.f32 %v2422_v33, %v2296_v42  ;;  %v4102_v23 = vpop.f32.mrb[53].mxu1 }
 0x170   : > { %3279 = vst [vmem:[%s3784_s18 + $0xd8] sm:$0xff] %v3071_v36   ;;  %3309 = vst [vmem:[%s3784_s18 + $0x1c8] sm:$0xff] %v3221_v50   ;;  %v3216_v11 = vpack.c.bf16 %v1454_v63, %v1453_v39  ;;  %v4110_v39 = vpop.f32.mrb[54].mxu1 }
 0x171   : > { %3278 = vst [vmem:[%s3784_s18 + $0xd0] sm:$0xff] %v3066_v52   ;;  %v2424_v20 = vadd.f32 %v2423_v54, %v2297_v43  ;;  %v3462_v29 = vpop.f32.mrb[56].mxu0  ;;  %v2163_v21 = vadd.f32 %v3459_v7, %v2162_v60  ;;  %4419 = vst [vmem:[#allocation17_spill] sm:$0xff] %v4102_v23  ;;  %v1459_v7 = vadd.f32 %v4100_v22, %v3774_v9  ;;  %v4113_v54 = vpop.f32.mrb[55].mxu1 }
 0x172   : > { %v1047_v57 = vpop.f32.mrb[57].mxu0  ;;  %v1399_v44 = vadd.f32 %v3462_v29, %v3774_v9  ;;  %3308 = vst [vmem:[%s3784_s18 + $0x1c0] sm:$0xff] %v3216_v11   ;;  %4420 = vst [vmem:[#allocation18_spill] sm:$0xff] %v4110_v39  ;;  %v1460_v11 = vadd.f32 %v4110_v39, %v3774_v9  ;;  %v2301_v63 = vmul.f32 %v3462_v29, %v3462_v29 }
 0x173   : > { %v2164_v56 = vadd.f32 %v2163_v21, %v1047_v57  ;;  %v2299_v4 = vmul.f32 %v1047_v57, %v1047_v57  ;;  %v2425_v13 = vadd.f32 %v2424_v20, %v2298_v0  ;;  %v3463_v33 = vpop.f32.mrb[58].mxu0  ;;  %v1397_v55 = vadd.f32 %v3774_v9, %v1047_v57  ;;  %4421 = vst [vmem:[#allocation19_spill] sm:$0xff] %v4113_v54 }
 0x174   : > { %v1400_v42 = vadd.f32 %v3463_v33, %v3774_v9  ;;  %v1050_v36 = vpop.f32.mrb[59].mxu0  ;;  %v1457_v57 = vadd.f32 %v3774_v9, %v4102_v23 }
 0x175   : > { %v2426_v48 = vadd.f32 %v2425_v13, %v2299_v4  ;;  %v1398_v43 = vadd.f32 %v3774_v9, %v1050_v36  ;;  %v2165_v52 = vadd.f32 %v2164_v56, %v1050_v36  ;;  %v2300_v60 = vmul.f32 %v1050_v36, %v1050_v36  ;;  %v3628_v56 = vld [vmem:[%s4359_s2] ss:$0 sm:$0xff] }
 0x176   : > { %v3081_v50 = vpack.c.bf16 %v1400_v42, %v1399_v44  ;;  %v3231_v4 = vpack.c.bf16 %v1460_v11, %v1459_v7  ;;  %v1458_v13 = vadd.f32 %v3628_v56, %v4113_v54  ;;  %v2302_v44 = vmul.f32 %v3463_v33, %v3463_v33 }
 0x177   : > { %v3076_v0 = vpack.c.bf16 %v1398_v43, %v1397_v55  ;;  %v2166_v20 = vadd.f32 %v3462_v29, %v2165_v52  ;;  %v2427_v21 = vadd.f32 %v2426_v48, %v2300_v60  ;;  %v4126_v55 = vpop.f32.mrb[56].mxu1 }
 0x178   : > { %3281 = vst [vmem:[%s3784_s18 + $0xe8] sm:$0xff] %v3081_v50   ;;  %3311 = vst [vmem:[%s3784_s18 + $0x1d8] sm:$0xff] %v3231_v4   ;;  %v3226_v9 = vpack.c.bf16 %v1458_v13, %v1457_v57  ;;  %v4128_v52 = vpop.f32.mrb[57].mxu1 }
 0x179   : > { %3280 = vst [vmem:[%s3784_s18 + $0xe0] sm:$0xff] %v3076_v0   ;;  %v2428_v42 = vadd.f32 %v2427_v21, %v2301_v63  ;;  %v3466_v36 = vpop.f32.mrb[60].mxu0  ;;  %v2167_v22 = vadd.f32 %v3463_v33, %v2166_v20  ;;  %4422 = vst [vmem:[#allocation20_spill] sm:$0xff] %v4126_v55  ;;  %v1463_v63 = vadd.f32 %v3628_v56, %v4126_v55  ;;  %v4132_v33 = vpop.f32.mrb[58].mxu1 }
 0x17a   : > { %v1063_v23 = vpop.f32.mrb[61].mxu0  ;;  %4423 = vst [vmem:[#allocation21_spill] sm:$0xff] %v4128_v52  ;;  %v1403_v60 = vadd.f32 %v3628_v56, %v3466_v36  ;;  %3310 = vst [vmem:[%s3784_s18 + $0x1d0] sm:$0xff] %v3226_v9   ;;  %v4134_v21 = vpop.f32.mrb[59].mxu1  ;;  %v1461_v13 = vadd.f32 %v3628_v56, %v4128_v52 }
 0x17b   : > { %v2168_v29 = vadd.f32 %v2167_v22, %v1063_v23  ;;  %v2303_v48 = vmul.f32 %v1063_v23, %v1063_v23  ;;  %v2429_v7 = vadd.f32 %v2428_v42, %v2302_v44  ;;  %v3467_v43 = vpop.f32.mrb[62].mxu0  ;;  %v1401_v50 = vadd.f32 %v3628_v56, %v1063_v23  ;;  %4424 = vst [vmem:[#allocation22_spill] sm:$0xff] %v4132_v33  ;;  %v4144_v52 = vpop.f32.mrb[60].mxu1 }
 0x17c   : > { %v1404_v11 = vadd.f32 %v3628_v56, %v3467_v43  ;;  %v1066_v39 = vpop.f32.mrb[63].mxu0  ;;  %v1464_v23 = vadd.f32 %v3628_v56, %v4132_v33  ;;  %v2305_v44 = vmul.f32 %v3466_v36, %v3466_v36 }
 0x17d   : > { %v2430_v0 = vadd.f32 %v2429_v7, %v2303_v48  ;;  %v1402_v57 = vadd.f32 %v3628_v56, %v1066_v39  ;;  %v2169_v20 = vadd.f32 %v2168_v29, %v1066_v39  ;;  %v2304_v22 = vmul.f32 %v1066_v39, %v1066_v39 }
 0x17e   : > { %v3091_v4 = vpack.c.bf16 %v1404_v11, %v1403_v60  ;;  %v3241_v55 = vpack.c.bf16 %v1464_v23, %v1463_v63  ;;  %v1462_v48 = vadd.f32 %v3628_v56, %v4134_v21  ;;  %v2306_v7 = vmul.f32 %v3467_v43, %v3467_v43 }
 0x17f   : > { %v3086_v42 = vpack.c.bf16 %v1402_v57, %v1401_v50  ;;  %v2170_v9 = vadd.f32 %v3466_v36, %v2169_v20  ;;  %v2431_v54 = vadd.f32 %v2430_v0, %v2304_v22  ;;  %v2307_v60 = vmul.f32 %v3791_v35, %v3791_v35  ;;  %v4148_v0 = vpop.f32.mrb[61].mxu1 }
 0x180   : > { %3283 = vst [vmem:[%s3784_s18 + $0xf8] sm:$0xff] %v3091_v4   ;;  %3313 = vst [vmem:[%s3784_s18 + $0x1e8] sm:$0xff] %v3241_v55   ;;  %v3236_v11 = vpack.c.bf16 %v1462_v48, %v1461_v13  ;;  %v1467_v50 = vadd.f32 %v3628_v56, %v4144_v52  ;;  %v1465_v63 = vadd.f32 %v3628_v56, %v4148_v0  ;;  %v4152_v57 = vpop.f32.mrb[62].mxu1 }
 0x181   : > { %3282 = vst [vmem:[%s3784_s18 + $0xf0] sm:$0xff] %v3086_v42   ;;  %v2171_v39 = vadd.f32 %v3467_v43, %v2170_v9  ;;  %v2432_v29 = vadd.f32 %v2431_v54, %v2305_v44  ;;  %v2308_v43 = vmul.f32 %v3801_v46, %v3801_v46  ;;  %v1468_v20 = vadd.f32 %v3628_v56, %v4152_v57 }
 0x182   : > { %3312 = vst [vmem:[%s3784_s18 + $0x1e0] sm:$0xff] %v3236_v11   ;;  %v2309_v4 = vmul.f32 %v3789_v30, %v3789_v30  ;;  %v2310_v42 = vmul.f32 %v3798_v41, %v3798_v41  ;;  %v2311_v48 = vmul.f32 %v3814_v3, %v3814_v3 }
 0x183   : > { %v2433_v33 = vadd.f32 %v2432_v29, %v2306_v7  ;;  %v2172_v36 = vadd.f32 %v2171_v39, %v3791_v35  ;;  %v4158_v35 = vpop.f32.mrb[63].mxu1  ;;  %v3251_v44 = vpack.c.bf16 %v1468_v20, %v1467_v50  ;;  %v2312_v29 = vmul.f32 %v3825_v15, %v3825_v15 }
 0x184   : > { %v1466_v22 = vadd.f32 %v3628_v56, %v4158_v35  ;;  %v2316_v20 = vmul.f32 %v3849_v51, %v3849_v51 }
 0x185   : > { %v2434_v54 = vadd.f32 %v2433_v33, %v2307_v60  ;;  %v2173_v55 = vadd.f32 %v2172_v36, %v3801_v46  ;;  %3315 = vst [vmem:[%s3784_s18 + $0x1f8] sm:$0xff] %v3251_v44   ;;  %v2313_v60 = vmul.f32 %v3812_v62, %v3812_v62  ;;  %v2314_v36 = vmul.f32 %v3822_v10, %v3822_v10 }
 0x186   : > { %v3246_v33 = vpack.c.bf16 %v1466_v22, %v1465_v63 }
 0x187   : > { %v2174_v13 = vadd.f32 %v3789_v30, %v2173_v55  ;;  %v2435_v23 = vadd.f32 %v2434_v54, %v2308_v43 }
 0x188   : > { %3314 = vst [vmem:[%s3784_s18 + $0x1f0] sm:$0xff] %v3246_v33  }
 0x189   : > { %v2436_v9 = vadd.f32 %v2435_v23, %v2309_v4  ;;  %v2175_v46 = vadd.f32 %v3798_v41, %v2174_v13 }
 0x18b   : > { %v2176_v56 = vadd.f32 %v2175_v46, %v3814_v3  ;;  %v2437_v7 = vadd.f32 %v2436_v9, %v2310_v42  ;;  %v2315_v3 = vmul.f32 %v3838_v38, %v3838_v38  ;;  %v2320_v9 = vmul.f32 %v3873_v24, %v3873_v24 }
 0x18d   : > { %v2438_v39 = vadd.f32 %v2437_v7, %v2311_v48  ;;  %v2177_v30 = vadd.f32 %v2176_v56, %v3825_v15 }
 0x18f   : > { %v2178_v11 = vadd.f32 %v3812_v62, %v2177_v30  ;;  %v2439_v41 = vadd.f32 %v2438_v39, %v2312_v29  ;;  %v2317_v62 = vmul.f32 %v3836_v32, %v3836_v32 }
 0x191   : > { %v2440_v50 = vadd.f32 %v2439_v41, %v2313_v60  ;;  %v2179_v63 = vadd.f32 %v3822_v10, %v2178_v11  ;;  %v2318_v10 = vmul.f32 %v3846_v45, %v3846_v45  ;;  %v2324_v60 = vmul.f32 %v3897_v1, %v3897_v1 }
 0x193   : > { %v2180_v54 = vadd.f32 %v2179_v63, %v3838_v38  ;;  %v2441_v55 = vadd.f32 %v2440_v50, %v2314_v36  ;;  %v2319_v38 = vmul.f32 %v3862_v12, %v3862_v12 }
 0x195   : > { %v2442_v43 = vadd.f32 %v2441_v55, %v2315_v3  ;;  %v2181_v15 = vadd.f32 %v2180_v54, %v3849_v51  ;;  %v2328_v55 = vmul.f32 %v3921_v49, %v3921_v49 }
 0x197   : > { %v2182_v22 = vadd.f32 %v3836_v32, %v2181_v15  ;;  %v2443_v4 = vadd.f32 %v2442_v43, %v2316_v20  ;;  %v2321_v32 = vmul.f32 %v3860_v5, %v3860_v5 }
 0x199   : > { %v2444_v13 = vadd.f32 %v2443_v4, %v2317_v62  ;;  %v2183_v23 = vadd.f32 %v3846_v45, %v2182_v22  ;;  %v2322_v45 = vmul.f32 %v3870_v19, %v3870_v19 }
 0x19b   : > { %v2184_v44 = vadd.f32 %v2183_v23, %v3862_v12  ;;  %v2445_v33 = vadd.f32 %v2444_v13, %v2318_v10  ;;  %v2323_v12 = vmul.f32 %v3886_v53, %v3886_v53  ;;  %v2332_v13 = vmul.f32 %v3945_v34, %v3945_v34 }
 0x19d   : > { %v2446_v42 = vadd.f32 %v2445_v33, %v2319_v38  ;;  %v2185_v51 = vadd.f32 %v2184_v44, %v3873_v24 }
 0x19f   : > { %v2186_v46 = vadd.f32 %v3860_v5, %v2185_v51  ;;  %v2447_v48 = vadd.f32 %v2446_v42, %v2320_v9  ;;  %v2325_v5 = vmul.f32 %v3884_v47, %v3884_v47 }
 0x1a1   : > { %v2448_v56 = vadd.f32 %v2447_v48, %v2321_v32  ;;  %v2187_v7 = vadd.f32 %v3870_v19, %v2186_v46  ;;  %v2326_v19 = vmul.f32 %v3894_v59, %v3894_v59  ;;  %v2336_v32 = vmul.f32 %v3969_v27, %v3969_v27 }
 0x1a3   : > { %v2188_v39 = vadd.f32 %v2187_v7, %v3886_v53  ;;  %v2449_v30 = vadd.f32 %v2448_v56, %v2322_v45  ;;  %v2327_v53 = vmul.f32 %v3910_v31, %v3910_v31 }
 0x1a5   : > { %v2450_v29 = vadd.f32 %v2449_v30, %v2323_v12  ;;  %v2189_v24 = vadd.f32 %v2188_v39, %v3897_v1  ;;  %v2340_v30 = vmul.f32 %v3993_v28, %v3993_v28 }
 0x1a7   : > { %v2190_v11 = vadd.f32 %v3884_v47, %v2189_v24  ;;  %v2451_v41 = vadd.f32 %v2450_v29, %v2324_v60  ;;  %v2329_v47 = vmul.f32 %v3908_v25, %v3908_v25 }
 0x1a9   : > { %v2452_v36 = vadd.f32 %v2451_v41, %v2325_v5  ;;  %v2191_v50 = vadd.f32 %v3894_v59, %v2190_v11  ;;  %v2330_v59 = vmul.f32 %v3918_v40, %v3918_v40 }
 0x1ab   : > { %v2192_v63 = vadd.f32 %v2191_v50, %v3910_v31  ;;  %v2453_v3 = vadd.f32 %v2452_v36, %v2326_v19  ;;  %v2331_v31 = vmul.f32 %v3934_v17, %v3934_v17 }
 0x1ad   : > { %v2454_v54 = vadd.f32 %v2453_v3, %v2327_v53  ;;  %v2193_v1 = vadd.f32 %v2192_v63, %v3921_v49 }
 0x1af   : > { %v2194_v43 = vadd.f32 %v3908_v25, %v2193_v1  ;;  %v2455_v15 = vadd.f32 %v2454_v54, %v2328_v55  ;;  %v2333_v25 = vmul.f32 %v3932_v8, %v3932_v8  ;;  %v4427_v54 = vld [vmem:[#allocation3_spill] sm:$0xff] }
 0x1b1   : > { %v2456_v20 = vadd.f32 %v2455_v15, %v2329_v47  ;;  %v2195_v62 = vadd.f32 %v3918_v40, %v2194_v43  ;;  %v2334_v40 = vmul.f32 %v3942_v26, %v3942_v26 }
 0x1b3   : > { %v2196_v22 = vadd.f32 %v2195_v62, %v3934_v17  ;;  %v2457_v4 = vadd.f32 %v2456_v20, %v2330_v59  ;;  %v2335_v17 = vmul.f32 %v3958_v6, %v3958_v6  ;;  %v4429_v20 = vld [vmem:[#allocation8_spill] sm:$0xff] }
 0x1b5   : > { %v2458_v10 = vadd.f32 %v2457_v4, %v2331_v31  ;;  %v2197_v49 = vadd.f32 %v2196_v22, %v3945_v34  ;;  %v2348_v31 = vmul.f32 %v4429_v20, %v4429_v20  ;;  %v4430_v22 = vld [vmem:[#allocation5_spill] sm:$0xff] }
 0x1b6   : > { %v2349_v4 = vmul.f32 %v4430_v22, %v4430_v22 }
 0x1b7   : > { %v2198_v23 = vadd.f32 %v3932_v8, %v2197_v49  ;;  %v2459_v38 = vadd.f32 %v2458_v10, %v2332_v13  ;;  %v2337_v8 = vmul.f32 %v3956_v61, %v3956_v61  ;;  %v4431_v13 = vld [vmem:[#allocation7_spill] sm:$0xff] }
 0x1b9   : > { %v2460_v44 = vadd.f32 %v2459_v38, %v2333_v25  ;;  %v2199_v33 = vadd.f32 %v3942_v26, %v2198_v23  ;;  %v2338_v26 = vmul.f32 %v3966_v18, %v3966_v18  ;;  %v2350_v25 = vmul.f32 %v4431_v13, %v4431_v13 }
 0x1bb   : > { %v2200_v42 = vadd.f32 %v2199_v33, %v3958_v6  ;;  %v2461_v51 = vadd.f32 %v2460_v44, %v2334_v40  ;;  %v2339_v6 = vmul.f32 %v3982_v2, %v3982_v2  ;;  %v4432_v40 = vld [vmem:[#allocation10_spill] sm:$0xff] }
 0x1bc   : > { %v2351_v44 = vmul.f32 %v4432_v40, %v4432_v40 }
 0x1bd   : > { %v2462_v9 = vadd.f32 %v2461_v51, %v2335_v17  ;;  %v2201_v34 = vadd.f32 %v2200_v42, %v3969_v27  ;;  %v4433_v51 = vld [vmem:[#allocation12_spill] sm:$0xff] }
 0x1bf   : > { %v2202_v46 = vadd.f32 %v3956_v61, %v2201_v34  ;;  %v2463_v48 = vadd.f32 %v2462_v9, %v2336_v32  ;;  %v2341_v61 = vmul.f32 %v3980_v58, %v3980_v58  ;;  %v2352_v34 = vmul.f32 %v4433_v51, %v4433_v51  ;;  %v4434_v32 = vld [vmem:[#allocation9_spill] sm:$0xff] }
 0x1c1   : > { %v2464_v45 = vadd.f32 %v2463_v48, %v2337_v8  ;;  %v2203_v56 = vadd.f32 %v3966_v18, %v2202_v46  ;;  %v2342_v18 = vmul.f32 %v3990_v16, %v3990_v16  ;;  %v2353_v8 = vmul.f32 %v4434_v32, %v4434_v32 }
 0x1c3   : > { %v2204_v7 = vadd.f32 %v2203_v56, %v3982_v2  ;;  %v2465_v12 = vadd.f32 %v2464_v45, %v2338_v26  ;;  %v2343_v2 = vmul.f32 %v4006_v14, %v4006_v14  ;;  %v4435_v26 = vld [vmem:[#allocation11_spill] sm:$0xff] }
 0x1c4   : > { %v2354_v45 = vmul.f32 %v4435_v26, %v4435_v26 }
 0x1c5   : > { %v2466_v39 = vadd.f32 %v2465_v12, %v2339_v6  ;;  %v2205_v27 = vadd.f32 %v2204_v7, %v3993_v28  ;;  %v4425_v28 = vld [vmem:[#allocation4_spill] sm:$0xff]  ;;  %v4436_v7 = vld [vmem:[#allocation14_spill] sm:$0xff] }
 0x1c6   : > { %v2344_v50 = vmul.f32 %v4425_v28, %v4425_v28  ;;  %v2355_v12 = vmul.f32 %v4436_v7, %v4436_v7 }
 0x1c7   : > { %v2206_v29 = vadd.f32 %v3980_v58, %v2205_v27  ;;  %v2467_v24 = vadd.f32 %v2466_v39, %v2340_v30  ;;  %v4426_v58 = vld [vmem:[#allocation2_spill] sm:$0xff] }
 0x1c8   : > { %v2345_v53 = vmul.f32 %v4426_v58, %v4426_v58 }
 0x1c9   : > { %v2468_v60 = vadd.f32 %v2467_v24, %v2341_v61  ;;  %v2207_v5 = vadd.f32 %v3990_v16, %v2206_v29  ;;  %v2346_v16 = vmul.f32 %v4427_v54, %v4427_v54  ;;  %v2356_v29 = vmul.f32 %v4089_v37, %v4089_v37  ;;  %v4437_v24 = vld [vmem:[#allocation13_spill] sm:$0xff] }
 0x1cb   : > { %v2208_v11 = vadd.f32 %v2207_v5, %v4006_v14  ;;  %v2469_v41 = vadd.f32 %v2468_v60, %v2342_v18  ;;  %v4428_v14 = vld [vmem:[#allocation6_spill] sm:$0xff]  ;;  %v2357_v18 = vmul.f32 %v4437_v24, %v4437_v24 }
 0x1cc   : > { %v2347_v47 = vmul.f32 %v4428_v14, %v4428_v14 }
 0x1cd   : > { %v2470_v19 = vadd.f32 %v2469_v41, %v2343_v2  ;;  %v2209_v36 = vadd.f32 %v2208_v11, %v4425_v28  ;;  %v4438_v2 = vld [vmem:[#allocation15_spill] sm:$0xff]  ;;  %v4439_v28 = vld [vmem:[#allocation17_spill] sm:$0xff] }
 0x1ce   : > { %v2358_v11 = vmul.f32 %v4438_v2, %v4438_v2 }
 0x1cf   : > { %v2210_v63 = vadd.f32 %v4426_v58, %v2209_v36  ;;  %v2471_v3 = vadd.f32 %v2470_v19, %v2344_v50  ;;  %v2359_v36 = vmul.f32 %v4439_v28, %v4439_v28 }
 0x1d1   : > { %v2472_v1 = vadd.f32 %v2471_v3, %v2345_v53  ;;  %v2211_v55 = vadd.f32 %v4427_v54, %v2210_v63  ;;  %v4441_v54 = vld [vmem:[#allocation16_spill] sm:$0xff] }
 0x1d3   : > { %v2212_v43 = vadd.f32 %v2211_v55, %v4428_v14  ;;  %v2473_v15 = vadd.f32 %v2472_v1, %v2346_v16  ;;  %v2361_v16 = vmul.f32 %v4441_v54, %v4441_v54  ;;  %v4442_v14 = vld [vmem:[#allocation18_spill] sm:$0xff] }
 0x1d5   : > { %v2474_v59 = vadd.f32 %v2473_v15, %v2347_v47  ;;  %v2213_v62 = vadd.f32 %v2212_v43, %v4429_v20  ;;  %v2362_v47 = vmul.f32 %v4442_v14, %v4442_v14 }
 0x1d7   : > { %v2214_v10 = vadd.f32 %v4430_v22, %v2213_v62  ;;  %v2475_v49 = vadd.f32 %v2474_v59, %v2348_v31  ;;  %v4443_v59 = vld [vmem:[#allocation21_spill] sm:$0xff] }
 0x1d8   : > { %v2363_v20 = vmul.f32 %v4443_v59, %v4443_v59 }
 0x1d9   : > { %v2476_v23 = vadd.f32 %v2475_v49, %v2349_v4  ;;  %v2215_v38 = vadd.f32 %v4431_v13, %v2214_v10  ;;  %v2364_v10 = vmul.f32 %v4134_v21, %v4134_v21  ;;  %v4444_v49 = vld [vmem:[#allocation20_spill] sm:$0xff] }
 0x1da   : > { %v2365_v13 = vmul.f32 %v4444_v49, %v4444_v49 }
 0x1db   : > { %v2216_v33 = vadd.f32 %v2215_v38, %v4432_v40  ;;  %v2477_v17 = vadd.f32 %v2476_v23, %v2350_v25  ;;  %v4445_v38 = vld [vmem:[#allocation22_spill] sm:$0xff] }
 0x1dc   : > { %v2366_v40 = vmul.f32 %v4445_v38, %v4445_v38 }
 0x1dd   : > { %v2478_v42 = vadd.f32 %v2477_v17, %v2351_v44  ;;  %v2217_v9 = vadd.f32 %v2216_v33, %v4433_v51  ;;  %v2367_v17 = vmul.f32 %v4148_v0, %v4148_v0 }
 0x1df   : > { %v2218_v46 = vadd.f32 %v4434_v32, %v2217_v9  ;;  %v2479_v48 = vadd.f32 %v2478_v42, %v2352_v34  ;;  %v2368_v34 = vmul.f32 %v4158_v35, %v4158_v35  ;;  %v2369_v32 = vmul.f32 %v4144_v52, %v4144_v52 }
 0x1e1   : > { %v2480_v56 = vadd.f32 %v2479_v48, %v2353_v8  ;;  %v2219_v6 = vadd.f32 %v4435_v26, %v2218_v46  ;;  %v2370_v48 = vmul.f32 %v4152_v57, %v4152_v57 }
 0x1e3   : > { %v2220_v39 = vadd.f32 %v2219_v6, %v4436_v7  ;;  %v2481_v27 = vadd.f32 %v2480_v56, %v2354_v45 }
 0x1e5   : > { %v2482_v30 = vadd.f32 %v2481_v27, %v2355_v12  ;;  %v2221_v61 = vadd.f32 %v2220_v39, %v4089_v37  ;;  %v4440_v37 = vld [vmem:[#allocation19_spill] sm:$0xff] }
 0x1e6   : > { %v2360_v3 = vmul.f32 %v4440_v37, %v4440_v37 }
 0x1e7   : > { %v2222_v60 = vadd.f32 %v4437_v24, %v2221_v61  ;;  %v2483_v5 = vadd.f32 %v2482_v30, %v2356_v29 }
 0x1e9   : > { %v2484_v41 = vadd.f32 %v2483_v5, %v2357_v18  ;;  %v2223_v19 = vadd.f32 %v4438_v2, %v2222_v60 }
 0x1eb   : > { %v2224_v50 = vadd.f32 %v2223_v19, %v4439_v28  ;;  %v2485_v58 = vadd.f32 %v2484_v41, %v2358_v11 }
 0x1ed   : > { %v2486_v53 = vadd.f32 %v2485_v58, %v2359_v36  ;;  %v2225_v63 = vadd.f32 %v2224_v50, %v4440_v37 }
 0x1ef   : > { %v2226_v1 = vadd.f32 %v4441_v54, %v2225_v63  ;;  %v2487_v55 = vadd.f32 %v2486_v53, %v2360_v3 }
 0x1f1   : > { %v2488_v43 = vadd.f32 %v2487_v55, %v2361_v16  ;;  %v2227_v15 = vadd.f32 %v4442_v14, %v2226_v1 }
 0x1f3   : > { %v2228_v62 = vadd.f32 %v2227_v15, %v4443_v59  ;;  %v2489_v31 = vadd.f32 %v2488_v43, %v2362_v47 }
 0x1f5   : > { %v2490_v22 = vadd.f32 %v2489_v31, %v2363_v20  ;;  %v2229_v4 = vadd.f32 %v2228_v62, %v4134_v21 }
 0x1f7   : > { %v2230_v25 = vadd.f32 %v4444_v49, %v2229_v4  ;;  %v2491_v23 = vadd.f32 %v2490_v22, %v2364_v10 }
 0x1f9   : > { %v2492_v44 = vadd.f32 %v2491_v23, %v2365_v13  ;;  %v2231_v33 = vadd.f32 %v4445_v38, %v2230_v25 }
 0x1fb   : > { %v2232_v42 = vadd.f32 %v2231_v33, %v4148_v0  ;;  %v2493_v21 = vadd.f32 %v2492_v44, %v2366_v40 }
 0x1fd   : > { %v2494_v51 = vadd.f32 %v2493_v21, %v2367_v17  ;;  %v2233_v9 = vadd.f32 %v2232_v42, %v4158_v35 }
 0x1ff   : > { %v2234_v8 = vadd.f32 %v4144_v52, %v2233_v9  ;;  %v2495_v46 = vadd.f32 %v2494_v51, %v2368_v34 }
 0x201   : > { %v2235_v26 = vadd.f32 %v4152_v57, %v2234_v8  ;;  %v2496_v0 = vadd.f32 %v2495_v46, %v2369_v32 }
 0x203   : > { %v2236_v45 = vrot.slane %v2235_v26, 4  ;;  %v2497_v56 = vadd.f32 %v2496_v0, %v2370_v48 }
 0x205   : > { %v2237_v6 = vadd.f32 %v2236_v45, %v2235_v26  ;;  %v2498_v7 = vrot.slane %v2497_v56, 4 }
 0x207   : > { %v2238_v12 = vrot.slane %v2237_v6, 2  ;;  %v2499_v35 = vadd.f32 %v2498_v7, %v2497_v56 }
 0x209   : > { %v2239_v39 = vadd.f32 %v2238_v12, %v2237_v6  ;;  %v2500_v27 = vrot.slane %v2499_v35, 2 }
 0x20b   : > { %v2240_v30 = vrot.slane %v2239_v39, 1  ;;  %v2501_v52 = vadd.f32 %v2500_v27, %v2499_v35 }
 0x20d   : > { %v2241_v61 = vadd.f32 %v2240_v30, %v2239_v39  ;;  %v2502_v29 = vrot.slane %v2501_v52, 1 }
 0x20f   : > { %2242 = vst [vmem:[%s211_s24] sm:$0x1] %v2241_v61  ;;  %v2503_v57 = vadd.f32 %v2502_v29, %v2501_v52 }
 0x211   : > { %2504 = vst [vmem:[%s211_s24 + $0x1] sm:$0x1] %v2503_v57 }
 0x212 PF: > { %s15_s15 = sadd.s32 1, %s3635_s15  }
 0x213   : > { %p12_p5 = scmp.ge.s32.totalorder %s15_s15, 4  }
 0x215   :  { %14 = sbr.rel (!%p12_p5) target bundleno = 1 (0x1), region = 74 }

// kernel: basic_block_forward.4
= control target key start
LH: loop header
LB: loop body
LE: loop exit
PB: predicated region body
PF: predicated region fallthrough
CT: control target
= control target key end

     0   :  { %s3852_s21 = smov 0   ;;  %s3854_s22 = smov 0   ;;  %s6782_s0 = inlined_call_operand.vmem [shape: bf16[2,32,32,128], index: 0, kind: input, shape index: {}, may-alias: {0,1,2}]   ;;  %s6783_s1 = inlined_call_operand.vmem [shape: bf16[2,32,32,128], index: 1, kind: input, shape index: {}, may-alias: {0,1,2}]   ;;  %s6784_s2 = inlined_call_operand.vmem [shape: bf16[2,32,32,128], index: 2, kind: input, shape index: {}, may-alias: {0,1,2}]   ;;  %s6785_s3 = inlined_call_operand.vmem [shape: f32[3,3,128], index: 3, kind: input, shape index: {}]   ;;  %s6786_s4 = inlined_call_operand.vmem [shape: f32[2,128], index: 4, kind: input, shape index: {}]   ;;  %s6787_s5 = inlined_call_operand.vmem [shape: bf16[2,32,32,128], index: 5, kind: output, shape index: {0}]   ;;  %s6788_s6 = inlined_call_operand.vmem [shape: f32[4,2,128], index: 6, kind: output, shape index: {1}]  }
   0x1   :  { %s3856_s23 = smov 0   ;;  %s3858_s24 = smov 0  }
   0x2   :  { %s3860_s25 = smov 0  }
   0x3 LB: > { %s26_s26 = sadd.s32 1, %s3807_s23  ;;  %s29_s27 = sadd.s32 1, %s3811_s24  ;;  %s3815_s25 = sphi %s3860_s25, %s17_s25   ;;  %s3811_s24 = sphi %s3858_s24, %s6863_s24   ;;  %s3807_s23 = sphi %s3856_s23, %s6862_s23   ;;  %s3803_s22 = sphi %s3854_s22, %s6861_s22   ;;  %s3799_s21 = sphi %s3852_s21, %s6860_s21  }
   0x4   : > { %p27_p0 = scmp.ge.s32.totalorder %s26_s26, 2  ;;  %p3195_p1 = scmp.ge.s32.totalorder %s3815_s25, 1 }
   0x5   : > { %p305_p2 = scmp.lt.s32.totalorder %s3815_s25, 5 }
   0x6   : > { %s6865_s26 = smov (%p27_p0, %s26_s26), 0  ;;  %s6867_s27 = smov (!%p27_p0, %s29_s27), %s3811_s24 }
   0x7   : > { %p306_p3 = pnand %p3195_p1, %p305_p2  ;;  %p31_p4 = scmp.ge.s32.totalorder %s6867_s27, 2 }
   0x9   : > { %s6869_s27 = smov (%p31_p4, %s6867_s27), 0  ;;  %309 = sbr.rel (%p306_p3) target bundleno = 531 (0x213), region = 40 }
  0x10   : > { %s3887_s28 = sshll.u32 %s3799_s21, 4  ;;  %p378_p5 = scmp.lt.s32.totalorder %s3803_s22, 1  ;;  %v827_v0 = vlaneseq  ;;  %v1290_v3 = vld [vmem:[%s6785_s3] sm:$0x7]  ;;  %v1291_v6 = vld [vmem:[%s6785_s3 + $0x4] sm:$0x7] }
  0x11   : > { %p380_p6 = scmp.lt.s32.totalorder %s3887_s28, 31  ;;  %s3892_s29 = sadd.s32 4294967295, %s3887_s28  ;;  %v3918_v7 = vld [vmem:[%s6785_s3 + $0x8] sm:$0x7]  ;;  %v3932_v8 = vld [vmem:[%s6786_s4] ss:$0 sm:$0xff] }
  0x12   : > { %s379_s30 = scalar_select %p378_p5, %s3803_s22, 1  ;;  %v3895_v1 = vshrl.u32 %v827_v0, 7  ;;  %v3962_v23 = vld [vmem:[%s6786_s4 + $0x1] ss:$0 sm:$0xff] }
  0x13   : > { %s381_s7 = scalar_select %p380_p6, %s3887_s28, 31 }
  0x14   : > { %s3898_s8 = sshll.u32 %s379_s30, 7  ;;  %v1295_v2 = vsub.s32 0, %v3895_v1  ;;  %p390_p7 = scmp.gt.s32.totalorder %s3892_s29, 0  ;;  %v1427_v4 = vsub.s32 1, %v3895_v1  ;;  %v3907_v5 = vsub.s32 2, %v3895_v1  ;;  %v3938_v10 = vadd.s32 24, %v3895_v1 }
  0x15   : > { %s3197_s9 = sshll.u32 %s381_s7, 2  ;;  %p3202_p8 = scmp.lt.s32.totalorder %s3892_s29, 31  ;;  %vm908_vm0 = vcmp.lt.s32.totalorder %v3895_v1, 1  ;;  %vm832_vm1 = vcmp.eq.s32.totalorder %v3895_v1, 0  ;;  %vm1137_vm2 = vcmp.lt.s32.totalorder %v3895_v1, 7 }
  0x16   : > { %s3910_s12 = sadd.s32 %s3898_s8, %s3197_s9  ;;  %p443_p9 = scmp.eq.s32.totalorder %s3799_s21, 0  ;;  %v3935_v9 = vrot.slane %v1290_v3, %v1295_v2  ;;  %v3946_v14 = vrot.slane %v1290_v3, %v1427_v4  ;;  %v3949_v15 = vrot.slane %v1290_v3, %v3907_v5  ;;  %v3951_v16 = vrot.slane %v1291_v6, %v1295_v2 }
  0x17   : > { %s3199_s17 = sshll.u32 %s3910_s12, 2  ;;  %v3954_v17 = vrot.slane %v3918_v7, %v1295_v2  ;;  %v3971_v31 = vrot.slane %v1291_v6, %v1427_v4  ;;  %v3977_v35 = vrot.slane %v1291_v6, %v3907_v5  ;;  %v3985_v39 = vrot.slane %v3918_v7, %v1427_v4  ;;  %s3298_s16 = sadd.s32 16, %s3887_s28 }
  0x18   : > { %s3927_s20 = scalar_lea.vmem %s6782_s0, %s3199_s17  ;;  %vm1064_vm4 = vcmp.eq.s32.totalorder %v3938_v10, 31  ;;  %p6502_p10 = scmp.lt.s32.totalorder %s3298_s16, 31 }
  0x19   : > { %s391_s9 = scalar_select %p390_p7, %s3892_s29, 0  ;;  %v3380_v11 = vld [vmem:[%s3927_s20] sm:$0xff]   ;;  %v3669_v12 = vld [vmem:[%s3927_s20 + $0x8] sm:$0xff]   ;;  %v3670_v13 = vld [vmem:[%s3927_s20 + $0x10] sm:$0xff]  }
  0x1a   : > { %v3381_v18 = vunpack.c.l.bf16 %v3380_v11  ;;  %v3382_v19 = vunpack.c.h.bf16 %v3380_v11  ;;  %v3385_v20 = vunpack.c.l.bf16 %v3669_v12  ;;  %v3386_v21 = vunpack.c.h.bf16 %v3669_v12  ;;  %v3671_v22 = vld [vmem:[%s3927_s20 + $0x18] sm:$0xff]   ;;  %s3966_s13 = scalar_select %p443_p9, 1, 0 }
  0x1b   : > { %s6871_s9 = smov (!%p3202_p8, %s391_s9), 31  ;;  %v3389_v24 = vunpack.c.l.bf16 %v3670_v13  ;;  %v3390_v25 = vunpack.c.h.bf16 %v3670_v13  ;;  %v3393_v26 = vunpack.c.l.bf16 %v3671_v22  ;;  %v3394_v27 = vunpack.c.h.bf16 %v3671_v22  ;;  %s6873_s16 = smov (!%p6502_p10, %s3298_s16), 31 }
  0x1c   : > { %v635_v28 = vmul.f32 %v3381_v18, %v3932_v8  ;;  %v636_v29 = vmul.f32 %v3382_v19, %v3932_v8  ;;  %v637_v30 = vmul.f32 %v3385_v20, %v3932_v8  ;;  %s3207_s29 = sshll.u32 %s6871_s9, 2  ;;  %v638_v32 = vmul.f32 %v3386_v21, %v3932_v8  ;;  %s4235_s9 = scalar_lea.vmem %s6787_s5, %s3199_s17 }
  0x1d   : > { %v639_v33 = vmul.f32 %v3389_v24, %v3932_v8  ;;  %v640_v34 = vmul.f32 %v3390_v25, %v3932_v8  ;;  %s398_s14 = sadd.s32 %s3207_s29, %s3898_s8  ;;  %v642_v36 = vmul.f32 %v3394_v27, %v3932_v8  ;;  %v641_v40 = vmul.f32 %v3393_v26, %v3932_v8  ;;  %s6875_s16 = smov (!%p6502_p10, %s6873_s16), 31 }
  0x1e   : > { %v699_v37 = vadd.f32 %v3962_v23, %v635_v28  ;;  %v700_v38 = vadd.f32 %v3962_v23, %v636_v29  ;;  %s3209_s15 = sshll.u32 %s398_s14, 2  ;;  %v702_v41 = vadd.f32 %v3962_v23, %v638_v32  ;;  %v473_v44 = vstv %s3966_s13  ;;  %s3214_s28 = sshll.u32 %s6875_s16, 2 }
  0x1f   : > { %v703_v42 = vadd.f32 %v3962_v23, %v639_v33  ;;  %v704_v43 = vadd.f32 %v3962_v23, %v640_v34  ;;  %s400_s19 = scalar_lea.vmem %s6783_s1, %s3209_s15  ;;  %v701_v45 = vadd.f32 %v3962_v23, %v637_v30  ;;  %v706_v46 = vadd.f32 %v3962_v23, %v642_v36  ;;  %s415_s12 = sadd.s32 %s3214_s28, %s3898_s8 }
  0x20   : > { %v3997_v47 = vmax.f32 %v699_v37, 0.0  ;;  %v3364_v48 = vld [vmem:[%s400_s19] sm:$0xff]   ;;  %v3667_v49 = vld [vmem:[%s400_s19 + $0x8] sm:$0xff]   ;;  %v3999_v50 = vmax.f32 %v700_v38, 0.0  ;;  %v4001_v51 = vmax.f32 %v702_v41, 0.0  ;;  %v705_v58 = vadd.f32 %v3962_v23, %v641_v40  ;;  %s3216_s8 = sshll.u32 %s415_s12, 2 }
  0x21   : > { %v4003_v52 = vmax.f32 %v703_v42, 0.0  ;;  %v4005_v53 = vmax.f32 %v704_v43, 0.0  ;;  %v3365_v54 = vunpack.c.l.bf16 %v3364_v48  ;;  %v3366_v55 = vunpack.c.h.bf16 %v3364_v48  ;;  %s417_s11 = scalar_lea.vmem %s6784_s2, %s3216_s8  ;;  %p479_p11 = scmp.eq.s32.totalorder %s3799_s21, 1 }
  0x22   : > { %v3369_v56 = vunpack.c.l.bf16 %v3667_v49  ;;  %v3370_v57 = vunpack.c.h.bf16 %v3667_v49  ;;  %v4008_v59 = vmax.f32 %v706_v46, 0.0  ;;  %v837_v60 = vrot.slane %v3997_v47, 7  ;;  %s3221_s29 = sshll.u32 %s3803_s22, 1 }
  0x23   : > { %v838_v61 = vrot.slane %v4003_v52, 7  ;;  %v456_v62 = vmul.f32 %v3365_v54, %v3932_v8  ;;  %v457_v63 = vmul.f32 %v3366_v55, %v3932_v8  ;;  %v855_v3 = vrot.slane %v3999_v50, 7  ;;  %s500_s13 = scalar_select %p479_p11, 1, 0 }
  0x24   : > { %6795 = vst [vmem:[#allocation2_spill] sm:$0xff] %v4008_v59  ;;  %v458_v0 = vmul.f32 %v3369_v56, %v3932_v8  ;;  %v459_v2 = vmul.f32 %v3370_v57, %v3932_v8  ;;  %v856_v4 = vrot.slane %v4005_v53, 7  ;;  %v891_v6 = vrot.slane %v4001_v51, 7  ;;  %s434_s14 = sadd.s32 %s3799_s21, %s3221_s29 }
  0x25   : > { %v892_v11 = vrot.slane %v4008_v59, 7  ;;  %v464_v12 = vadd.f32 %v3962_v23, %v456_v62  ;;  %v465_v13 = vadd.f32 %v3962_v23, %v457_v63  ;;  %vm474_vm3 = vcmp.eq.s32.totalorder %v473_v44, 1  ;;  %p435_p12 = scmp.lt.s32.totalorder %s434_s14, 3 }
  0x26   : > { %v466_v18 = vadd.f32 %v3962_v23, %v458_v0  ;;  %v467_v19 = vadd.f32 %v3962_v23, %v459_v2  ;;  %v4026_v20 = vmax.f32 %v701_v45, 0.0  ;;  %v4028_v21 = vmax.f32 %v705_v58, 0.0 }
  0x27   : > { %v4032_v22 = vrot.slane %v3918_v7, %v3907_v5  ;;  %v468_v24 = vmax.f32 %v464_v12, 0.0  ;;  %v469_v25 = vmax.f32 %v465_v13, 0.0  ;;  %v946_v28 = vsel %vm908_vm0, %v837_v60, %v855_v3  ;;  %s6877_s14 = smov (!%p435_p12, %s434_s14), 3 }
  0x28   : > { %6796 = vst [vmem:[#allocation3_spill] sm:$0xff] %v4028_v21  ;;  %v470_v26 = vmax.f32 %v466_v18, 0.0  ;;  %v471_v27 = vmax.f32 %v467_v19, 0.0  ;;  %v4042_v29 = vsel %vm908_vm0, %v838_v61, %v856_v4  ;;  %v964_v5 = vsel %vm908_vm0, %v891_v6, %v837_v60  ;;  %s3222_s22 = sshll.u32 %s6877_s14, 1 }
  0x29   : > { %v965_v7 = vsel %vm908_vm0, %v892_v11, %v838_v61  ;;  %v4052_v30 = vsel %vm474_vm3, 0.0, %v468_v24  ;;  %v4054_v32 = vsel %vm474_vm3, 0.0, %v469_v25  ;;  %v6791_v41 = vrot.slane %v4003_v52, 1  ;;  %s438_s15 = scalar_lea.vmem %s6788_s6, %s3222_s22 }
  0x2a   : > { %v4056_v33 = vsel %vm474_vm3, 0.0, %v470_v26  ;;  %v4058_v34 = vsel %vm474_vm3, 0.0, %v471_v27  ;;  %v836_v36 = vrot.slane %v4052_v30, 7  ;;  %v854_v37 = vrot.slane %v4054_v32, 7 }
  0x2b   : > { %v890_v38 = vrot.slane %v4058_v34, 7  ;;  %v1065_v40 = vrot.slane %v4052_v30, 1  ;;  %v1083_v42 = vrot.slane %v4054_v32, 1  ;;  %v1085_v43 = vrot.slane %v4005_v53, 1 }
  0x2c   : > { %v6790_v44 = vrot.slane %v4056_v33, 1  ;;  %v945_v45 = vsel %vm908_vm0, %v836_v36, %v854_v37  ;;  %v997_v48 = vsel %vm832_vm1, 0.0, %v965_v7  ;;  %v6789_v49 = vrot.slane %v4028_v21, 1 }
  0x2d   : > { %v963_v46 = vsel %vm908_vm0, %v890_v38, %v836_v36  ;;  %v993_v55 = vsel %vm832_vm1, 0.0, %v964_v5  ;;  %v6792_v56 = vrot.slane %v3997_v47, 1  ;;  %v1084_v57 = vrot.slane %v3999_v50, 1 }
  0x2e   : > { %v989_v54 = vsel %vm832_vm1, 0.0, %v963_v46  ;;  %v1102_v58 = vrot.slane %v4026_v20, 1  ;;  %v1156_v60 = vsel %vm1137_vm2, %v1083_v42, %v6790_v44  ;;  %v1174_v61 = vsel %vm1137_vm2, %v1065_v40, %v1083_v42 }
  0x2f   : > { %v1297_v62 = vmul.f32 %v3935_v9, %v989_v54  ;;  %v1158_v63 = vsel %vm1137_vm2, %v1085_v43, %v6789_v49  ;;  %v1176_v0 = vsel %vm1137_vm2, %v6791_v41, %v1085_v43  ;;  %v1298_v2 = vmul.f32 %v3935_v9, %v945_v45 }
  0x30   : > { %v1305_v12 = vmul.f32 %v3935_v9, %v997_v48  ;;  %v1306_v13 = vmul.f32 %v3935_v9, %v4042_v29  ;;  %v1429_v18 = vmul.f32 %v3946_v14, %v4052_v30  ;;  %v1430_v19 = vmul.f32 %v3946_v14, %v4054_v32 }
  0x31   : > { %v1437_v24 = vmul.f32 %v3946_v14, %v4003_v52  ;;  %v1175_v25 = vsel %vm1137_vm2, %v6792_v56, %v1084_v57  ;;  %v1438_v26 = vmul.f32 %v3946_v14, %v4005_v53  ;;  %v1561_v27 = vmul.f32 %v3949_v15, %v1174_v61 }
  0x32   : > { %v1562_v5 = vmul.f32 %v3949_v15, %v1156_v60  ;;  %v1157_v7 = vsel %vm1137_vm2, %v1084_v57, %v1102_v58  ;;  %v1493_v36 = vadd.f32 %v1429_v18, %v1297_v62  ;;  %v1494_v42 = vadd.f32 %v1430_v19, %v1298_v2 }
  0x33   : > { %v1501_v43 = vadd.f32 %v1437_v24, %v1305_v12  ;;  %v1502_v45 = vadd.f32 %v1438_v26, %v1306_v13  ;;  %v1569_v46 = vmul.f32 %v3949_v15, %v1176_v0  ;;  %v1570_v54 = vmul.f32 %v3949_v15, %v1158_v63 }
  0x34   : > { %v1693_v49 = vmul.f32 %v3951_v16, %v993_v55  ;;  %v4129_v44 = vmul.f32 %v3935_v9, %v993_v55  ;;  %v1625_v61 = vadd.f32 %v1561_v27, %v1493_v36  ;;  %v1626_v60 = vadd.f32 %v1562_v5, %v1494_v42 }
  0x35   : > { %v1694_v41 = vmul.f32 %v3951_v16, %v946_v28  ;;  %v4133_v56 = vmul.f32 %v3935_v9, %v946_v28  ;;  %v4136_v57 = vmul.f32 %v3949_v15, %v1175_v25  ;;  %v4139_v62 = vmul.f32 %v3949_v15, %v1157_v7 }
  0x36   : > { %v1825_v2 = vmul.f32 %v3971_v31, %v3997_v47  ;;  %v1757_v12 = vadd.f32 %v1693_v49, %v1625_v61  ;;  %v1826_v55 = vmul.f32 %v3971_v31, %v3999_v50  ;;  %v1957_v18 = vmul.f32 %v3977_v35, %v1175_v25 }
  0x37   : > { %v1758_v13 = vadd.f32 %v1694_v41, %v1626_v60  ;;  %v4147_v28 = vadd.f32 %v1569_v46, %v1501_v43  ;;  %v4149_v19 = vadd.f32 %v1570_v54, %v1502_v45  ;;  %v4152_v24 = vmul.f32 %v3951_v16, %v997_v48 }
  0x38   : > { %v1958_v26 = vmul.f32 %v3977_v35, %v1157_v7  ;;  %v1889_v27 = vadd.f32 %v1825_v2, %v1757_v12  ;;  %v2089_v41 = vmul.f32 %v3954_v17, %v997_v48  ;;  %v2090_v49 = vmul.f32 %v3954_v17, %v4042_v29 }
  0x39   : > { %6797 = vst [vmem:[#allocation4_spill] sm:$0xff] %v4147_v28  ;;  %6798 = vst [vmem:[#allocation5_spill] sm:$0xff] %v4149_v19  ;;  %v1890_v5 = vadd.f32 %v1826_v55, %v1758_v13  ;;  %v4160_v25 = vmul.f32 %v3951_v16, %v4042_v29  ;;  %v4163_v36 = vmul.f32 %v3977_v35, %v1176_v0  ;;  %v872_v43 = vrot.slane %v4056_v33, 7 }
  0x3a   : > { %v4166_v42 = vmul.f32 %v3977_v35, %v1158_v63  ;;  %v2021_v7 = vadd.f32 %v1957_v18, %v1889_v27  ;;  %v2221_v48 = vmul.f32 %v3985_v39, %v4003_v52  ;;  %v2222_v46 = vmul.f32 %v3985_v39, %v4005_v53 }
  0x3b   : > { %v2022_v45 = vadd.f32 %v1958_v26, %v1890_v5  ;;  %v873_v54 = vrot.slane %v4026_v20, 7  ;;  %v874_v29 = vrot.slane %v4028_v21, 7  ;;  %v1119_v61 = vrot.slane %v4058_v34, 1 }
  0x3c   : > { %v1120_v60 = vrot.slane %v4001_v51, 1  ;;  %v2153_v2 = vadd.f32 %v2089_v41, %v2021_v7  ;;  %v2353_v13 = vmul.f32 %v4032_v22, %v1176_v0  ;;  %v2354_v55 = vmul.f32 %v4032_v22, %v1158_v63 }
  0x3d   : > { %v2154_v12 = vadd.f32 %v2090_v49, %v2022_v45  ;;  %v909_v18 = vsel %vm908_vm0, %v872_v43, %v890_v38  ;;  %v910_v26 = vsel %vm908_vm0, %v873_v54, %v891_v6  ;;  %v927_v27 = vsel %vm908_vm0, %v854_v37, %v872_v43 }
  0x3e   : > { %v1121_v0 = vrot.slane %v4008_v59, 1  ;;  %v2285_v5 = vadd.f32 %v2221_v48, %v2153_v2  ;;  %v4196_v38 = vsel %vm908_vm0, %v874_v29, %v892_v11  ;;  %v1192_v6 = vsel %vm1137_vm2, %v1119_v61, %v1065_v40 }
  0x3f   : > { %v2286_v63 = vadd.f32 %v2222_v46, %v2154_v12  ;;  %v928_v32 = vsel %vm908_vm0, %v855_v3, %v873_v54  ;;  %v929_v37 = vsel %vm908_vm0, %v856_v4, %v874_v29  ;;  %v6799_v41 = vrot.slane %v3997_v47, 1 }
  0x40   : > { %v6800_v30 = vrot.slane %v4003_v52, 1  ;;  %v4218_v49 = vadd.f32 %v2353_v13, %v2285_v5  ;;  %v6801_v3 = vrot.slane %v4056_v33, 1  ;;  %v1139_v4 = vsel %vm1137_vm2, %v1102_v58, %v1120_v60 }
  0x41   : > { %v1193_v11 = vsel %vm1137_vm2, %v1120_v60, %v6799_v41  ;;  %v4220_v43 = vadd.f32 %v2354_v55, %v2286_v63  ;;  %v6802_v45 = vrot.slane %v4028_v21, 1  ;;  %v1221_v46 = vsel %vm1064_vm4, 0.0, %v1192_v6 }
  0x42   : > { %v1194_v40 = vsel %vm1137_vm2, %v1121_v0, %v6800_v30  ;;  %v1138_v7 = vsel %vm1137_vm2, %v6801_v3, %v1119_v61  ;;  %v1299_v54 = vmul.f32 %v3935_v9, %v927_v27  ;;  %v1300_v58 = vmul.f32 %v3935_v9, %v909_v18 }
  0x43   : > { %v4241_v48 = vsel %vm1137_vm2, %v6802_v45, %v1121_v0  ;;  %v3510_v29 = vpack.c.bf16 %v4220_v43, %v4218_v49  ;;  %v1225_v61 = vsel %vm1064_vm4, 0.0, %v1193_v11  ;;  %v4253_v60 = vsel %vm1064_vm4, 0.0, %v1194_v40 }
  0x44   : > { %v1307_v2 = vmul.f32 %v3935_v9, %v929_v37  ;;  %v4257_v12 = vmul.f32 %v3935_v9, %v928_v32  ;;  %v1431_v13 = vmul.f32 %v3946_v14, %v4056_v33  ;;  %v1432_v55 = vmul.f32 %v3946_v14, %v4058_v34 }
  0x45   : > { %v1439_v18 = vmul.f32 %v3946_v14, %v4028_v21  ;;  %3511 = vst [vmem:[%s4235_s9] sm:$0xff] %v3510_v29   ;;  %v1308_v27 = vmul.f32 %v3935_v9, %v4196_v38  ;;  %v1440_v0 = vmul.f32 %v3946_v14, %v4008_v59  ;;  %v1563_v5 = vmul.f32 %v3949_v15, %v1138_v7 }
  0x46   : > { %v1564_v63 = vmul.f32 %v3949_v15, %v1221_v46  ;;  %v4274_v33 = vmul.f32 %v4218_v49, %v4218_v49  ;;  %v4277_v34 = vmul.f32 %v3935_v9, %v910_v26  ;;  %v1495_v6 = vadd.f32 %v1431_v13, %v1299_v54 }
  0x47   : > { %v1496_v41 = vadd.f32 %v1432_v55, %v1300_v58  ;;  %v4281_v11 = vmul.f32 %v4220_v43, %v4220_v43  ;;  %v1503_v30 = vadd.f32 %v1439_v18, %v1307_v2  ;;  %v1571_v40 = vmul.f32 %v3949_v15, %v4241_v48 }
  0x48   : > { %v1695_v3 = vmul.f32 %v3951_v16, %v928_v32  ;;  %v4287_v7 = vmul.f32 %v3949_v15, %v1139_v4  ;;  %v1627_v45 = vadd.f32 %v1563_v5, %v1495_v6  ;;  %v1696_v29 = vmul.f32 %v3951_v16, %v910_v26 }
  0x49   : > { %6803 = vst [vmem:[#allocation6_spill] sm:$0xff] %v4281_v11  ;;  %v1628_v46 = vadd.f32 %v1564_v63, %v1496_v41  ;;  %v1504_v54 = vadd.f32 %v1440_v0, %v1308_v27  ;;  %v4291_v58 = vmul.f32 %v3949_v15, %v1225_v61  ;;  %v1572_v2 = vmul.f32 %v3949_v15, %v4253_v60  ;;  %v3672_v63 = vld [vmem:[%s3927_s20 + $0x20] sm:$0xff]  }
  0x4a   : > { %v1827_v13 = vmul.f32 %v3971_v31, %v4026_v20  ;;  %v1759_v55 = vadd.f32 %v1695_v3, %v1627_v45  ;;  %v1828_v18 = vmul.f32 %v3971_v31, %v4001_v51  ;;  %v1959_v5 = vmul.f32 %v3977_v35, %v1139_v4 }
  0x4b   : > { %v1760_v32 = vadd.f32 %v1696_v29, %v1628_v46  ;;  %v4301_v26 = vadd.f32 %v1571_v40, %v1503_v30  ;;  %v4304_v27 = vmul.f32 %v3951_v16, %v929_v37  ;;  %v1960_v0 = vmul.f32 %v3977_v35, %v1225_v61  ;;  %v3673_v46 = vld [vmem:[%s3927_s20 + $0x28] sm:$0xff]  }
  0x4c   : > { %v2091_v6 = vmul.f32 %v3954_v17, %v929_v37  ;;  %v1891_v41 = vadd.f32 %v1827_v13, %v1759_v55  ;;  %v2092_v3 = vmul.f32 %v3954_v17, %v4196_v38  ;;  %v2223_v45 = vmul.f32 %v3985_v39, %v4028_v21 }
  0x4d   : > { %6804 = vst [vmem:[#allocation7_spill] sm:$0xff] %v4301_v26  ;;  %6805 = vst [vmem:[#allocation8_spill] sm:$0xff] %v4304_v27  ;;  %v1892_v19 = vadd.f32 %v1828_v18, %v1760_v32  ;;  %v2224_v4 = vmul.f32 %v3985_v39, %v4008_v59  ;;  %v2355_v30 = vmul.f32 %v4032_v22, %v4241_v48  ;;  %v3397_v40 = vunpack.c.l.bf16 %v3672_v63 }
  0x4e   : > { %v2356_v61 = vmul.f32 %v4032_v22, %v4253_v60  ;;  %v2023_v37 = vadd.f32 %v1959_v5, %v1891_v41  ;;  %v3398_v13 = vunpack.c.h.bf16 %v3672_v63  ;;  %v3401_v55 = vunpack.c.l.bf16 %v3673_v46 }
  0x4f   : > { %v2024_v29 = vadd.f32 %v1960_v0, %v1892_v19  ;;  %v3402_v32 = vunpack.c.h.bf16 %v3673_v46  ;;  %v643_v18 = vmul.f32 %v3397_v40, %v3932_v8  ;;  %v1433_v26 = vmul.f32 %v3946_v14, %v3997_v47 }
  0x50   : > { %v1434_v28 = vmul.f32 %v3946_v14, %v3999_v50  ;;  %v2155_v59 = vadd.f32 %v2091_v6, %v2023_v37  ;;  %v644_v27 = vmul.f32 %v3398_v13, %v3932_v8  ;;  %v645_v11 = vmul.f32 %v3401_v55, %v3932_v8 }
  0x51   : > { %v2156_v21 = vadd.f32 %v2092_v3, %v2024_v29  ;;  %v646_v5 = vmul.f32 %v3402_v32, %v3932_v8  ;;  %v707_v19 = vadd.f32 %v3962_v23, %v643_v18  ;;  %v1497_v63 = vadd.f32 %v1433_v26, %v4129_v44 }
  0x52   : > { %v1498_v0 = vadd.f32 %v1434_v28, %v4133_v56  ;;  %v2287_v41 = vadd.f32 %v2223_v45, %v2155_v59  ;;  %v708_v47 = vadd.f32 %v3962_v23, %v644_v27  ;;  %v709_v50 = vadd.f32 %v3962_v23, %v645_v11 }
  0x53   : > { %v2288_v46 = vadd.f32 %v2224_v4, %v2156_v21  ;;  %v710_v6 = vadd.f32 %v3962_v23, %v646_v5  ;;  %v4333_v3 = vmax.f32 %v707_v19, 0.0  ;;  %v1629_v40 = vadd.f32 %v4136_v57, %v1497_v63 }
  0x54   : > { %v1630_v37 = vadd.f32 %v4139_v62, %v1498_v0  ;;  %v4337_v29 = vadd.f32 %v2355_v30, %v2287_v41  ;;  %v4341_v56 = vmax.f32 %v708_v47, 0.0  ;;  %v4343_v59 = vmax.f32 %v709_v50, 0.0 }
  0x55   : > { %v4339_v44 = vadd.f32 %v2356_v61, %v2288_v46  ;;  %v4345_v21 = vadd.f32 %v1572_v2, %v1504_v54  ;;  %v4347_v28 = vmax.f32 %v710_v6, 0.0  ;;  %v839_v11 = vrot.slane %v4333_v3, 7 }
  0x56   : > { %v1068_v26 = vrot.slane %v4333_v3, 1  ;;  %v4353_v57 = vmul.f32 %v3951_v16, %v4196_v38  ;;  %v4357_v62 = vmul.f32 %v3977_v35, %v4241_v48  ;;  %v857_v54 = vrot.slane %v4341_v56, 7 }
  0x57   : > { %6806 = vst [vmem:[#allocation9_spill] sm:$0xff] %v4345_v21  ;;  %v3515_v27 = vpack.c.bf16 %v4339_v44, %v4337_v29  ;;  %v893_v2 = vrot.slane %v4347_v28, 7  ;;  %v1086_v45 = vrot.slane %v4341_v56, 1  ;;  %v1104_v4 = vrot.slane %v4343_v59, 1 }
  0x58   : > { %v1442_v30 = vmul.f32 %v3946_v14, %v4341_v56  ;;  %v948_v38 = vsel %vm908_vm0, %v839_v11, %v857_v54  ;;  %v1761_v48 = vadd.f32 %v4152_v24, %v1629_v40  ;;  %v1762_v61 = vadd.f32 %v4160_v25, %v1630_v37 }
  0x59   : > { %3700 = vst [vmem:[%s4235_s9 + $0x8] sm:$0xff] %v3515_v27   ;;  %v1829_v13 = vmul.f32 %v3971_v31, %v4003_v52  ;;  %v966_v55 = vsel %vm908_vm0, %v893_v2, %v839_v11  ;;  %v1159_v32 = vsel %vm1137_vm2, %v1086_v45, %v1104_v4  ;;  %v1177_v18 = vsel %vm1137_vm2, %v1068_v26, %v1086_v45 }
  0x5a   : > { %v1310_v5 = vmul.f32 %v3935_v9, %v948_v38  ;;  %v4383_v19 = vmul.f32 %v3977_v35, %v4253_v60  ;;  %v4387_v24 = vmul.f32 %v4337_v29, %v4337_v29  ;;  %v1001_v52 = vsel %vm832_vm1, 0.0, %v966_v55 }
  0x5b   : > { %v1441_v25 = vmul.f32 %v3946_v14, %v4333_v3  ;;  %v4395_v63 = vmul.f32 %v4339_v44, %v4339_v44  ;;  %v1309_v0 = vmul.f32 %v3935_v9, %v1001_v52  ;;  %v1573_v41 = vmul.f32 %v3949_v15, %v1177_v18 }
  0x5c   : > { %v1830_v60 = vmul.f32 %v3971_v31, %v4005_v53  ;;  %v1574_v46 = vmul.f32 %v3949_v15, %v1159_v32  ;;  %v4403_v47 = vmul.f32 %v3951_v16, %v948_v38  ;;  %v1893_v50 = vadd.f32 %v1829_v13, %v1761_v48 }
  0x5d   : > { %v2093_v6 = vmul.f32 %v3954_v17, %v1001_v52  ;;  %v1506_v40 = vadd.f32 %v1442_v30, %v1310_v5  ;;  %v4407_v37 = vmul.f32 %v3951_v16, %v1001_v52  ;;  %v2094_v27 = vmul.f32 %v3954_v17, %v948_v38 }
  0x5e   : > { %v1894_v11 = vadd.f32 %v1830_v60, %v1762_v61  ;;  %v1505_v45 = vadd.f32 %v1441_v25, %v1309_v0  ;;  %v2025_v55 = vadd.f32 %v4163_v36, %v1893_v50  ;;  %v2225_v53 = vmul.f32 %v3985_v39, %v4333_v3 }
  0x5f   : > { %v2226_v21 = vmul.f32 %v3985_v39, %v4341_v56  ;;  %v2357_v13 = vmul.f32 %v4032_v22, %v1177_v18  ;;  %v2358_v30 = vmul.f32 %v4032_v22, %v1159_v32  ;;  %v875_v5 = vrot.slane %v4343_v59, 7 }
  0x60   : > { %v2026_v48 = vadd.f32 %v4166_v42, %v1894_v11  ;;  %v2157_v61 = vadd.f32 %v2093_v6, %v2025_v55  ;;  %v1122_v38 = vrot.slane %v4347_v28, 1  ;;  %v1435_v36 = vmul.f32 %v3946_v14, %v4026_v20 }
  0x61   : > { %v1436_v52 = vmul.f32 %v3946_v14, %v4001_v51  ;;  %v912_v0 = vsel %vm908_vm0, %v875_v5, %v893_v2  ;;  %v930_v42 = vsel %vm908_vm0, %v857_v54, %v875_v5  ;;  %v1443_v60 = vmul.f32 %v3946_v14, %v4343_v59 }
  0x62   : > { %v2158_v25 = vadd.f32 %v2094_v27, %v2026_v48  ;;  %v2289_v50 = vadd.f32 %v2225_v53, %v2157_v61  ;;  %v4432_v6 = vsel %vm1137_vm2, %v1104_v4, %v1122_v38  ;;  %v1195_v20 = vsel %vm1137_vm2, %v1122_v38, %v1068_v26 }
  0x63   : > { %v1311_v51 = vmul.f32 %v3935_v9, %v930_v42  ;;  %v4439_v2 = vsel %vm1064_vm4, 0.0, %v1195_v20  ;;  %v1312_v54 = vmul.f32 %v3935_v9, %v912_v0  ;;  %v1444_v27 = vmul.f32 %v3946_v14, %v4347_v28  ;;  %v6808_v20 = vld [vmem:[#allocation8_spill] sm:$0xff] }
  0x64   : > { %v2290_v11 = vadd.f32 %v2226_v21, %v2158_v25  ;;  %v2421_v55 = vadd.f32 %v2357_v13, %v2289_v50  ;;  %v1499_v53 = vadd.f32 %v1435_v36, %v4257_v12  ;;  %v1500_v4 = vadd.f32 %v1436_v52, %v4277_v34 }
  0x65   : > { %v1507_v48 = vadd.f32 %v1443_v60, %v1311_v51  ;;  %v1508_v26 = vadd.f32 %v1444_v27, %v1312_v54  ;;  %v1575_v21 = vmul.f32 %v3949_v15, %v4432_v6  ;;  %v1576_v61 = vmul.f32 %v3949_v15, %v4439_v2  ;;  %v3675_v27 = vld [vmem:[%s3927_s20 + $0x38] sm:$0xff]  }
  0x66   : > { %v2422_v5 = vadd.f32 %v2358_v30, %v2290_v11  ;;  %v4451_v38 = vadd.f32 %v2421_v55, %v4218_v49  ;;  %v2875_v25 = vmul.f32 %v2421_v55, %v2421_v55  ;;  %v1631_v13 = vadd.f32 %v4287_v7, %v1499_v53  ;;  %v6809_v11 = vld [vmem:[#allocation3_spill] sm:$0xff] }
  0x67   : > { %v1632_v12 = vadd.f32 %v4291_v58, %v1500_v4  ;;  %v4456_v34 = vmul.f32 %v3977_v35, %v1177_v18  ;;  %v4461_v60 = vadd.f32 %v1573_v41, %v1505_v45  ;;  %v4463_v50 = vadd.f32 %v1574_v46, %v1506_v40  ;;  %v6807_v58 = vld [vmem:[#allocation6_spill] sm:$0xff]  ;;  %v3674_v45 = vld [vmem:[%s3927_s20 + $0x30] sm:$0xff]  }
  0x68   : > { %v3520_v30 = vpack.c.bf16 %v2422_v5, %v2421_v55  ;;  %v4459_v36 = vadd.f32 %v2422_v5, %v4220_v43  ;;  %v2876_v52 = vmul.f32 %v2422_v5, %v2422_v5  ;;  %v4466_v49 = vmul.f32 %v3977_v35, %v1159_v32 }
  0x69   : > { %v4469_v7 = vadd.f32 %v2875_v25, %v4274_v33  ;;  %v1763_v51 = vadd.f32 %v6808_v20, %v1631_v13  ;;  %v1764_v43 = vadd.f32 %v4353_v57, %v1632_v12  ;;  %v1831_v41 = vmul.f32 %v3971_v31, %v6809_v11  ;;  %v6812_v33 = vld [vmem:[#allocation2_spill] sm:$0xff] }
  0x6a   : > { %3701 = vst [vmem:[%s4235_s9 + $0x10] sm:$0xff] %v3520_v30   ;;  %v4473_v18 = vadd.f32 %v2876_v52, %v6807_v58  ;;  %v4480_v46 = vadd.f32 %v1575_v21, %v1507_v48  ;;  %v4482_v40 = vadd.f32 %v1576_v61, %v1508_v26  ;;  %v4485_v32 = vmul.f32 %v3951_v16, %v930_v42 }
  0x6b   : > { %v1832_v54 = vmul.f32 %v3971_v31, %v6812_v33  ;;  %v4491_v55 = vmul.f32 %v3951_v16, %v912_v0  ;;  %v1895_v53 = vadd.f32 %v1831_v41, %v1763_v51  ;;  %v2095_v57 = vmul.f32 %v3954_v17, %v930_v42  ;;  %v6813_v41 = vld [vmem:[#allocation4_spill] sm:$0xff] }
  0x6c   : > { %6810 = vst [vmem:[#allocation6_spill] sm:$0xff] %v4480_v46  ;;  %6811 = vst [vmem:[#allocation8_spill] sm:$0xff] %v4482_v40  ;;  %v2096_v4 = vmul.f32 %v3954_v17, %v912_v0  ;;  %v2227_v48 = vmul.f32 %v3985_v39, %v4343_v59  ;;  %v2228_v26 = vmul.f32 %v3985_v39, %v4347_v28  ;;  %v3405_v21 = vunpack.c.l.bf16 %v3674_v45 }
  0x6d   : > { %v1896_v5 = vadd.f32 %v1832_v54, %v1764_v43  ;;  %v2027_v61 = vadd.f32 %v4357_v62, %v1895_v53  ;;  %v3406_v25 = vunpack.c.h.bf16 %v3674_v45  ;;  %v3409_v13 = vunpack.c.l.bf16 %v3675_v27 }
  0x6e   : > { %v3410_v12 = vunpack.c.h.bf16 %v3675_v27  ;;  %v2359_v42 = vmul.f32 %v4032_v22, %v4432_v6  ;;  %v2360_v0 = vmul.f32 %v4032_v22, %v4439_v2  ;;  %v647_v52 = vmul.f32 %v3405_v21, %v3932_v8  ;;  %v6814_v21 = vld [vmem:[#allocation5_spill] sm:$0xff] }
  0x6f   : > { %v2028_v30 = vadd.f32 %v4383_v19, %v1896_v5  ;;  %v2159_v58 = vadd.f32 %v2095_v57, %v2027_v61  ;;  %v648_v20 = vmul.f32 %v3406_v25, %v3932_v8  ;;  %v649_v51 = vmul.f32 %v3409_v13, %v3932_v8 }
  0x70   : > { %v650_v62 = vmul.f32 %v3410_v12, %v3932_v8  ;;  %v711_v11 = vadd.f32 %v3962_v23, %v647_v52  ;;  %v1765_v19 = vadd.f32 %v4407_v37, %v6813_v41  ;;  %v1833_v45 = vmul.f32 %v3971_v31, %v4333_v3 }
  0x71   : > { %v2160_v43 = vadd.f32 %v2096_v4, %v2028_v30  ;;  %v2291_v33 = vadd.f32 %v2227_v48, %v2159_v58  ;;  %v712_v54 = vadd.f32 %v3962_v23, %v648_v20  ;;  %v713_v27 = vadd.f32 %v3962_v23, %v649_v51 }
  0x72   : > { %v714_v53 = vadd.f32 %v3962_v23, %v650_v62  ;;  %v4517_v5 = vmax.f32 %v711_v11, 0.0  ;;  %v1766_v4 = vadd.f32 %v4403_v47, %v6814_v21  ;;  %v1834_v61 = vmul.f32 %v3971_v31, %v4341_v56 }
  0x73   : > { %v2292_v57 = vadd.f32 %v2228_v26, %v2160_v43  ;;  %v2423_v37 = vadd.f32 %v2359_v42, %v2291_v33  ;;  %v4523_v25 = vmax.f32 %v712_v54, 0.0  ;;  %v4525_v3 = vmax.f32 %v713_v27, 0.0 }
  0x74   : > { %v4527_v48 = vmax.f32 %v714_v53, 0.0  ;;  %v840_v12 = vrot.slane %v4517_v5, 7  ;;  %v1069_v26 = vrot.slane %v4517_v5, 1  ;;  %v1897_v30 = vadd.f32 %v1833_v45, %v1765_v19 }
  0x75   : > { %v2424_v13 = vadd.f32 %v2360_v0, %v2292_v57  ;;  %v4532_v52 = vadd.f32 %v2423_v37, %v4337_v29  ;;  %v2877_v47 = vmul.f32 %v2423_v37, %v2423_v37  ;;  %v858_v56 = vrot.slane %v4523_v25, 7 }
  0x76   : > { %v894_v42 = vrot.slane %v4527_v48, 7  ;;  %v1087_v0 = vrot.slane %v4523_v25, 1  ;;  %v1105_v11 = vrot.slane %v4525_v3, 1  ;;  %v4558_v45 = vmul.f32 %v3977_v35, %v4432_v6 }
  0x77   : > { %v3525_v58 = vpack.c.bf16 %v2424_v13, %v2423_v37  ;;  %v4537_v20 = vadd.f32 %v2424_v13, %v4339_v44  ;;  %v2878_v51 = vmul.f32 %v2424_v13, %v2424_v13  ;;  %v4541_v62 = vadd.f32 %v2877_v47, %v4387_v24 }
  0x78   : > { %v949_v43 = vsel %vm908_vm0, %v840_v12, %v858_v56  ;;  %v967_v29 = vsel %vm908_vm0, %v894_v42, %v840_v12  ;;  %v1178_v19 = vsel %vm1137_vm2, %v1069_v26, %v1087_v0  ;;  %v1898_v24 = vadd.f32 %v1834_v61, %v1766_v4 }
  0x79   : > { %3702 = vst [vmem:[%s4235_s9 + $0x18] sm:$0xff] %v3525_v58   ;;  %v4550_v41 = vadd.f32 %v2878_v51, %v4395_v63  ;;  %v1005_v44 = vsel %vm832_vm1, 0.0, %v967_v29  ;;  %v1160_v33 = vsel %vm1137_vm2, %v1087_v0, %v1105_v11  ;;  %v1445_v63 = vmul.f32 %v3946_v14, %v4517_v5 }
  0x7a   : > { %v1313_v54 = vmul.f32 %v3935_v9, %v1005_v44  ;;  %v4567_v27 = vmul.f32 %v3977_v35, %v4439_v2  ;;  %v1314_v53 = vmul.f32 %v3935_v9, %v949_v43  ;;  %v1446_v57 = vmul.f32 %v3946_v14, %v4523_v25 }
  0x7b   : > { %v1577_v6 = vmul.f32 %v3949_v15, %v1178_v19  ;;  %v1578_v21 = vmul.f32 %v3949_v15, %v1160_v33  ;;  %v4575_v4 = vmul.f32 %v3951_v16, %v1005_v44  ;;  %v4578_v61 = vmul.f32 %v3951_v16, %v949_v43 }
  0x7c   : > { %v2029_v37 = vadd.f32 %v4456_v34, %v1897_v30  ;;  %v2030_v2 = vadd.f32 %v4466_v49, %v1898_v24  ;;  %v2097_v13 = vmul.f32 %v3954_v17, %v1005_v44  ;;  %v2098_v12 = vmul.f32 %v3954_v17, %v949_v43 }
  0x7d   : > { %v2229_v47 = vmul.f32 %v3985_v39, %v4517_v5  ;;  %v1509_v58 = vadd.f32 %v1445_v63, %v1313_v54  ;;  %v4587_v51 = vmul.f32 %v3977_v35, %v1178_v19  ;;  %v2230_v0 = vmul.f32 %v3985_v39, %v4523_v25 }
  0x7e   : > { %v2361_v29 = vmul.f32 %v4032_v22, %v1178_v19  ;;  %v2161_v40 = vadd.f32 %v2097_v13, %v2029_v37  ;;  %v2162_v34 = vadd.f32 %v2098_v12, %v2030_v2  ;;  %v2362_v49 = vmul.f32 %v4032_v22, %v1160_v33 }
  0x7f   : > { %v876_v30 = vrot.slane %v4525_v3, 7  ;;  %v1510_v44 = vadd.f32 %v1446_v57, %v1314_v53  ;;  %v1123_v43 = vrot.slane %v4527_v48, 1  ;;  %v1447_v24 = vmul.f32 %v3946_v14, %v4525_v3 }
  0x80   : > { %v1448_v54 = vmul.f32 %v3946_v14, %v4527_v48  ;;  %v2293_v63 = vadd.f32 %v2229_v47, %v2161_v40  ;;  %v2294_v46 = vadd.f32 %v2230_v0, %v2162_v34  ;;  %v6815_v47 = vld [vmem:[#allocation7_spill] sm:$0xff] }
  0x81   : > { %v913_v19 = vsel %vm908_vm0, %v876_v30, %v894_v42  ;;  %v931_v37 = vsel %vm908_vm0, %v858_v56, %v876_v30  ;;  %v4605_v2 = vsel %vm1137_vm2, %v1105_v11, %v1123_v43  ;;  %v1196_v53 = vsel %vm1137_vm2, %v1123_v43, %v1069_v26 }
  0x82   : > { %v1315_v57 = vmul.f32 %v3935_v9, %v931_v37  ;;  %v1316_v13 = vmul.f32 %v3935_v9, %v913_v19  ;;  %v2425_v12 = vadd.f32 %v2361_v29, %v2293_v63  ;;  %v2426_v40 = vadd.f32 %v2362_v49, %v2294_v46 }
  0x83   : > { %v4613_v42 = vsel %vm1064_vm4, 0.0, %v1196_v53  ;;  %v1767_v56 = vadd.f32 %v4485_v32, %v6815_v47  ;;  %v1579_v26 = vmul.f32 %v3949_v15, %v4605_v2  ;;  %v4627_v43 = vadd.f32 %v1577_v6, %v1509_v58  ;;  %v6816_v53 = vld [vmem:[#allocation9_spill] sm:$0xff] }
  0x84   : > { %v1511_v0 = vadd.f32 %v1447_v24, %v1315_v57  ;;  %v1512_v11 = vadd.f32 %v1448_v54, %v1316_v13  ;;  %v1580_v34 = vmul.f32 %v3949_v15, %v4613_v42  ;;  %v3530_v30 = vpack.c.bf16 %v2426_v40, %v2425_v12 }
  0x85   : > { %v4622_v29 = vadd.f32 %v4451_v38, %v2425_v12  ;;  %v4625_v46 = vadd.f32 %v4459_v36, %v2426_v40  ;;  %v2879_v49 = vmul.f32 %v2425_v12, %v2425_v12  ;;  %v4629_v32 = vadd.f32 %v1578_v21, %v1510_v44  ;;  %v3676_v21 = vld [vmem:[%s3927_s20 + $0x40] sm:$0xff]   ;;  %v3677_v12 = vld [vmem:[%s3927_s20 + $0x48] sm:$0xff]  }
  0x86   : > { %v4632_v24 = vmul.f32 %v3977_v35, %v1160_v33  ;;  %v2880_v54 = vmul.f32 %v2426_v40, %v2426_v40  ;;  %3703 = vst [vmem:[%s4235_s9 + $0x20] sm:$0xff] %v3530_v30   ;;  %v1768_v38 = vadd.f32 %v4491_v55, %v6816_v53  ;;  %v1835_v36 = vmul.f32 %v3971_v31, %v4343_v59 }
  0x87   : > { %v4636_v63 = vadd.f32 %v4469_v7, %v2879_v49  ;;  %v1836_v6 = vmul.f32 %v3971_v31, %v4347_v28  ;;  %v4648_v33 = vadd.f32 %v1579_v26, %v1511_v0  ;;  %v4650_v44 = vadd.f32 %v1580_v34, %v1512_v11 }
  0x88   : > { %v4646_v58 = vadd.f32 %v4473_v18, %v2880_v54  ;;  %v4653_v7 = vmul.f32 %v3951_v16, %v931_v37  ;;  %v1899_v57 = vadd.f32 %v1835_v36, %v1767_v56  ;;  %v2099_v55 = vmul.f32 %v3954_v17, %v931_v37 }
  0x89   : > { %v1900_v13 = vadd.f32 %v1836_v6, %v1768_v38  ;;  %v2100_v59 = vmul.f32 %v3954_v17, %v913_v19  ;;  %v4659_v28 = vmul.f32 %v3951_v16, %v913_v19  ;;  %v2231_v18 = vmul.f32 %v3985_v39, %v4525_v3 }
  0x8a   : > { %v2232_v40 = vmul.f32 %v3985_v39, %v4527_v48  ;;  %v3413_v47 = vunpack.c.l.bf16 %v3676_v21  ;;  %v2031_v0 = vadd.f32 %v4558_v45, %v1899_v57  ;;  %v3414_v11 = vunpack.c.h.bf16 %v3676_v21 }
  0x8b   : > { %v2032_v56 = vadd.f32 %v4567_v27, %v1900_v13  ;;  %v3417_v26 = vunpack.c.l.bf16 %v3677_v12  ;;  %v2363_v37 = vmul.f32 %v4032_v22, %v4605_v2  ;;  %v2364_v19 = vmul.f32 %v4032_v22, %v4613_v42 }
  0x8c   : > { %v3418_v34 = vunpack.c.h.bf16 %v3677_v12  ;;  %v651_v30 = vmul.f32 %v3413_v47, %v3932_v8  ;;  %v2163_v49 = vadd.f32 %v2099_v55, %v2031_v0  ;;  %v652_v53 = vmul.f32 %v3414_v11, %v3932_v8 }
  0x8d   : > { %v2164_v54 = vadd.f32 %v2100_v59, %v2032_v56  ;;  %v653_v38 = vmul.f32 %v3417_v26, %v3932_v8  ;;  %v1769_v36 = vadd.f32 %v4575_v4, %v4461_v60  ;;  %v1837_v6 = vmul.f32 %v3971_v31, %v4517_v5 }
  0x8e   : > { %v654_v45 = vmul.f32 %v3418_v34, %v3932_v8  ;;  %v715_v27 = vadd.f32 %v3962_v23, %v651_v30  ;;  %v2295_v21 = vadd.f32 %v2231_v18, %v2163_v49  ;;  %v716_v13 = vadd.f32 %v3962_v23, %v652_v53 }
  0x8f   : > { %v2296_v57 = vadd.f32 %v2232_v40, %v2164_v54  ;;  %v717_v55 = vadd.f32 %v3962_v23, %v653_v38  ;;  %v1770_v8 = vadd.f32 %v4578_v61, %v4463_v50  ;;  %v1838_v47 = vmul.f32 %v3971_v31, %v4523_v25 }
  0x90   : > { %v718_v59 = vadd.f32 %v3962_v23, %v654_v45  ;;  %v4683_v12 = vmax.f32 %v715_v27, 0.0  ;;  %v2427_v60 = vadd.f32 %v2363_v37, %v2295_v21  ;;  %v4689_v5 = vmax.f32 %v716_v13, 0.0 }
  0x91   : > { %v2428_v4 = vadd.f32 %v2364_v19, %v2296_v57  ;;  %v4691_v18 = vmax.f32 %v717_v55, 0.0  ;;  %v1901_v56 = vadd.f32 %v1837_v6, %v1769_v36  ;;  %v4708_v30 = vmul.f32 %v3977_v35, %v4605_v2 }
  0x92   : > { %v4693_v40 = vmax.f32 %v718_v59, 0.0  ;;  %v841_v0 = vrot.slane %v4683_v12, 7  ;;  %v1070_v23 = vrot.slane %v4683_v12, 1  ;;  %v4698_v50 = vadd.f32 %v4532_v52, %v2427_v60 }
  0x93   : > { %v3535_v11 = vpack.c.bf16 %v2428_v4, %v2427_v60  ;;  %v4701_v25 = vadd.f32 %v4537_v20, %v2428_v4  ;;  %v2881_v61 = vmul.f32 %v2427_v60, %v2427_v60  ;;  %v2882_v26 = vmul.f32 %v2428_v4, %v2428_v4 }
  0x94   : > { %v859_v37 = vrot.slane %v4689_v5, 7  ;;  %v895_v19 = vrot.slane %v4693_v40, 7  ;;  %v1088_v34 = vrot.slane %v4689_v5, 1  ;;  %v1106_v52 = vrot.slane %v4691_v18, 1 }
  0x95   : > { %3704 = vst [vmem:[%s4235_s9 + $0x28] sm:$0xff] %v3535_v11   ;;  %v4712_v49 = vadd.f32 %v4541_v62, %v2881_v61  ;;  %v1902_v20 = vadd.f32 %v1838_v47, %v1770_v8  ;;  %v4716_v54 = vadd.f32 %v4550_v41, %v2882_v26  ;;  %v1450_v41 = vmul.f32 %v3946_v14, %v4689_v5 }
  0x96   : > { %v950_v53 = vsel %vm908_vm0, %v841_v0, %v859_v37  ;;  %v968_v38 = vsel %vm908_vm0, %v895_v19, %v841_v0  ;;  %v1179_v2 = vsel %vm1137_vm2, %v1070_v23, %v1088_v34  ;;  %v1161_v62 = vsel %vm1137_vm2, %v1088_v34, %v1106_v52 }
  0x97   : > { %v1009_v45 = vsel %vm832_vm1, 0.0, %v968_v38  ;;  %v1318_v27 = vmul.f32 %v3935_v9, %v950_v53  ;;  %v4733_v36 = vmul.f32 %v3977_v35, %v4613_v42  ;;  %v1449_v6 = vmul.f32 %v3946_v14, %v4683_v12 }
  0x98   : > { %v1581_v21 = vmul.f32 %v3949_v15, %v1179_v2  ;;  %v2033_v57 = vadd.f32 %v4587_v51, %v1901_v56  ;;  %v1317_v13 = vmul.f32 %v3935_v9, %v1009_v45  ;;  %v1582_v55 = vmul.f32 %v3949_v15, %v1161_v62 }
  0x99   : > { %v4742_v59 = vmul.f32 %v3951_v16, %v1009_v45  ;;  %v2034_v8 = vadd.f32 %v4632_v24, %v1902_v20  ;;  %v4746_v47 = vmul.f32 %v3951_v16, %v950_v53  ;;  %v2101_v42 = vmul.f32 %v3954_v17, %v1009_v45 }
  0x9a   : > { %v2102_v60 = vmul.f32 %v3954_v17, %v950_v53  ;;  %v2233_v4 = vmul.f32 %v3985_v39, %v4683_v12  ;;  %v1514_v51 = vadd.f32 %v1450_v41, %v1318_v27  ;;  %v4753_v0 = vmul.f32 %v3977_v35, %v1179_v2 }
  0x9b   : > { %v2234_v56 = vmul.f32 %v3985_v39, %v4689_v5  ;;  %v2365_v11 = vmul.f32 %v4032_v22, %v1179_v2  ;;  %v2165_v24 = vadd.f32 %v2101_v42, %v2033_v57  ;;  %v2366_v26 = vmul.f32 %v4032_v22, %v1161_v62 }
  0x9c   : > { %v2166_v61 = vadd.f32 %v2102_v60, %v2034_v8  ;;  %v877_v34 = vrot.slane %v4691_v18, 7  ;;  %v1513_v20 = vadd.f32 %v1449_v6, %v1317_v13  ;;  %v1124_v53 = vrot.slane %v4693_v40, 1 }
  0x9d   : > { %v1451_v38 = vmul.f32 %v3946_v14, %v4691_v18  ;;  %v1452_v45 = vmul.f32 %v3946_v14, %v4693_v40  ;;  %v2297_v27 = vadd.f32 %v2233_v4, %v2165_v24 }
  0x9e   : > { %v2298_v41 = vadd.f32 %v2234_v56, %v2166_v61  ;;  %v914_v2 = vsel %vm908_vm0, %v877_v34, %v895_v19  ;;  %v932_v57 = vsel %vm908_vm0, %v859_v37, %v877_v34  ;;  %v4771_v8 = vsel %vm1137_vm2, %v1106_v52, %v1124_v53  ;;  %v6817_v56 = vld [vmem:[#allocation6_spill] sm:$0xff] }
  0x9f   : > { %v1197_v6 = vsel %vm1137_vm2, %v1124_v53, %v1070_v23  ;;  %v1319_v13 = vmul.f32 %v3935_v9, %v932_v57  ;;  %v1320_v42 = vmul.f32 %v3935_v9, %v914_v2  ;;  %v2429_v60 = vadd.f32 %v2365_v11, %v2297_v27 }
  0xa0   : > { %v2430_v4 = vadd.f32 %v2366_v26, %v2298_v41  ;;  %v4779_v19 = vsel %vm1064_vm4, 0.0, %v1197_v6  ;;  %v1771_v37 = vadd.f32 %v4653_v7, %v6817_v56  ;;  %v1583_v23 = vmul.f32 %v3949_v15, %v4771_v8  ;;  %v6818_v6 = vld [vmem:[#allocation8_spill] sm:$0xff] }
  0xa1   : > { %v1515_v24 = vadd.f32 %v1451_v38, %v1319_v13  ;;  %v1516_v52 = vadd.f32 %v1452_v45, %v1320_v42  ;;  %v1584_v61 = vmul.f32 %v3949_v15, %v4779_v19  ;;  %v4788_v11 = vadd.f32 %v4622_v29, %v2429_v60 }
  0xa2   : > { %v3540_v34 = vpack.c.bf16 %v2430_v4, %v2429_v60  ;;  %v4791_v26 = vadd.f32 %v4625_v46, %v2430_v4  ;;  %v2883_v53 = vmul.f32 %v2429_v60, %v2429_v60  ;;  %v4793_v27 = vadd.f32 %v1581_v21, %v1513_v20  ;;  %v3679_v60 = vld [vmem:[%s3927_s20 + $0x58] sm:$0xff]  }
  0xa3   : > { %v4795_v7 = vadd.f32 %v1582_v55, %v1514_v51  ;;  %v4798_v38 = vmul.f32 %v3977_v35, %v1161_v62  ;;  %v2884_v45 = vmul.f32 %v2430_v4, %v2430_v4  ;;  %v1772_v29 = vadd.f32 %v4659_v28, %v6818_v6  ;;  %v3678_v55 = vld [vmem:[%s3927_s20 + $0x50] sm:$0xff]  }
  0xa4   : > { %3705 = vst [vmem:[%s4235_s9 + $0x30] sm:$0xff] %v3540_v34   ;;  %v4802_v41 = vadd.f32 %v4636_v63, %v2883_v53  ;;  %v1839_v46 = vmul.f32 %v3971_v31, %v4525_v3  ;;  %v1840_v21 = vmul.f32 %v3971_v31, %v4527_v48  ;;  %v4814_v62 = vadd.f32 %v1583_v23, %v1515_v24  ;;  %v4840_v34 = vld [vmem:[%s6786_s4] ss:$0 sm:$0xff] }
  0xa5   : > { %v4812_v51 = vadd.f32 %v4646_v58, %v2884_v45  ;;  %v4816_v20 = vadd.f32 %v1584_v61, %v1516_v52  ;;  %v4819_v63 = vmul.f32 %v3951_v16, %v932_v57  ;;  %v2103_v28 = vmul.f32 %v3954_v17, %v932_v57 }
  0xa6   : > { %6819 = vst [vmem:[#allocation3_spill] sm:$0xff] %v4814_v62  ;;  %v1903_v13 = vadd.f32 %v1839_v46, %v1771_v37  ;;  %v1904_v42 = vadd.f32 %v1840_v21, %v1772_v29  ;;  %v2104_v3 = vmul.f32 %v3954_v17, %v914_v2  ;;  %v4825_v48 = vmul.f32 %v3951_v16, %v914_v2  ;;  %v4849_v46 = vld [vmem:[%s6786_s4 + $0x1] ss:$0 sm:$0xff] }
  0xa7   : > { %6820 = vst [vmem:[#allocation2_spill] sm:$0xff] %v4816_v20  ;;  %v2235_v58 = vmul.f32 %v3985_v39, %v4691_v18  ;;  %v2236_v4 = vmul.f32 %v3985_v39, %v4693_v40  ;;  %v3421_v56 = vunpack.c.l.bf16 %v3678_v55  ;;  %v3422_v52 = vunpack.c.h.bf16 %v3678_v55 }
  0xa8   : > { %v2035_v24 = vadd.f32 %v4708_v30, %v1903_v13  ;;  %v2036_v37 = vadd.f32 %v4733_v36, %v1904_v42  ;;  %v3425_v23 = vunpack.c.l.bf16 %v3679_v60  ;;  %v2367_v57 = vmul.f32 %v4032_v22, %v4771_v8 }
  0xa9   : > { %v2368_v2 = vmul.f32 %v4032_v22, %v4779_v19  ;;  %v3426_v61 = vunpack.c.h.bf16 %v3679_v60  ;;  %v655_v53 = vmul.f32 %v4840_v34, %v3421_v56  ;;  %v656_v36 = vmul.f32 %v4840_v34, %v3422_v52 }
  0xaa   : > { %v2167_v45 = vadd.f32 %v2103_v28, %v2035_v24  ;;  %v2168_v30 = vadd.f32 %v2104_v3, %v2036_v37  ;;  %v657_v6 = vmul.f32 %v4840_v34, %v3425_v23  ;;  %v1773_v55 = vadd.f32 %v4742_v59, %v4627_v43 }
  0xab   : > { %v658_v29 = vmul.f32 %v4840_v34, %v3426_v61  ;;  %v719_v21 = vadd.f32 %v4849_v46, %v655_v53  ;;  %v1841_v13 = vmul.f32 %v3971_v31, %v4683_v12  ;;  %v720_v3 = vadd.f32 %v4849_v46, %v656_v36 }
  0xac   : > { %v2299_v42 = vadd.f32 %v2235_v58, %v2167_v45  ;;  %v2300_v28 = vadd.f32 %v2236_v4, %v2168_v30  ;;  %v721_v60 = vadd.f32 %v4849_v46, %v657_v6  ;;  %v1774_v37 = vadd.f32 %v4746_v47, %v4629_v32 }
  0xad   : > { %v722_v56 = vadd.f32 %v4849_v46, %v658_v29  ;;  %v4859_v24 = vmax.f32 %v719_v21, 0.0  ;;  %v1842_v52 = vmul.f32 %v3971_v31, %v4689_v5  ;;  %v4865_v12 = vmax.f32 %v720_v3, 0.0 }
  0xae   : > { %v2431_v43 = vadd.f32 %v2367_v57, %v2299_v42  ;;  %v2432_v59 = vadd.f32 %v2368_v2, %v2300_v28  ;;  %v4867_v58 = vmax.f32 %v721_v60, 0.0  ;;  %v1905_v53 = vadd.f32 %v1841_v13, %v1773_v55 }
  0xaf   : > { %v4869_v4 = vmax.f32 %v722_v56, 0.0  ;;  %v842_v23 = vrot.slane %v4859_v24, 7  ;;  %v1071_v61 = vrot.slane %v4859_v24, 1  ;;  %v860_v2 = vrot.slane %v4865_v12, 7 }
  0xb0   : > { %v3545_v45 = vpack.c.bf16 %v2432_v59, %v2431_v43  ;;  %v4874_v32 = vadd.f32 %v4698_v50, %v2431_v43  ;;  %v4877_v5 = vadd.f32 %v4701_v25, %v2432_v59  ;;  %v2885_v47 = vmul.f32 %v2431_v43, %v2431_v43 }
  0xb1   : > { %v2886_v57 = vmul.f32 %v2432_v59, %v2432_v59  ;;  %v896_v30 = vrot.slane %v4869_v4, 7  ;;  %v1089_v36 = vrot.slane %v4865_v12, 1  ;;  %v4884_v6 = vmul.f32 %v3977_v35, %v4771_v8 }
  0xb2   : > { %3706 = vst [vmem:[%s4235_s9 + $0x38] sm:$0xff] %v3545_v45   ;;  %v4888_v29 = vadd.f32 %v4712_v49, %v2885_v47  ;;  %v1107_v50 = vrot.slane %v4867_v58, 1  ;;  %v1906_v25 = vadd.f32 %v1842_v52, %v1774_v37  ;;  %v951_v55 = vsel %vm908_vm0, %v842_v23, %v860_v2 }
  0xb3   : > { %v4892_v21 = vadd.f32 %v4716_v54, %v2886_v57  ;;  %v969_v13 = vsel %vm908_vm0, %v896_v30, %v842_v23  ;;  %v1180_v8 = vsel %vm1137_vm2, %v1071_v61, %v1089_v36  ;;  %v1322_v28 = vmul.f32 %v3935_v9, %v951_v55 }
  0xb4   : > { %v1013_v42 = vsel %vm832_vm1, 0.0, %v969_v13  ;;  %v1162_v49 = vsel %vm1137_vm2, %v1089_v36, %v1107_v50  ;;  %v1454_v54 = vmul.f32 %v3946_v14, %v4865_v12  ;;  %v4909_v3 = vmul.f32 %v3977_v35, %v4779_v19 }
  0xb5   : > { %6821 = vst [vmem:[#allocation4_spill] sm:$0xff] %v4892_v21  ;;  %v1453_v60 = vmul.f32 %v3946_v14, %v4859_v24  ;;  %v1585_v56 = vmul.f32 %v3949_v15, %v1180_v8  ;;  %v2037_v37 = vadd.f32 %v4753_v0, %v1905_v53  ;;  %v1321_v52 = vmul.f32 %v3935_v9, %v1013_v42 }
  0xb6   : > { %v1586_v43 = vmul.f32 %v3949_v15, %v1162_v49  ;;  %v4918_v59 = vmul.f32 %v3951_v16, %v1013_v42  ;;  %v2038_v23 = vadd.f32 %v4798_v38, %v1906_v25  ;;  %v4922_v45 = vmul.f32 %v3951_v16, %v951_v55 }
  0xb7   : > { %v2105_v19 = vmul.f32 %v3954_v17, %v1013_v42  ;;  %v2106_v47 = vmul.f32 %v3954_v17, %v951_v55  ;;  %v2237_v57 = vmul.f32 %v3985_v39, %v4859_v24  ;;  %v1518_v0 = vadd.f32 %v1454_v54, %v1322_v28 }
  0xb8   : > { %v4929_v53 = vmul.f32 %v3977_v35, %v1180_v8  ;;  %v2238_v36 = vmul.f32 %v3985_v39, %v4865_v12  ;;  %v2369_v13 = vmul.f32 %v4032_v22, %v1180_v8  ;;  %v2370_v20 = vmul.f32 %v4032_v22, %v1162_v49 }
  0xb9   : > { %v2169_v38 = vadd.f32 %v2105_v19, %v2037_v37  ;;  %v2170_v25 = vadd.f32 %v2106_v47, %v2038_v23  ;;  %v878_v42 = vrot.slane %v4867_v58, 7  ;;  %v1517_v62 = vadd.f32 %v1453_v60, %v1321_v52 }
  0xba   : > { %6822 = vst [vmem:[#allocation5_spill] sm:$0xff] %v4929_v53  ;;  %v1125_v55 = vrot.slane %v4869_v4, 1  ;;  %v1455_v28 = vmul.f32 %v3946_v14, %v4867_v58  ;;  %v1456_v54 = vmul.f32 %v3946_v14, %v4869_v4 }
  0xbb   : > { %v2301_v53 = vadd.f32 %v2237_v57, %v2169_v38  ;;  %v2302_v21 = vadd.f32 %v2238_v36, %v2170_v25  ;;  %v915_v8 = vsel %vm908_vm0, %v878_v42, %v896_v30  ;;  %v933_v37 = vsel %vm908_vm0, %v860_v2, %v878_v42 }
  0xbc   : > { %v4947_v23 = vsel %vm1137_vm2, %v1107_v50, %v1125_v55  ;;  %v1198_v60 = vsel %vm1137_vm2, %v1125_v55, %v1071_v61  ;;  %v1323_v52 = vmul.f32 %v3935_v9, %v933_v37  ;;  %v1324_v19 = vmul.f32 %v3935_v9, %v915_v8 }
  0xbd   : > { %v2433_v47 = vadd.f32 %v2369_v13, %v2301_v53  ;;  %v2434_v57 = vadd.f32 %v2370_v20, %v2302_v21  ;;  %v4955_v30 = vsel %vm1064_vm4, 0.0, %v1198_v60  ;;  %v1775_v2 = vadd.f32 %v4819_v63, %v4648_v33 }
  0xbe   : > { %v1519_v36 = vadd.f32 %v1455_v28, %v1323_v52  ;;  %v1520_v50 = vadd.f32 %v1456_v54, %v1324_v19  ;;  %v1587_v61 = vmul.f32 %v3949_v15, %v4947_v23  ;;  %v1588_v38 = vmul.f32 %v3949_v15, %v4955_v30 }
  0xbf   : > { %v3550_v25 = vpack.c.bf16 %v2434_v57, %v2433_v47  ;;  %v4964_v53 = vadd.f32 %v4788_v11, %v2433_v47  ;;  %v4967_v20 = vadd.f32 %v4791_v26, %v2434_v57  ;;  %v2887_v21 = vmul.f32 %v2433_v47, %v2433_v47 }
  0xc0   : > { %v4969_v13 = vadd.f32 %v1585_v56, %v1517_v62  ;;  %v4971_v33 = vadd.f32 %v1586_v43, %v1518_v0  ;;  %v4974_v63 = vmul.f32 %v3977_v35, %v1162_v49  ;;  %v2888_v42 = vmul.f32 %v2434_v57, %v2434_v57  ;;  %v3680_v56 = vld [vmem:[%s3927_s20 + $0x60] sm:$0xff]  }
  0xc1   : > { %3707 = vst [vmem:[%s4235_s9 + $0x40] sm:$0xff] %v3550_v25   ;;  %v4978_v55 = vadd.f32 %v4802_v41, %v2887_v21  ;;  %v1776_v11 = vadd.f32 %v4825_v48, %v4650_v44  ;;  %v1843_v26 = vmul.f32 %v3971_v31, %v4691_v18  ;;  %v1844_v62 = vmul.f32 %v3971_v31, %v4693_v40  ;;  %v3681_v48 = vld [vmem:[%s3927_s20 + $0x68] sm:$0xff]  }
  0xc2   : > { %v4988_v43 = vadd.f32 %v4812_v51, %v2888_v42  ;;  %v4990_v49 = vadd.f32 %v1587_v61, %v1519_v36  ;;  %v4992_v0 = vadd.f32 %v1588_v38, %v1520_v50  ;;  %v4995_v41 = vmul.f32 %v3951_v16, %v933_v37 }
  0xc3   : > { %v1907_v28 = vadd.f32 %v1843_v26, %v1775_v2  ;;  %v1908_v54 = vadd.f32 %v1844_v62, %v1776_v11  ;;  %v2107_v44 = vmul.f32 %v3954_v17, %v933_v37  ;;  %v2108_v18 = vmul.f32 %v3954_v17, %v915_v8 }
  0xc4   : > { %6823 = vst [vmem:[#allocation7_spill] sm:$0xff] %v4990_v49  ;;  %6824 = vst [vmem:[#allocation9_spill] sm:$0xff] %v4992_v0  ;;  %v5001_v40 = vmul.f32 %v3951_v16, %v915_v8  ;;  %v2239_v51 = vmul.f32 %v3985_v39, %v4867_v58  ;;  %v2240_v60 = vmul.f32 %v3985_v39, %v4869_v4  ;;  %v3429_v52 = vunpack.c.l.bf16 %v3680_v56 }
  0xc5   : > { %v2039_v19 = vadd.f32 %v4884_v6, %v1907_v28  ;;  %v2040_v47 = vadd.f32 %v4909_v3, %v1908_v54  ;;  %v3430_v57 = vunpack.c.h.bf16 %v3680_v56  ;;  %v3433_v2 = vunpack.c.l.bf16 %v3681_v48 }
  0xc6   : > { %v2371_v37 = vmul.f32 %v4032_v22, %v4947_v23  ;;  %v2372_v8 = vmul.f32 %v4032_v22, %v4955_v30  ;;  %v3434_v36 = vunpack.c.h.bf16 %v3681_v48  ;;  %v659_v50 = vmul.f32 %v4840_v34, %v3429_v52 }
  0xc7   : > { %v2171_v61 = vadd.f32 %v2107_v44, %v2039_v19  ;;  %v2172_v38 = vadd.f32 %v2108_v18, %v2040_v47  ;;  %v660_v25 = vmul.f32 %v4840_v34, %v3430_v57  ;;  %v661_v21 = vmul.f32 %v4840_v34, %v3433_v2 }
  0xc8   : > { %v662_v6 = vmul.f32 %v4840_v34, %v3434_v36  ;;  %v723_v3 = vadd.f32 %v4849_v46, %v659_v50  ;;  %v1777_v42 = vadd.f32 %v4918_v59, %v4793_v27  ;;  %v1845_v11 = vmul.f32 %v3971_v31, %v4859_v24 }
  0xc9   : > { %v2303_v26 = vadd.f32 %v2239_v51, %v2171_v61  ;;  %v2304_v62 = vadd.f32 %v2240_v60, %v2172_v38  ;;  %v724_v56 = vadd.f32 %v4849_v46, %v660_v25  ;;  %v725_v28 = vadd.f32 %v4849_v46, %v661_v21  ;;  %v6825_v38 = vld [vmem:[#allocation4_spill] sm:$0xff] }
  0xca   : > { %v726_v54 = vadd.f32 %v4849_v46, %v662_v6  ;;  %v5025_v44 = vmax.f32 %v723_v3, 0.0  ;;  %v1778_v18 = vadd.f32 %v4922_v45, %v4795_v7  ;;  %v1846_v48 = vmul.f32 %v3971_v31, %v4865_v12 }
  0xcb   : > { %v2435_v27 = vadd.f32 %v2371_v37, %v2303_v26  ;;  %v2436_v59 = vadd.f32 %v2372_v8, %v2304_v62  ;;  %v5031_v24 = vmax.f32 %v724_v56, 0.0  ;;  %v5033_v51 = vmax.f32 %v725_v28, 0.0  ;;  %v6826_v28 = vld [vmem:[#allocation5_spill] sm:$0xff] }
  0xcc   : > { %v5035_v60 = vmax.f32 %v726_v54, 0.0  ;;  %v843_v52 = vrot.slane %v5025_v44, 7  ;;  %v1072_v19 = vrot.slane %v5025_v44, 1  ;;  %v1909_v47 = vadd.f32 %v1845_v11, %v1777_v42 }
  0xcd   : > { %v3555_v57 = vpack.c.bf16 %v2436_v59, %v2435_v27  ;;  %v5040_v7 = vadd.f32 %v4874_v32, %v2435_v27  ;;  %v5043_v12 = vadd.f32 %v4877_v5, %v2436_v59  ;;  %v2889_v45 = vmul.f32 %v2435_v27, %v2435_v27 }
  0xce   : > { %v2890_v2 = vmul.f32 %v2436_v59, %v2436_v59  ;;  %v861_v37 = vrot.slane %v5031_v24, 7  ;;  %v897_v8 = vrot.slane %v5035_v60, 7  ;;  %v1090_v36 = vrot.slane %v5031_v24, 1 }
  0xcf   : > { %v5050_v50 = vmul.f32 %v3977_v35, %v4947_v23  ;;  %3708 = vst [vmem:[%s4235_s9 + $0x48] sm:$0xff] %v3555_v57   ;;  %v5054_v61 = vadd.f32 %v4888_v29, %v2889_v45  ;;  %v1108_v32 = vrot.slane %v5033_v51, 1  ;;  %v1910_v5 = vadd.f32 %v1846_v48, %v1778_v18 }
  0xd0   : > { %v5058_v25 = vadd.f32 %v6825_v38, %v2890_v2  ;;  %v952_v21 = vsel %vm908_vm0, %v843_v52, %v861_v37  ;;  %v970_v6 = vsel %vm908_vm0, %v897_v8, %v843_v52  ;;  %v1181_v23 = vsel %vm1137_vm2, %v1072_v19, %v1090_v36 }
  0xd1   : > { %v1017_v3 = vsel %vm832_vm1, 0.0, %v970_v6  ;;  %v1163_v29 = vsel %vm1137_vm2, %v1090_v36, %v1108_v32  ;;  %v1326_v42 = vmul.f32 %v3935_v9, %v952_v21  ;;  %v1458_v11 = vmul.f32 %v3946_v14, %v5031_v24 }
  0xd2   : > { %v5075_v26 = vmul.f32 %v3977_v35, %v4955_v30  ;;  %v1457_v62 = vmul.f32 %v3946_v14, %v5025_v44  ;;  %v1589_v56 = vmul.f32 %v3949_v15, %v1181_v23  ;;  %v2041_v54 = vadd.f32 %v6826_v28, %v1909_v47 }
  0xd3   : > { %v1325_v18 = vmul.f32 %v3935_v9, %v1017_v3  ;;  %v1590_v48 = vmul.f32 %v3949_v15, %v1163_v29  ;;  %v5084_v27 = vmul.f32 %v3951_v16, %v1017_v3  ;;  %v2042_v59 = vadd.f32 %v4974_v63, %v1910_v5 }
  0xd4   : > { %v5088_v52 = vmul.f32 %v3951_v16, %v952_v21  ;;  %v2109_v30 = vmul.f32 %v3954_v17, %v1017_v3  ;;  %v2110_v57 = vmul.f32 %v3954_v17, %v952_v21  ;;  %v2241_v45 = vmul.f32 %v3985_v39, %v5025_v44 }
  0xd5   : > { %v1522_v47 = vadd.f32 %v1458_v11, %v1326_v42  ;;  %v5095_v2 = vmul.f32 %v3977_v35, %v1181_v23  ;;  %v2242_v36 = vmul.f32 %v3985_v39, %v5031_v24  ;;  %v2373_v38 = vmul.f32 %v4032_v22, %v1181_v23 }
  0xd6   : > { %v2173_v63 = vadd.f32 %v2109_v30, %v2041_v54  ;;  %v2174_v5 = vadd.f32 %v2110_v57, %v2042_v59  ;;  %v2374_v6 = vmul.f32 %v4032_v22, %v1163_v29  ;;  %v879_v3 = vrot.slane %v5033_v51, 7 }
  0xd7   : > { %v1521_v28 = vadd.f32 %v1457_v62, %v1325_v18  ;;  %v1126_v21 = vrot.slane %v5035_v60, 1  ;;  %v1459_v42 = vmul.f32 %v3946_v14, %v5033_v51  ;;  %v1460_v11 = vmul.f32 %v3946_v14, %v5035_v60 }
  0xd8   : > { %v2305_v0 = vadd.f32 %v2241_v45, %v2173_v63  ;;  %v2306_v49 = vadd.f32 %v2242_v36, %v2174_v5  ;;  %v916_v23 = vsel %vm908_vm0, %v879_v3, %v897_v8  ;;  %v934_v54 = vsel %vm908_vm0, %v861_v37, %v879_v3  ;;  %v6827_v36 = vld [vmem:[#allocation3_spill] sm:$0xff] }
  0xd9   : > { %v5113_v59 = vsel %vm1137_vm2, %v1108_v32, %v1126_v21  ;;  %v1199_v62 = vsel %vm1137_vm2, %v1126_v21, %v1072_v19  ;;  %v1327_v18 = vmul.f32 %v3935_v9, %v934_v54  ;;  %v1328_v30 = vmul.f32 %v3935_v9, %v916_v23 }
  0xda   : > { %v2437_v57 = vadd.f32 %v2373_v38, %v2305_v0  ;;  %v2438_v45 = vadd.f32 %v2374_v6, %v2306_v49  ;;  %v5121_v8 = vsel %vm1064_vm4, 0.0, %v1199_v62  ;;  %v1779_v37 = vadd.f32 %v4995_v41, %v6827_v36  ;;  %v6828_v62 = vld [vmem:[#allocation2_spill] sm:$0xff] }
  0xdb   : > { %v1523_v63 = vadd.f32 %v1459_v42, %v1327_v18  ;;  %v1524_v32 = vadd.f32 %v1460_v11, %v1328_v30  ;;  %v1591_v19 = vmul.f32 %v3949_v15, %v5113_v59  ;;  %v1592_v5 = vmul.f32 %v3949_v15, %v5121_v8 }
  0xdc   : > { %v3560_v3 = vpack.c.bf16 %v2438_v45, %v2437_v57  ;;  %v5130_v0 = vadd.f32 %v4964_v53, %v2437_v57  ;;  %v5133_v49 = vadd.f32 %v4967_v20, %v2438_v45  ;;  %v2891_v38 = vmul.f32 %v2437_v57, %v2437_v57  ;;  %v3683_v57 = vld [vmem:[%s3927_s20 + $0x78] sm:$0xff]  }
  0xdd   : > { %v5135_v6 = vadd.f32 %v1589_v56, %v1521_v28  ;;  %v5137_v41 = vadd.f32 %v1590_v48, %v1522_v47  ;;  %v5140_v21 = vmul.f32 %v3977_v35, %v1163_v29  ;;  %v2892_v42 = vmul.f32 %v2438_v45, %v2438_v45  ;;  %v3682_v48 = vld [vmem:[%s3927_s20 + $0x70] sm:$0xff]  }
  0xde   : > { %3709 = vst [vmem:[%s4235_s9 + $0x50] sm:$0xff] %v3560_v3   ;;  %v5144_v11 = vadd.f32 %v4978_v55, %v2891_v38  ;;  %v1780_v53 = vadd.f32 %v5001_v40, %v6828_v62  ;;  %v1847_v20 = vmul.f32 %v3971_v31, %v4867_v58  ;;  %v1848_v56 = vmul.f32 %v3971_v31, %v4869_v4 }
  0xdf   : > { %v5154_v47 = vadd.f32 %v4988_v43, %v2892_v42  ;;  %v5156_v29 = vadd.f32 %v1591_v19, %v1523_v63  ;;  %v5158_v28 = vadd.f32 %v1592_v5, %v1524_v32  ;;  %v5161_v55 = vmul.f32 %v3951_v16, %v934_v54 }
  0xe0   : > { %v1911_v18 = vadd.f32 %v1847_v20, %v1779_v37  ;;  %v1912_v30 = vadd.f32 %v1848_v56, %v1780_v53  ;;  %v2111_v40 = vmul.f32 %v3954_v17, %v934_v54  ;;  %v2112_v58 = vmul.f32 %v3954_v17, %v916_v23 }
  0xe1   : > { %6829 = vst [vmem:[#allocation6_spill] sm:$0xff] %v5156_v29  ;;  %6830 = vst [vmem:[#allocation8_spill] sm:$0xff] %v5158_v28  ;;  %v5167_v4 = vmul.f32 %v3951_v16, %v916_v23  ;;  %v2243_v43 = vmul.f32 %v3985_v39, %v5033_v51  ;;  %v2244_v45 = vmul.f32 %v3985_v39, %v5035_v60  ;;  %v3437_v36 = vunpack.c.l.bf16 %v3682_v48 }
  0xe2   : > { %v2043_v63 = vadd.f32 %v5050_v50, %v1911_v18  ;;  %v2044_v37 = vadd.f32 %v5075_v26, %v1912_v30  ;;  %v3438_v32 = vunpack.c.h.bf16 %v3682_v48  ;;  %v3441_v19 = vunpack.c.l.bf16 %v3683_v57 }
  0xe3   : > { %v2375_v54 = vmul.f32 %v4032_v22, %v5113_v59  ;;  %v2376_v23 = vmul.f32 %v4032_v22, %v5121_v8  ;;  %v3442_v5 = vunpack.c.h.bf16 %v3683_v57  ;;  %v663_v3 = vmul.f32 %v4840_v34, %v3437_v36 }
  0xe4   : > { %v2175_v38 = vadd.f32 %v2111_v40, %v2043_v63  ;;  %v2176_v42 = vadd.f32 %v2112_v58, %v2044_v37  ;;  %v664_v62 = vmul.f32 %v4840_v34, %v3438_v32  ;;  %v665_v53 = vmul.f32 %v4840_v34, %v3441_v19 }
  0xe5   : > { %v666_v50 = vmul.f32 %v4840_v34, %v3442_v5  ;;  %v727_v26 = vadd.f32 %v4849_v46, %v663_v3  ;;  %v1781_v20 = vadd.f32 %v5084_v27, %v4969_v13  ;;  %v1849_v56 = vmul.f32 %v3971_v31, %v5025_v44 }
  0xe6   : > { %v2307_v48 = vadd.f32 %v2243_v43, %v2175_v38  ;;  %v2308_v18 = vadd.f32 %v2244_v45, %v2176_v42  ;;  %v728_v30 = vadd.f32 %v4849_v46, %v664_v62  ;;  %v729_v40 = vadd.f32 %v4849_v46, %v665_v53 }
  0xe7   : > { %v730_v58 = vadd.f32 %v4849_v46, %v666_v50  ;;  %v5191_v57 = vmax.f32 %v727_v26, 0.0  ;;  %v1782_v36 = vadd.f32 %v5088_v52, %v4971_v33  ;;  %v1850_v63 = vmul.f32 %v3971_v31, %v5031_v24 }
  0xe8   : > { %v2439_v13 = vadd.f32 %v2375_v54, %v2307_v48  ;;  %v2440_v27 = vadd.f32 %v2376_v23, %v2308_v18  ;;  %v5197_v44 = vmax.f32 %v728_v30, 0.0  ;;  %v5199_v43 = vmax.f32 %v729_v40, 0.0 }
  0xe9   : > { %v5201_v45 = vmax.f32 %v730_v58, 0.0  ;;  %v844_v37 = vrot.slane %v5191_v57, 7  ;;  %v1073_v32 = vrot.slane %v5191_v57, 1  ;;  %v1913_v19 = vadd.f32 %v1849_v56, %v1781_v20 }
  0xea   : > { %v3565_v5 = vpack.c.bf16 %v2440_v27, %v2439_v13  ;;  %v5206_v33 = vadd.f32 %v5040_v7, %v2439_v13  ;;  %v5209_v24 = vadd.f32 %v5043_v12, %v2440_v27  ;;  %v2893_v52 = vmul.f32 %v2439_v13, %v2439_v13 }
  0xeb   : > { %v2894_v54 = vmul.f32 %v2440_v27, %v2440_v27  ;;  %v862_v23 = vrot.slane %v5197_v44, 7  ;;  %v898_v3 = vrot.slane %v5201_v45, 7  ;;  %v1091_v38 = vrot.slane %v5197_v44, 1 }
  0xec   : > { %v5216_v42 = vmul.f32 %v3977_v35, %v5113_v59  ;;  %3710 = vst [vmem:[%s4235_s9 + $0x58] sm:$0xff] %v3565_v5   ;;  %v5220_v62 = vadd.f32 %v5054_v61, %v2893_v52  ;;  %v1109_v7 = vrot.slane %v5199_v43, 1  ;;  %v1914_v12 = vadd.f32 %v1850_v63, %v1782_v36 }
  0xed   : > { %v5224_v53 = vadd.f32 %v5058_v25, %v2894_v54  ;;  %v953_v50 = vsel %vm908_vm0, %v844_v37, %v862_v23  ;;  %v971_v26 = vsel %vm908_vm0, %v898_v3, %v844_v37  ;;  %v1182_v59 = vsel %vm1137_vm2, %v1073_v32, %v1091_v38 }
  0xee   : > { %v1021_v20 = vsel %vm832_vm1, 0.0, %v971_v26  ;;  %v1164_v61 = vsel %vm1137_vm2, %v1091_v38, %v1109_v7  ;;  %v1330_v56 = vmul.f32 %v3935_v9, %v953_v50  ;;  %v1462_v25 = vmul.f32 %v3946_v14, %v5197_v44 }
  0xef   : > { %v5241_v48 = vmul.f32 %v3977_v35, %v5121_v8  ;;  %v1461_v18 = vmul.f32 %v3946_v14, %v5191_v57  ;;  %v1593_v30 = vmul.f32 %v3949_v15, %v1182_v59  ;;  %v2045_v40 = vadd.f32 %v5095_v2, %v1913_v19 }
  0xf0   : > { %v1329_v58 = vmul.f32 %v3935_v9, %v1021_v20  ;;  %v1594_v36 = vmul.f32 %v3949_v15, %v1164_v61  ;;  %v5250_v63 = vmul.f32 %v3951_v16, %v1021_v20  ;;  %v2046_v13 = vadd.f32 %v5140_v21, %v1914_v12 }
  0xf1   : > { %v5254_v27 = vmul.f32 %v3951_v16, %v953_v50  ;;  %v2113_v8 = vmul.f32 %v3954_v17, %v1021_v20  ;;  %v2114_v37 = vmul.f32 %v3954_v17, %v953_v50  ;;  %v2245_v5 = vmul.f32 %v3985_v39, %v5191_v57 }
  0xf2   : > { %v1526_v2 = vadd.f32 %v1462_v25, %v1330_v56  ;;  %v5261_v19 = vmul.f32 %v3977_v35, %v1182_v59  ;;  %v2246_v52 = vmul.f32 %v3985_v39, %v5197_v44  ;;  %v2377_v54 = vmul.f32 %v4032_v22, %v1182_v59 }
  0xf3   : > { %v2177_v21 = vadd.f32 %v2113_v8, %v2045_v40  ;;  %v2178_v38 = vadd.f32 %v2114_v37, %v2046_v13  ;;  %v2378_v12 = vmul.f32 %v4032_v22, %v1164_v61  ;;  %v880_v26 = vrot.slane %v5199_v43, 7 }
  0xf4   : > { %v1525_v20 = vadd.f32 %v1461_v18, %v1329_v58  ;;  %v1127_v50 = vrot.slane %v5201_v45, 1  ;;  %v1463_v56 = vmul.f32 %v3946_v14, %v5199_v43  ;;  %v1464_v25 = vmul.f32 %v3946_v14, %v5201_v45 }
  0xf5   : > { %v2309_v28 = vadd.f32 %v2245_v5, %v2177_v21  ;;  %v2310_v29 = vadd.f32 %v2246_v52, %v2178_v38  ;;  %v917_v59 = vsel %vm908_vm0, %v880_v26, %v898_v3  ;;  %v935_v40 = vsel %vm908_vm0, %v862_v23, %v880_v26  ;;  %v6831_v52 = vld [vmem:[#allocation7_spill] sm:$0xff] }
  0xf6   : > { %v5279_v13 = vsel %vm1137_vm2, %v1109_v7, %v1127_v50  ;;  %v1200_v18 = vsel %vm1137_vm2, %v1127_v50, %v1073_v32  ;;  %v1331_v58 = vmul.f32 %v3935_v9, %v935_v40  ;;  %v1332_v8 = vmul.f32 %v3935_v9, %v917_v59 }
  0xf7   : > { %v2441_v37 = vadd.f32 %v2377_v54, %v2309_v28  ;;  %v2442_v5 = vadd.f32 %v2378_v12, %v2310_v29  ;;  %v5287_v3 = vsel %vm1064_vm4, 0.0, %v1200_v18  ;;  %v1783_v23 = vadd.f32 %v5161_v55, %v6831_v52  ;;  %v6832_v18 = vld [vmem:[#allocation9_spill] sm:$0xff] }
  0xf8   : > { %v1527_v21 = vadd.f32 %v1463_v56, %v1331_v58  ;;  %v1528_v7 = vadd.f32 %v1464_v25, %v1332_v8  ;;  %v1595_v32 = vmul.f32 %v3949_v15, %v5279_v13  ;;  %v1596_v38 = vmul.f32 %v3949_v15, %v5287_v3 }
  0xf9   : > { %v3570_v26 = vpack.c.bf16 %v2442_v5, %v2441_v37  ;;  %v5296_v28 = vadd.f32 %v5130_v0, %v2441_v37  ;;  %v5299_v29 = vadd.f32 %v5133_v49, %v2442_v5  ;;  %v2895_v54 = vmul.f32 %v2441_v37, %v2441_v37  ;;  %v3685_v37 = vld [vmem:[%s3927_s20 + $0x88] sm:$0xff]  }
  0xfa   : > { %v5301_v12 = vadd.f32 %v1593_v30, %v1525_v20  ;;  %v5303_v55 = vadd.f32 %v1594_v36, %v1526_v2  ;;  %v5306_v50 = vmul.f32 %v3977_v35, %v1164_v61  ;;  %v2896_v56 = vmul.f32 %v2442_v5, %v2442_v5  ;;  %v3684_v36 = vld [vmem:[%s3927_s20 + $0x80] sm:$0xff]  }
  0xfb   : > { %3711 = vst [vmem:[%s4235_s9 + $0x60] sm:$0xff] %v3570_v26   ;;  %v5310_v25 = vadd.f32 %v5144_v11, %v2895_v54  ;;  %v1784_v0 = vadd.f32 %v5167_v4, %v6832_v18  ;;  %v1851_v49 = vmul.f32 %v3971_v31, %v5033_v51  ;;  %v1852_v30 = vmul.f32 %v3971_v31, %v5035_v60 }
  0xfc   : > { %v5320_v2 = vadd.f32 %v5154_v47, %v2896_v56  ;;  %v5322_v61 = vadd.f32 %v1595_v32, %v1527_v21  ;;  %v5324_v20 = vadd.f32 %v1596_v38, %v1528_v7  ;;  %v5327_v11 = vmul.f32 %v3951_v16, %v935_v40 }
  0xfd   : > { %v1915_v58 = vadd.f32 %v1851_v49, %v1783_v23  ;;  %v1916_v8 = vadd.f32 %v1852_v30, %v1784_v0  ;;  %v2115_v4 = vmul.f32 %v3954_v17, %v935_v40  ;;  %v2116_v51 = vmul.f32 %v3954_v17, %v917_v59 }
  0xfe   : > { %6833 = vst [vmem:[#allocation4_spill] sm:$0xff] %v5322_v61  ;;  %6834 = vst [vmem:[#allocation5_spill] sm:$0xff] %v5324_v20  ;;  %v5333_v60 = vmul.f32 %v3951_v16, %v917_v59  ;;  %v2247_v47 = vmul.f32 %v3985_v39, %v5199_v43  ;;  %v2248_v5 = vmul.f32 %v3985_v39, %v5201_v45  ;;  %v3445_v52 = vunpack.c.l.bf16 %v3684_v36 }
  0xff   : > { %v2047_v21 = vadd.f32 %v5216_v42, %v1915_v58  ;;  %v2048_v23 = vadd.f32 %v5241_v48, %v1916_v8  ;;  %v3446_v7 = vunpack.c.h.bf16 %v3684_v36  ;;  %v3449_v32 = vunpack.c.l.bf16 %v3685_v37 }
 0x100   : > { %v2379_v40 = vmul.f32 %v4032_v22, %v5279_v13  ;;  %v2380_v59 = vmul.f32 %v4032_v22, %v5287_v3  ;;  %v3450_v38 = vunpack.c.h.bf16 %v3685_v37  ;;  %v667_v26 = vmul.f32 %v4840_v34, %v3445_v52 }
 0x101   : > { %v2179_v54 = vadd.f32 %v2115_v4, %v2047_v21  ;;  %v2180_v56 = vadd.f32 %v2116_v51, %v2048_v23  ;;  %v668_v18 = vmul.f32 %v4840_v34, %v3446_v7  ;;  %v669_v0 = vmul.f32 %v4840_v34, %v3449_v32 }
 0x102   : > { %v670_v42 = vmul.f32 %v4840_v34, %v3450_v38  ;;  %v731_v48 = vadd.f32 %v4849_v46, %v667_v26  ;;  %v1785_v49 = vadd.f32 %v5250_v63, %v5135_v6  ;;  %v1853_v30 = vmul.f32 %v3971_v31, %v5191_v57 }
 0x103   : > { %v2311_v36 = vadd.f32 %v2247_v47, %v2179_v54  ;;  %v2312_v58 = vadd.f32 %v2248_v5, %v2180_v56  ;;  %v732_v8 = vadd.f32 %v4849_v46, %v668_v18  ;;  %v733_v4 = vadd.f32 %v4849_v46, %v669_v0 }
 0x104   : > { %v734_v51 = vadd.f32 %v4849_v46, %v670_v42  ;;  %v5357_v37 = vmax.f32 %v731_v48, 0.0  ;;  %v1786_v52 = vadd.f32 %v5254_v27, %v5137_v41  ;;  %v1854_v21 = vmul.f32 %v3971_v31, %v5197_v44 }
 0x105   : > { %v2443_v6 = vadd.f32 %v2379_v40, %v2311_v36  ;;  %v2444_v63 = vadd.f32 %v2380_v59, %v2312_v58  ;;  %v5363_v57 = vmax.f32 %v732_v8, 0.0  ;;  %v5365_v47 = vmax.f32 %v733_v4, 0.0 }
 0x106   : > { %v5367_v5 = vmax.f32 %v734_v51, 0.0  ;;  %v845_v23 = vrot.slane %v5357_v37, 7  ;;  %v1074_v7 = vrot.slane %v5357_v37, 1  ;;  %v1917_v32 = vadd.f32 %v1853_v30, %v1785_v49 }
 0x107   : > { %v3575_v38 = vpack.c.bf16 %v2444_v63, %v2443_v6  ;;  %v5372_v41 = vadd.f32 %v5206_v33, %v2443_v6  ;;  %v5375_v44 = vadd.f32 %v5209_v24, %v2444_v63  ;;  %v2897_v27 = vmul.f32 %v2443_v6, %v2443_v6 }
 0x108   : > { %v2898_v40 = vmul.f32 %v2444_v63, %v2444_v63  ;;  %v863_v59 = vrot.slane %v5363_v57, 7  ;;  %v899_v26 = vrot.slane %v5367_v5, 7  ;;  %v1092_v54 = vrot.slane %v5363_v57, 1 }
 0x109   : > { %v5382_v56 = vmul.f32 %v3977_v35, %v5279_v13  ;;  %3712 = vst [vmem:[%s4235_s9 + $0x68] sm:$0xff] %v3575_v38   ;;  %v5386_v18 = vadd.f32 %v5220_v62, %v2897_v27  ;;  %v1110_v33 = vrot.slane %v5365_v47, 1  ;;  %v1918_v24 = vadd.f32 %v1854_v21, %v1786_v52 }
 0x10a   : > { %v5390_v0 = vadd.f32 %v5224_v53, %v2898_v40  ;;  %v954_v42 = vsel %vm908_vm0, %v845_v23, %v863_v59  ;;  %v972_v48 = vsel %vm908_vm0, %v899_v26, %v845_v23  ;;  %v1183_v13 = vsel %vm1137_vm2, %v1074_v7, %v1092_v54 }
 0x10b   : > { %v1025_v49 = vsel %vm832_vm1, 0.0, %v972_v48  ;;  %v1165_v62 = vsel %vm1137_vm2, %v1092_v54, %v1110_v33  ;;  %v1334_v30 = vmul.f32 %v3935_v9, %v954_v42  ;;  %v1466_v53 = vmul.f32 %v3946_v14, %v5363_v57 }
 0x10c   : > { %v5407_v36 = vmul.f32 %v3977_v35, %v5287_v3  ;;  %v1465_v58 = vmul.f32 %v3946_v14, %v5357_v37  ;;  %v1597_v8 = vmul.f32 %v3949_v15, %v1183_v13  ;;  %v2049_v4 = vadd.f32 %v5261_v19, %v1917_v32 }
 0x10d   : > { %v1333_v51 = vmul.f32 %v3935_v9, %v1025_v49  ;;  %v1598_v52 = vmul.f32 %v3949_v15, %v1165_v62  ;;  %v5416_v21 = vmul.f32 %v3951_v16, %v1025_v49  ;;  %v2050_v6 = vadd.f32 %v5306_v50, %v1918_v24 }
 0x10e   : > { %v5420_v63 = vmul.f32 %v3951_v16, %v954_v42  ;;  %v2117_v3 = vmul.f32 %v3954_v17, %v1025_v49  ;;  %v2118_v23 = vmul.f32 %v3954_v17, %v954_v42  ;;  %v2249_v38 = vmul.f32 %v3985_v39, %v5357_v37 }
 0x10f   : > { %v1530_v19 = vadd.f32 %v1466_v53, %v1334_v30  ;;  %v5427_v32 = vmul.f32 %v3977_v35, %v1183_v13  ;;  %v2250_v27 = vmul.f32 %v3985_v39, %v5363_v57  ;;  %v2381_v40 = vmul.f32 %v4032_v22, %v1183_v13 }
 0x110   : > { %v2181_v50 = vadd.f32 %v2117_v3, %v2049_v4  ;;  %v2182_v54 = vadd.f32 %v2118_v23, %v2050_v6  ;;  %v2382_v24 = vmul.f32 %v4032_v22, %v1165_v62  ;;  %v881_v48 = vrot.slane %v5365_v47, 7 }
 0x111   : > { %v1529_v49 = vadd.f32 %v1465_v58, %v1333_v51  ;;  %v1128_v42 = vrot.slane %v5367_v5, 1  ;;  %v1467_v30 = vmul.f32 %v3946_v14, %v5365_v47  ;;  %v1468_v53 = vmul.f32 %v3946_v14, %v5367_v5 }
 0x112   : > { %v2313_v20 = vadd.f32 %v2249_v38, %v2181_v50  ;;  %v2314_v61 = vadd.f32 %v2250_v27, %v2182_v54  ;;  %v918_v13 = vsel %vm908_vm0, %v881_v48, %v899_v26  ;;  %v936_v4 = vsel %vm908_vm0, %v863_v59, %v881_v48  ;;  %v6835_v27 = vld [vmem:[#allocation6_spill] sm:$0xff] }
 0x113   : > { %v5445_v6 = vsel %vm1137_vm2, %v1110_v33, %v1128_v42  ;;  %v1201_v58 = vsel %vm1137_vm2, %v1128_v42, %v1074_v7  ;;  %v1335_v51 = vmul.f32 %v3935_v9, %v936_v4  ;;  %v1336_v3 = vmul.f32 %v3935_v9, %v918_v13 }
 0x114   : > { %v2445_v23 = vadd.f32 %v2381_v40, %v2313_v20  ;;  %v2446_v38 = vadd.f32 %v2382_v24, %v2314_v61  ;;  %v5453_v26 = vsel %vm1064_vm4, 0.0, %v1201_v58  ;;  %v1787_v59 = vadd.f32 %v5327_v11, %v6835_v27  ;;  %v6836_v58 = vld [vmem:[#allocation8_spill] sm:$0xff] }
 0x115   : > { %v1531_v50 = vadd.f32 %v1467_v30, %v1335_v51  ;;  %v1532_v33 = vadd.f32 %v1468_v53, %v1336_v3  ;;  %v1599_v7 = vmul.f32 %v3949_v15, %v5445_v6  ;;  %v1600_v54 = vmul.f32 %v3949_v15, %v5453_v26 }
 0x116   : > { %v3580_v48 = vpack.c.bf16 %v2446_v38, %v2445_v23  ;;  %v5462_v20 = vadd.f32 %v5296_v28, %v2445_v23  ;;  %v5465_v61 = vadd.f32 %v5299_v29, %v2446_v38  ;;  %v2899_v40 = vmul.f32 %v2445_v23, %v2445_v23  ;;  %v3687_v23 = vld [vmem:[%s3927_s20 + $0x98] sm:$0xff]  }
 0x117   : > { %v5467_v24 = vadd.f32 %v1597_v8, %v1529_v49  ;;  %v5469_v11 = vadd.f32 %v1598_v52, %v1530_v19  ;;  %v5472_v42 = vmul.f32 %v3977_v35, %v1165_v62  ;;  %v2900_v30 = vmul.f32 %v2446_v38, %v2446_v38  ;;  %v3686_v52 = vld [vmem:[%s3927_s20 + $0x90] sm:$0xff]  }
 0x118   : > { %3713 = vst [vmem:[%s4235_s9 + $0x70] sm:$0xff] %v3580_v48   ;;  %v5476_v53 = vadd.f32 %v5310_v25, %v2899_v40  ;;  %v1788_v28 = vadd.f32 %v5333_v60, %v6836_v58  ;;  %v1855_v29 = vmul.f32 %v3971_v31, %v5199_v43  ;;  %v1856_v8 = vmul.f32 %v3971_v31, %v5201_v45 }
 0x119   : > { %v5486_v19 = vadd.f32 %v5320_v2, %v2900_v30  ;;  %v5488_v62 = vadd.f32 %v1599_v7, %v1531_v50  ;;  %v5490_v49 = vadd.f32 %v1600_v54, %v1532_v33  ;;  %v5493_v25 = vmul.f32 %v3951_v16, %v936_v4 }
 0x11a   : > { %v1919_v51 = vadd.f32 %v1855_v29, %v1787_v59  ;;  %v1920_v3 = vadd.f32 %v1856_v8, %v1788_v28  ;;  %v2119_v60 = vmul.f32 %v3954_v17, %v936_v4  ;;  %v2120_v43 = vmul.f32 %v3954_v17, %v918_v13 }
 0x11b   : > { %v5499_v45 = vmul.f32 %v3951_v16, %v918_v13  ;;  %v2251_v2 = vmul.f32 %v3985_v39, %v5365_v47  ;;  %v2252_v38 = vmul.f32 %v3985_v39, %v5367_v5  ;;  %v3453_v27 = vunpack.c.l.bf16 %v3686_v52 }
 0x11c   : > { %v2051_v50 = vadd.f32 %v5382_v56, %v1919_v51  ;;  %v2052_v59 = vadd.f32 %v5407_v36, %v1920_v3  ;;  %v3454_v33 = vunpack.c.h.bf16 %v3686_v52  ;;  %v3457_v7 = vunpack.c.l.bf16 %v3687_v23 }
 0x11d   : > { %v2383_v4 = vmul.f32 %v4032_v22, %v5445_v6  ;;  %v2384_v13 = vmul.f32 %v4032_v22, %v5453_v26  ;;  %v3458_v54 = vunpack.c.h.bf16 %v3687_v23  ;;  %v671_v48 = vmul.f32 %v4840_v34, %v3453_v27 }
 0x11e   : > { %v2183_v40 = vadd.f32 %v2119_v60, %v2051_v50  ;;  %v2184_v30 = vadd.f32 %v2120_v43, %v2052_v59  ;;  %v672_v58 = vmul.f32 %v4840_v34, %v3454_v33  ;;  %v673_v28 = vmul.f32 %v4840_v34, %v3457_v7 }
 0x11f   : > { %v674_v56 = vmul.f32 %v4840_v34, %v3458_v54  ;;  %v735_v36 = vadd.f32 %v4849_v46, %v671_v48  ;;  %v1789_v29 = vadd.f32 %v5416_v21, %v5301_v12  ;;  %v1857_v8 = vmul.f32 %v3971_v31, %v5357_v37 }
 0x120   : > { %v2315_v52 = vadd.f32 %v2251_v2, %v2183_v40  ;;  %v2316_v51 = vadd.f32 %v2252_v38, %v2184_v30  ;;  %v736_v3 = vadd.f32 %v4849_v46, %v672_v58  ;;  %v737_v60 = vadd.f32 %v4849_v46, %v673_v28 }
 0x121   : > { %v738_v43 = vadd.f32 %v4849_v46, %v674_v56  ;;  %v5523_v23 = vmax.f32 %v735_v36, 0.0  ;;  %v1790_v34 = vadd.f32 %v5420_v63, %v5303_v55  ;;  %v1858_v27 = vmul.f32 %v3971_v31, %v5363_v57 }
 0x122   : > { %v2447_v12 = vadd.f32 %v2383_v4, %v2315_v52  ;;  %v2448_v21 = vadd.f32 %v2384_v13, %v2316_v51  ;;  %v5529_v37 = vmax.f32 %v736_v3, 0.0  ;;  %v5531_v2 = vmax.f32 %v737_v60, 0.0 }
 0x123   : > { %v5533_v38 = vmax.f32 %v738_v43, 0.0  ;;  %v846_v50 = vrot.slane %v5523_v23, 7  ;;  %v1075_v46 = vrot.slane %v5523_v23, 1  ;;  %v1921_v59 = vadd.f32 %v1857_v8, %v1789_v29 }
 0x124   : > { %v3585_v33 = vpack.c.bf16 %v2448_v21, %v2447_v12  ;;  %v5538_v55 = vadd.f32 %v5372_v41, %v2447_v12  ;;  %v5541_v57 = vadd.f32 %v5375_v44, %v2448_v21  ;;  %v2901_v63 = vmul.f32 %v2447_v12, %v2447_v12 }
 0x125   : > { %v2902_v7 = vmul.f32 %v2448_v21, %v2448_v21  ;;  %v864_v4 = vrot.slane %v5529_v37, 7  ;;  %v900_v13 = vrot.slane %v5533_v38, 7  ;;  %v1093_v54 = vrot.slane %v5529_v37, 1 }
 0x126   : > { %v5548_v48 = vmul.f32 %v3977_v35, %v5445_v6  ;;  %3714 = vst [vmem:[%s4235_s9 + $0x78] sm:$0xff] %v3585_v33   ;;  %v5552_v40 = vadd.f32 %v5386_v18, %v2901_v63  ;;  %v1111_v41 = vrot.slane %v5531_v2, 1  ;;  %v1922_v44 = vadd.f32 %v1858_v27, %v1790_v34 }
 0x127   : > { %v5556_v30 = vadd.f32 %v5390_v0, %v2902_v7  ;;  %v955_v58 = vsel %vm908_vm0, %v846_v50, %v864_v4  ;;  %v973_v28 = vsel %vm908_vm0, %v900_v13, %v846_v50  ;;  %v1184_v6 = vsel %vm1137_vm2, %v1075_v46, %v1093_v54 }
 0x128   : > { %v1029_v56 = vsel %vm832_vm1, 0.0, %v973_v28  ;;  %v1166_v18 = vsel %vm1137_vm2, %v1093_v54, %v1111_v41  ;;  %v1338_v36 = vmul.f32 %v3935_v9, %v955_v58  ;;  %v1470_v0 = vmul.f32 %v3946_v14, %v5529_v37 }
 0x129   : > { %v5573_v29 = vmul.f32 %v3977_v35, %v5453_v26  ;;  %v1469_v8 = vmul.f32 %v3946_v14, %v5523_v23  ;;  %v1601_v52 = vmul.f32 %v3949_v15, %v1184_v6  ;;  %v2053_v51 = vadd.f32 %v5427_v32, %v1921_v59 }
 0x12a   : > { %v1337_v3 = vmul.f32 %v3935_v9, %v1029_v56  ;;  %v1602_v60 = vmul.f32 %v3949_v15, %v1166_v18  ;;  %v5582_v43 = vmul.f32 %v3951_v16, %v1029_v56  ;;  %v2054_v34 = vadd.f32 %v5472_v42, %v1922_v44 }
 0x12b   : > { %v5586_v27 = vmul.f32 %v3951_v16, %v955_v58  ;;  %v2121_v26 = vmul.f32 %v3954_v17, %v1029_v56  ;;  %v2122_v12 = vmul.f32 %v3954_v17, %v955_v58  ;;  %v2253_v21 = vmul.f32 %v3985_v39, %v5523_v23 }
 0x12c   : > { %v1534_v32 = vadd.f32 %v1470_v0, %v1338_v36  ;;  %v5593_v50 = vmul.f32 %v3977_v35, %v1184_v6  ;;  %v2254_v59 = vmul.f32 %v3985_v39, %v5529_v37  ;;  %v2385_v33 = vmul.f32 %v4032_v22, %v1184_v6 }
 0x12d   : > { %v2185_v42 = vadd.f32 %v2121_v26, %v2053_v51  ;;  %v2186_v63 = vadd.f32 %v2122_v12, %v2054_v34  ;;  %v2386_v7 = vmul.f32 %v4032_v22, %v1166_v18  ;;  %v882_v54 = vrot.slane %v5531_v2, 7 }
 0x12e   : > { %v1533_v44 = vadd.f32 %v1469_v8, %v1337_v3  ;;  %v1129_v58 = vrot.slane %v5533_v38, 1  ;;  %v1471_v28 = vmul.f32 %v3946_v14, %v5531_v2  ;;  %v1472_v56 = vmul.f32 %v3946_v14, %v5533_v38 }
 0x12f   : > { %v2317_v36 = vadd.f32 %v2253_v21, %v2185_v42  ;;  %v2318_v0 = vadd.f32 %v2254_v59, %v2186_v63  ;;  %v919_v6 = vsel %vm908_vm0, %v882_v54, %v900_v13  ;;  %v937_v51 = vsel %vm908_vm0, %v864_v4, %v882_v54  ;;  %v6837_v59 = vld [vmem:[#allocation4_spill] sm:$0xff] }
 0x130   : > { %v5611_v34 = vsel %vm1137_vm2, %v1111_v41, %v1129_v58  ;;  %v1202_v8 = vsel %vm1137_vm2, %v1129_v58, %v1075_v46  ;;  %v1339_v3 = vmul.f32 %v3935_v9, %v937_v51  ;;  %v1340_v26 = vmul.f32 %v3935_v9, %v919_v6 }
 0x131   : > { %v2449_v12 = vadd.f32 %v2385_v33, %v2317_v36  ;;  %v2450_v21 = vadd.f32 %v2386_v7, %v2318_v0  ;;  %v5619_v13 = vsel %vm1064_vm4, 0.0, %v1202_v8  ;;  %v1791_v4 = vadd.f32 %v5493_v25, %v6837_v59  ;;  %v6838_v8 = vld [vmem:[#allocation5_spill] sm:$0xff] }
 0x132   : > { %v1535_v42 = vadd.f32 %v1471_v28, %v1339_v3  ;;  %v1536_v41 = vadd.f32 %v1472_v56, %v1340_v26  ;;  %v1603_v46 = vmul.f32 %v3949_v15, %v5611_v34  ;;  %v1604_v63 = vmul.f32 %v3949_v15, %v5619_v13 }
 0x133   : > { %v3590_v54 = vpack.c.bf16 %v2450_v21, %v2449_v12  ;;  %v5628_v33 = vadd.f32 %v5462_v20, %v2449_v12  ;;  %v5631_v7 = vadd.f32 %v5465_v61, %v2450_v21  ;;  %v2903_v58 = vmul.f32 %v2449_v12, %v2449_v12  ;;  %v3689_v12 = vld [vmem:[%s3927_s20 + $0xa8] sm:$0xff]  }
 0x134   : > { %v5633_v36 = vadd.f32 %v1601_v52, %v1533_v44  ;;  %v5635_v25 = vadd.f32 %v1602_v60, %v1534_v32  ;;  %v5638_v28 = vmul.f32 %v3977_v35, %v1166_v18  ;;  %v2904_v56 = vmul.f32 %v2450_v21, %v2450_v21  ;;  %v3688_v60 = vld [vmem:[%s3927_s20 + $0xa0] sm:$0xff]  }
 0x135   : > { %3715 = vst [vmem:[%s4235_s9 + $0x80] sm:$0xff] %v3590_v54   ;;  %v5642_v0 = vadd.f32 %v5476_v53, %v2903_v58  ;;  %v1792_v20 = vadd.f32 %v5499_v45, %v6838_v8  ;;  %v1859_v61 = vmul.f32 %v3971_v31, %v5365_v47  ;;  %v1860_v52 = vmul.f32 %v3971_v31, %v5367_v5  ;;  %v5680_v54 = vld [vmem:[%s6786_s4] ss:$0 sm:$0xff] }
 0x136   : > { %v5652_v32 = vadd.f32 %v5486_v19, %v2904_v56  ;;  %v5654_v18 = vadd.f32 %v1603_v46, %v1535_v42  ;;  %v5656_v44 = vadd.f32 %v1604_v63, %v1536_v41  ;;  %v5659_v53 = vmul.f32 %v3951_v16, %v937_v51 }
 0x137   : > { %v1923_v3 = vadd.f32 %v1859_v61, %v1791_v4  ;;  %v1924_v26 = vadd.f32 %v1860_v52, %v1792_v20  ;;  %v2123_v45 = vmul.f32 %v3954_v17, %v937_v51  ;;  %v2124_v47 = vmul.f32 %v3954_v17, %v919_v6  ;;  %v5689_v61 = vld [vmem:[%s6786_s4 + $0x1] ss:$0 sm:$0xff] }
 0x138   : > { %6839 = vst [vmem:[#allocation3_spill] sm:$0xff] %v5654_v18  ;;  %6840 = vst [vmem:[#allocation2_spill] sm:$0xff] %v5656_v44  ;;  %v5665_v5 = vmul.f32 %v3951_v16, %v919_v6  ;;  %v2255_v19 = vmul.f32 %v3985_v39, %v5531_v2  ;;  %v2256_v21 = vmul.f32 %v3985_v39, %v5533_v38  ;;  %v3461_v59 = vunpack.c.l.bf16 %v3688_v60 }
 0x139   : > { %v2055_v42 = vadd.f32 %v5548_v48, %v1923_v3  ;;  %v2056_v4 = vadd.f32 %v5573_v29, %v1924_v26  ;;  %v3462_v41 = vunpack.c.h.bf16 %v3688_v60  ;;  %v3465_v46 = vunpack.c.l.bf16 %v3689_v12 }
 0x13a   : > { %v2387_v51 = vmul.f32 %v4032_v22, %v5611_v34  ;;  %v2388_v6 = vmul.f32 %v4032_v22, %v5619_v13  ;;  %v3466_v63 = vunpack.c.h.bf16 %v3689_v12  ;;  %v675_v58 = vmul.f32 %v5680_v54, %v3461_v59 }
 0x13b   : > { %v2187_v56 = vadd.f32 %v2123_v45, %v2055_v42  ;;  %v2188_v48 = vadd.f32 %v2124_v47, %v2056_v4  ;;  %v676_v29 = vmul.f32 %v5680_v54, %v3462_v41  ;;  %v677_v8 = vmul.f32 %v5680_v54, %v3465_v46 }
 0x13c   : > { %v678_v20 = vmul.f32 %v5680_v54, %v3466_v63  ;;  %v739_v52 = vadd.f32 %v5689_v61, %v675_v58  ;;  %v1793_v60 = vadd.f32 %v5582_v43, %v5467_v24  ;;  %v1861_v3 = vmul.f32 %v3971_v31, %v5523_v23 }
 0x13d   : > { %v2319_v26 = vadd.f32 %v2255_v19, %v2187_v56  ;;  %v2320_v45 = vadd.f32 %v2256_v21, %v2188_v48  ;;  %v740_v47 = vadd.f32 %v5689_v61, %v676_v29  ;;  %v741_v12 = vadd.f32 %v5689_v61, %v677_v8 }
 0x13e   : > { %v742_v59 = vadd.f32 %v5689_v61, %v678_v20  ;;  %v5699_v42 = vmax.f32 %v739_v52, 0.0  ;;  %v1794_v4 = vadd.f32 %v5586_v27, %v5469_v11  ;;  %v1862_v41 = vmul.f32 %v3971_v31, %v5529_v37 }
 0x13f   : > { %v2451_v24 = vadd.f32 %v2387_v51, %v2319_v26  ;;  %v2452_v43 = vadd.f32 %v2388_v6, %v2320_v45  ;;  %v5705_v23 = vmax.f32 %v740_v47, 0.0  ;;  %v5707_v19 = vmax.f32 %v741_v12, 0.0 }
 0x140   : > { %v5709_v21 = vmax.f32 %v742_v59, 0.0  ;;  %v847_v46 = vrot.slane %v5699_v42, 7  ;;  %v1076_v63 = vrot.slane %v5699_v42, 1  ;;  %v1925_v58 = vadd.f32 %v1861_v3, %v1793_v60 }
 0x141   : > { %v3595_v56 = vpack.c.bf16 %v2452_v43, %v2451_v24  ;;  %v5714_v11 = vadd.f32 %v5538_v55, %v2451_v24  ;;  %v5717_v37 = vadd.f32 %v5541_v57, %v2452_v43  ;;  %v2905_v27 = vmul.f32 %v2451_v24, %v2451_v24 }
 0x142   : > { %v2906_v51 = vmul.f32 %v2452_v43, %v2452_v43  ;;  %v865_v6 = vrot.slane %v5705_v23, 7  ;;  %v901_v48 = vrot.slane %v5709_v21, 7  ;;  %v1094_v29 = vrot.slane %v5705_v23, 1 }
 0x143   : > { %v5724_v8 = vmul.f32 %v3977_v35, %v5611_v34  ;;  %3716 = vst [vmem:[%s4235_s9 + $0x88] sm:$0xff] %v3595_v56   ;;  %v5728_v20 = vadd.f32 %v5552_v40, %v2905_v27  ;;  %v1112_v55 = vrot.slane %v5707_v19, 1  ;;  %v1926_v57 = vadd.f32 %v1862_v41, %v1794_v4 }
 0x144   : > { %v5732_v52 = vadd.f32 %v5556_v30, %v2906_v51  ;;  %v956_v60 = vsel %vm908_vm0, %v847_v46, %v865_v6  ;;  %v974_v3 = vsel %vm908_vm0, %v901_v48, %v847_v46  ;;  %v1185_v34 = vsel %vm1137_vm2, %v1076_v63, %v1094_v29 }
 0x145   : > { %v1033_v26 = vsel %vm832_vm1, 0.0, %v974_v3  ;;  %v1167_v40 = vsel %vm1137_vm2, %v1094_v29, %v1112_v55  ;;  %v1342_v45 = vmul.f32 %v3935_v9, %v956_v60  ;;  %v1474_v30 = vmul.f32 %v3946_v14, %v5705_v23 }
 0x146   : > { %6841 = vst [vmem:[#allocation7_spill] sm:$0xff] %v5732_v52  ;;  %v5749_v47 = vmul.f32 %v3977_v35, %v5619_v13  ;;  %v1473_v12 = vmul.f32 %v3946_v14, %v5699_v42  ;;  %v1605_v59 = vmul.f32 %v3949_v15, %v1185_v34  ;;  %v2057_v4 = vadd.f32 %v5593_v50, %v1925_v58 }
 0x147   : > { %v1341_v41 = vmul.f32 %v3935_v9, %v1033_v26  ;;  %v1606_v24 = vmul.f32 %v3949_v15, %v1167_v40  ;;  %v5758_v43 = vmul.f32 %v3951_v16, %v1033_v26  ;;  %v2058_v46 = vadd.f32 %v5638_v28, %v1926_v57 }
 0x148   : > { %v5762_v56 = vmul.f32 %v3951_v16, %v956_v60  ;;  %v2125_v13 = vmul.f32 %v3954_v17, %v1033_v26  ;;  %v2126_v27 = vmul.f32 %v3954_v17, %v956_v60  ;;  %v2257_v51 = vmul.f32 %v3985_v39, %v5699_v42 }
 0x149   : > { %v1538_v50 = vadd.f32 %v1474_v30, %v1342_v45  ;;  %v5769_v58 = vmul.f32 %v3977_v35, %v1185_v34  ;;  %v2258_v29 = vmul.f32 %v3985_v39, %v5705_v23  ;;  %v2389_v3 = vmul.f32 %v4032_v22, %v1185_v34 }
 0x14a   : > { %v2189_v28 = vadd.f32 %v2125_v13, %v2057_v4  ;;  %v2190_v57 = vadd.f32 %v2126_v27, %v2058_v46  ;;  %v2390_v44 = vmul.f32 %v4032_v22, %v1167_v40  ;;  %v883_v26 = vrot.slane %v5707_v19, 7 }
 0x14b   : > { %6842 = vst [vmem:[#allocation9_spill] sm:$0xff] %v5769_v58  ;;  %v1537_v18 = vadd.f32 %v1473_v12, %v1341_v41  ;;  %v1130_v60 = vrot.slane %v5709_v21, 1  ;;  %v1475_v45 = vmul.f32 %v3946_v14, %v5707_v19  ;;  %v1476_v30 = vmul.f32 %v3946_v14, %v5709_v21 }
 0x14c   : > { %v2321_v58 = vadd.f32 %v2257_v51, %v2189_v28  ;;  %v2322_v52 = vadd.f32 %v2258_v29, %v2190_v57  ;;  %v920_v34 = vsel %vm908_vm0, %v883_v26, %v901_v48  ;;  %v938_v4 = vsel %vm908_vm0, %v865_v6, %v883_v26 }
 0x14d   : > { %v5787_v46 = vsel %vm1137_vm2, %v1112_v55, %v1130_v60  ;;  %v1203_v12 = vsel %vm1137_vm2, %v1130_v60, %v1076_v63  ;;  %v1343_v41 = vmul.f32 %v3935_v9, %v938_v4  ;;  %v1344_v13 = vmul.f32 %v3935_v9, %v920_v34 }
 0x14e   : > { %v2453_v27 = vadd.f32 %v2389_v3, %v2321_v58  ;;  %v2454_v51 = vadd.f32 %v2390_v44, %v2322_v52  ;;  %v5795_v48 = vsel %vm1064_vm4, 0.0, %v1203_v12  ;;  %v1795_v6 = vadd.f32 %v5659_v53, %v5488_v62 }
 0x14f   : > { %v1539_v29 = vadd.f32 %v1475_v45, %v1343_v41  ;;  %v1540_v55 = vadd.f32 %v1476_v30, %v1344_v13  ;;  %v1607_v63 = vmul.f32 %v3949_v15, %v5787_v46  ;;  %v1608_v28 = vmul.f32 %v3949_v15, %v5795_v48 }
 0x150   : > { %v3600_v57 = vpack.c.bf16 %v2454_v51, %v2453_v27  ;;  %v5804_v58 = vadd.f32 %v5628_v33, %v2453_v27  ;;  %v5807_v44 = vadd.f32 %v5631_v7, %v2454_v51  ;;  %v2907_v52 = vmul.f32 %v2453_v27, %v2453_v27 }
 0x151   : > { %v5809_v3 = vadd.f32 %v1605_v59, %v1537_v18  ;;  %v5811_v62 = vadd.f32 %v1606_v24, %v1538_v50  ;;  %v5814_v53 = vmul.f32 %v3977_v35, %v1167_v40  ;;  %v2908_v26 = vmul.f32 %v2454_v51, %v2454_v51  ;;  %v3690_v59 = vld [vmem:[%s3927_s20 + $0xb0] sm:$0xff]  }
 0x152   : > { %3717 = vst [vmem:[%s4235_s9 + $0x90] sm:$0xff] %v3600_v57   ;;  %v5818_v60 = vadd.f32 %v5642_v0, %v2907_v52  ;;  %v1796_v33 = vadd.f32 %v5665_v5, %v5490_v49  ;;  %v1863_v7 = vmul.f32 %v3971_v31, %v5531_v2  ;;  %v1864_v18 = vmul.f32 %v3971_v31, %v5533_v38  ;;  %v3691_v5 = vld [vmem:[%s3927_s20 + $0xb8] sm:$0xff]  }
 0x153   : > { %v5828_v24 = vadd.f32 %v5652_v32, %v2908_v26  ;;  %v5830_v40 = vadd.f32 %v1607_v63, %v1539_v29  ;;  %v5832_v50 = vadd.f32 %v1608_v28, %v1540_v55  ;;  %v5835_v0 = vmul.f32 %v3951_v16, %v938_v4 }
 0x154   : > { %v1927_v45 = vadd.f32 %v1863_v7, %v1795_v6  ;;  %v1928_v30 = vadd.f32 %v1864_v18, %v1796_v33  ;;  %v2127_v49 = vmul.f32 %v3954_v17, %v938_v4  ;;  %v2128_v2 = vmul.f32 %v3954_v17, %v920_v34 }
 0x155   : > { %6843 = vst [vmem:[#allocation6_spill] sm:$0xff] %v5830_v40  ;;  %6844 = vst [vmem:[#allocation8_spill] sm:$0xff] %v5832_v50  ;;  %v5841_v38 = vmul.f32 %v3951_v16, %v920_v34  ;;  %v2259_v32 = vmul.f32 %v3985_v39, %v5707_v19  ;;  %v2260_v12 = vmul.f32 %v3985_v39, %v5709_v21  ;;  %v3469_v41 = vunpack.c.l.bf16 %v3690_v59 }
 0x156   : > { %v2059_v13 = vadd.f32 %v5724_v8, %v1927_v45  ;;  %v2060_v27 = vadd.f32 %v5749_v47, %v1928_v30  ;;  %v3470_v51 = vunpack.c.h.bf16 %v3690_v59  ;;  %v3473_v6 = vunpack.c.l.bf16 %v3691_v5 }
 0x157   : > { %v2391_v4 = vmul.f32 %v4032_v22, %v5787_v46  ;;  %v2392_v34 = vmul.f32 %v4032_v22, %v5795_v48  ;;  %v3474_v29 = vunpack.c.h.bf16 %v3691_v5  ;;  %v679_v55 = vmul.f32 %v5680_v54, %v3469_v41 }
 0x158   : > { %v2191_v63 = vadd.f32 %v2127_v49, %v2059_v13  ;;  %v2192_v28 = vadd.f32 %v2128_v2, %v2060_v27  ;;  %v680_v57 = vmul.f32 %v5680_v54, %v3470_v51  ;;  %v681_v52 = vmul.f32 %v5680_v54, %v3473_v6 }
 0x159   : > { %v682_v8 = vmul.f32 %v5680_v54, %v3474_v29  ;;  %v743_v47 = vadd.f32 %v5689_v61, %v679_v55  ;;  %v1797_v26 = vadd.f32 %v5758_v43, %v5633_v36  ;;  %v1865_v33 = vmul.f32 %v3971_v31, %v5699_v42 }
 0x15a   : > { %v2323_v7 = vadd.f32 %v2259_v32, %v2191_v63  ;;  %v2324_v18 = vadd.f32 %v2260_v12, %v2192_v28  ;;  %v744_v59 = vadd.f32 %v5689_v61, %v680_v57  ;;  %v745_v45 = vadd.f32 %v5689_v61, %v681_v52  ;;  %v6845_v28 = vld [vmem:[#allocation7_spill] sm:$0xff] }
 0x15b   : > { %v746_v30 = vadd.f32 %v5689_v61, %v682_v8  ;;  %v5865_v49 = vmax.f32 %v743_v47, 0.0  ;;  %v1798_v2 = vadd.f32 %v5762_v56, %v5635_v25  ;;  %v1866_v5 = vmul.f32 %v3971_v31, %v5705_v23 }
 0x15c   : > { %v2455_v36 = vadd.f32 %v2391_v4, %v2323_v7  ;;  %v2456_v43 = vadd.f32 %v2392_v34, %v2324_v18  ;;  %v5871_v42 = vmax.f32 %v744_v59, 0.0  ;;  %v5873_v32 = vmax.f32 %v745_v45, 0.0  ;;  %v6846_v45 = vld [vmem:[#allocation9_spill] sm:$0xff] }
 0x15d   : > { %v5875_v12 = vmax.f32 %v746_v30, 0.0  ;;  %v848_v41 = vrot.slane %v5865_v49, 7  ;;  %v1077_v13 = vrot.slane %v5865_v49, 1  ;;  %v1929_v27 = vadd.f32 %v1865_v33, %v1797_v26 }
 0x15e   : > { %v3605_v51 = vpack.c.bf16 %v2456_v43, %v2455_v36  ;;  %v5880_v25 = vadd.f32 %v5714_v11, %v2455_v36  ;;  %v5883_v23 = vadd.f32 %v5717_v37, %v2456_v43  ;;  %v2909_v56 = vmul.f32 %v2455_v36, %v2455_v36 }
 0x15f   : > { %v2910_v6 = vmul.f32 %v2456_v43, %v2456_v43  ;;  %v866_v4 = vrot.slane %v5871_v42, 7  ;;  %v902_v34 = vrot.slane %v5875_v12, 7  ;;  %v1095_v29 = vrot.slane %v5871_v42, 1 }
 0x160   : > { %v5890_v55 = vmul.f32 %v3977_v35, %v5787_v46  ;;  %3718 = vst [vmem:[%s4235_s9 + $0x98] sm:$0xff] %v3605_v51   ;;  %v5894_v63 = vadd.f32 %v5728_v20, %v2909_v56  ;;  %v1113_v11 = vrot.slane %v5873_v32, 1  ;;  %v1930_v37 = vadd.f32 %v1866_v5, %v1798_v2 }
 0x161   : > { %v5898_v57 = vadd.f32 %v6845_v28, %v2910_v6  ;;  %v957_v52 = vsel %vm908_vm0, %v848_v41, %v866_v4  ;;  %v975_v8 = vsel %vm908_vm0, %v902_v34, %v848_v41  ;;  %v1186_v46 = vsel %vm1137_vm2, %v1077_v13, %v1095_v29 }
 0x162   : > { %v1037_v47 = vsel %vm832_vm1, 0.0, %v975_v8  ;;  %v1168_v20 = vsel %vm1137_vm2, %v1095_v29, %v1113_v11  ;;  %v1346_v26 = vmul.f32 %v3935_v9, %v957_v52  ;;  %v1478_v33 = vmul.f32 %v3946_v14, %v5871_v42 }
 0x163   : > { %v5915_v7 = vmul.f32 %v3977_v35, %v5795_v48  ;;  %v1477_v18 = vmul.f32 %v3946_v14, %v5865_v49  ;;  %v1609_v59 = vmul.f32 %v3949_v15, %v1186_v46  ;;  %v2061_v30 = vadd.f32 %v6846_v45, %v1929_v27 }
 0x164   : > { %v1345_v2 = vmul.f32 %v3935_v9, %v1037_v47  ;;  %v1610_v5 = vmul.f32 %v3949_v15, %v1168_v20  ;;  %v5924_v36 = vmul.f32 %v3951_v16, %v1037_v47  ;;  %v2062_v43 = vadd.f32 %v5814_v53, %v1930_v37 }
 0x165   : > { %v5928_v41 = vmul.f32 %v3951_v16, %v957_v52  ;;  %v2129_v48 = vmul.f32 %v3954_v17, %v1037_v47  ;;  %v2130_v51 = vmul.f32 %v3954_v17, %v957_v52  ;;  %v2261_v56 = vmul.f32 %v3985_v39, %v5865_v49 }
 0x166   : > { %v1542_v27 = vadd.f32 %v1478_v33, %v1346_v26  ;;  %v5935_v6 = vmul.f32 %v3977_v35, %v1186_v46  ;;  %v2262_v29 = vmul.f32 %v3985_v39, %v5871_v42  ;;  %v2393_v28 = vmul.f32 %v4032_v22, %v1186_v46 }
 0x167   : > { %v2193_v53 = vadd.f32 %v2129_v48, %v2061_v30  ;;  %v2194_v37 = vadd.f32 %v2130_v51, %v2062_v43  ;;  %v2394_v8 = vmul.f32 %v4032_v22, %v1168_v20  ;;  %v884_v47 = vrot.slane %v5873_v32, 7 }
 0x168   : > { %v1541_v45 = vadd.f32 %v1477_v18, %v1345_v2  ;;  %v1131_v52 = vrot.slane %v5875_v12, 1  ;;  %v1479_v26 = vmul.f32 %v3946_v14, %v5873_v32  ;;  %v1480_v33 = vmul.f32 %v3946_v14, %v5875_v12 }
 0x169   : > { %v2325_v50 = vadd.f32 %v2261_v56, %v2193_v53  ;;  %v2326_v40 = vadd.f32 %v2262_v29, %v2194_v37  ;;  %v921_v46 = vsel %vm908_vm0, %v884_v47, %v902_v34  ;;  %v939_v30 = vsel %vm908_vm0, %v866_v4, %v884_v47  ;;  %v6847_v29 = vld [vmem:[#allocation3_spill] sm:$0xff] }
 0x16a   : > { %v5953_v43 = vsel %vm1137_vm2, %v1113_v11, %v1131_v52  ;;  %v1204_v18 = vsel %vm1137_vm2, %v1131_v52, %v1077_v13  ;;  %v1347_v2 = vmul.f32 %v3935_v9, %v939_v30  ;;  %v1348_v48 = vmul.f32 %v3935_v9, %v921_v46 }
 0x16b   : > { %v2457_v51 = vadd.f32 %v2393_v28, %v2325_v50  ;;  %v2458_v56 = vadd.f32 %v2394_v8, %v2326_v40  ;;  %v5961_v34 = vsel %vm1064_vm4, 0.0, %v1204_v18  ;;  %v1799_v4 = vadd.f32 %v5835_v0, %v6847_v29  ;;  %v6848_v18 = vld [vmem:[#allocation2_spill] sm:$0xff] }
 0x16c   : > { %v1543_v53 = vadd.f32 %v1479_v26, %v1347_v2  ;;  %v1544_v11 = vadd.f32 %v1480_v33, %v1348_v48  ;;  %v1611_v13 = vmul.f32 %v3949_v15, %v5953_v43  ;;  %v1612_v37 = vmul.f32 %v3949_v15, %v5961_v34 }
 0x16d   : > { %v3610_v47 = vpack.c.bf16 %v2458_v56, %v2457_v51  ;;  %v5970_v50 = vadd.f32 %v5804_v58, %v2457_v51  ;;  %v5973_v40 = vadd.f32 %v5807_v44, %v2458_v56  ;;  %v2911_v28 = vmul.f32 %v2457_v51, %v2457_v51  ;;  %v3693_v51 = vld [vmem:[%s3927_s20 + $0xc8] sm:$0xff]  }
 0x16e   : > { %v5975_v8 = vadd.f32 %v1609_v59, %v1541_v45  ;;  %v5977_v0 = vadd.f32 %v1610_v5, %v1542_v27  ;;  %v5980_v52 = vmul.f32 %v3977_v35, %v1168_v20  ;;  %v2912_v26 = vmul.f32 %v2458_v56, %v2458_v56  ;;  %v3692_v5 = vld [vmem:[%s3927_s20 + $0xc0] sm:$0xff]  }
 0x16f   : > { %3719 = vst [vmem:[%s4235_s9 + $0xa0] sm:$0xff] %v3610_v47   ;;  %v5984_v33 = vadd.f32 %v5818_v60, %v2911_v28  ;;  %v1800_v58 = vadd.f32 %v5841_v38, %v6848_v18  ;;  %v1867_v44 = vmul.f32 %v3971_v31, %v5707_v19  ;;  %v1868_v59 = vmul.f32 %v3971_v31, %v5709_v21 }
 0x170   : > { %v5994_v27 = vadd.f32 %v5828_v24, %v2912_v26  ;;  %v5996_v20 = vadd.f32 %v1611_v13, %v1543_v53  ;;  %v5998_v45 = vadd.f32 %v1612_v37, %v1544_v11  ;;  %v6001_v60 = vmul.f32 %v3951_v16, %v939_v30 }
 0x171   : > { %v1931_v2 = vadd.f32 %v1867_v44, %v1799_v4  ;;  %v1932_v48 = vadd.f32 %v1868_v59, %v1800_v58  ;;  %v2131_v38 = vmul.f32 %v3954_v17, %v939_v30  ;;  %v2132_v19 = vmul.f32 %v3954_v17, %v921_v46 }
 0x172   : > { %6849 = vst [vmem:[#allocation4_spill] sm:$0xff] %v5996_v20  ;;  %6850 = vst [vmem:[#allocation5_spill] sm:$0xff] %v5998_v45  ;;  %v6007_v21 = vmul.f32 %v3951_v16, %v921_v46  ;;  %v2263_v24 = vmul.f32 %v3985_v39, %v5873_v32  ;;  %v2264_v56 = vmul.f32 %v3985_v39, %v5875_v12  ;;  %v3477_v29 = vunpack.c.l.bf16 %v3692_v5 }
 0x173   : > { %v2063_v53 = vadd.f32 %v5890_v55, %v1931_v2  ;;  %v2064_v4 = vadd.f32 %v5915_v7, %v1932_v48  ;;  %v3478_v11 = vunpack.c.h.bf16 %v3692_v5  ;;  %v3481_v13 = vunpack.c.l.bf16 %v3693_v51 }
 0x174   : > { %v2395_v30 = vmul.f32 %v4032_v22, %v5953_v43  ;;  %v2396_v46 = vmul.f32 %v4032_v22, %v5961_v34  ;;  %v3482_v37 = vunpack.c.h.bf16 %v3693_v51  ;;  %v683_v47 = vmul.f32 %v5680_v54, %v3477_v29 }
 0x175   : > { %v2195_v28 = vadd.f32 %v2131_v38, %v2063_v53  ;;  %v2196_v26 = vadd.f32 %v2132_v19, %v2064_v4  ;;  %v684_v18 = vmul.f32 %v5680_v54, %v3478_v11  ;;  %v685_v58 = vmul.f32 %v5680_v54, %v3481_v13 }
 0x176   : > { %v686_v55 = vmul.f32 %v5680_v54, %v3482_v37  ;;  %v747_v7 = vadd.f32 %v5689_v61, %v683_v47  ;;  %v1801_v44 = vadd.f32 %v5924_v36, %v5809_v3  ;;  %v1869_v59 = vmul.f32 %v3971_v31, %v5865_v49 }
 0x177   : > { %v2327_v5 = vadd.f32 %v2263_v24, %v2195_v28  ;;  %v2328_v2 = vadd.f32 %v2264_v56, %v2196_v26  ;;  %v748_v48 = vadd.f32 %v5689_v61, %v684_v18  ;;  %v749_v38 = vadd.f32 %v5689_v61, %v685_v58 }
 0x178   : > { %v750_v19 = vadd.f32 %v5689_v61, %v686_v55  ;;  %v6031_v51 = vmax.f32 %v747_v7, 0.0  ;;  %v1802_v29 = vadd.f32 %v5928_v41, %v5811_v62  ;;  %v1870_v53 = vmul.f32 %v3971_v31, %v5871_v42 }
 0x179   : > { %v2459_v3 = vadd.f32 %v2395_v30, %v2327_v5  ;;  %v2460_v36 = vadd.f32 %v2396_v46, %v2328_v2  ;;  %v6037_v49 = vmax.f32 %v748_v48, 0.0  ;;  %v6039_v24 = vmax.f32 %v749_v38, 0.0 }
 0x17a   : > { %v6041_v56 = vmax.f32 %v750_v19, 0.0  ;;  %v849_v4 = vrot.slane %v6031_v51, 7  ;;  %v1078_v11 = vrot.slane %v6031_v51, 1  ;;  %v1933_v13 = vadd.f32 %v1869_v59, %v1801_v44 }
 0x17b   : > { %v3615_v37 = vpack.c.bf16 %v2460_v36, %v2459_v3  ;;  %v6046_v62 = vadd.f32 %v5880_v25, %v2459_v3  ;;  %v6049_v42 = vadd.f32 %v5883_v23, %v2460_v36  ;;  %v2913_v41 = vmul.f32 %v2459_v3, %v2459_v3 }
 0x17c   : > { %v2914_v30 = vmul.f32 %v2460_v36, %v2460_v36  ;;  %v867_v46 = vrot.slane %v6037_v49, 7  ;;  %v903_v47 = vrot.slane %v6041_v56, 7  ;;  %v1096_v28 = vrot.slane %v6037_v49, 1 }
 0x17d   : > { %v6056_v26 = vmul.f32 %v3977_v35, %v5953_v43  ;;  %3720 = vst [vmem:[%s4235_s9 + $0xa8] sm:$0xff] %v3615_v37   ;;  %v6060_v18 = vadd.f32 %v5894_v63, %v2913_v41  ;;  %v1114_v25 = vrot.slane %v6039_v24, 1  ;;  %v1934_v23 = vadd.f32 %v1870_v53, %v1802_v29 }
 0x17e   : > { %v6064_v58 = vadd.f32 %v5898_v57, %v2914_v30  ;;  %v958_v55 = vsel %vm908_vm0, %v849_v4, %v867_v46  ;;  %v976_v7 = vsel %vm908_vm0, %v903_v47, %v849_v4  ;;  %v1187_v43 = vsel %vm1137_vm2, %v1078_v11, %v1096_v28 }
 0x17f   : > { %v1041_v44 = vsel %vm832_vm1, 0.0, %v976_v7  ;;  %v1169_v63 = vsel %vm1137_vm2, %v1096_v28, %v1114_v25  ;;  %v1350_v59 = vmul.f32 %v3935_v9, %v958_v55  ;;  %v1482_v57 = vmul.f32 %v3946_v14, %v6037_v49 }
 0x180   : > { %v6081_v5 = vmul.f32 %v3977_v35, %v5961_v34  ;;  %v1481_v2 = vmul.f32 %v3946_v14, %v6031_v51  ;;  %v1613_v48 = vmul.f32 %v3949_v15, %v1187_v43  ;;  %v2065_v38 = vadd.f32 %v5935_v6, %v1933_v13 }
 0x181   : > { %v1349_v19 = vmul.f32 %v3935_v9, %v1041_v44  ;;  %v1614_v29 = vmul.f32 %v3949_v15, %v1169_v63  ;;  %v6090_v53 = vmul.f32 %v3951_v16, %v1041_v44  ;;  %v2066_v3 = vadd.f32 %v5980_v52, %v1934_v23 }
 0x182   : > { %v6094_v36 = vmul.f32 %v3951_v16, %v958_v55  ;;  %v2133_v34 = vmul.f32 %v3954_v17, %v1041_v44  ;;  %v2134_v4 = vmul.f32 %v3954_v17, %v958_v55  ;;  %v2265_v37 = vmul.f32 %v3985_v39, %v6031_v51 }
 0x183   : > { %v1546_v6 = vadd.f32 %v1482_v57, %v1350_v59  ;;  %v6101_v13 = vmul.f32 %v3977_v35, %v1187_v43  ;;  %v2266_v41 = vmul.f32 %v3985_v39, %v6037_v49  ;;  %v2397_v30 = vmul.f32 %v4032_v22, %v1187_v43 }
 0x184   : > { %v2197_v52 = vadd.f32 %v2133_v34, %v2065_v38  ;;  %v2198_v28 = vadd.f32 %v2134_v4, %v2066_v3  ;;  %v2398_v23 = vmul.f32 %v4032_v22, %v1169_v63  ;;  %v885_v7 = vrot.slane %v6039_v24, 7 }
 0x185   : > { %v1545_v44 = vadd.f32 %v1481_v2, %v1349_v19  ;;  %v1132_v55 = vrot.slane %v6041_v56, 1  ;;  %v1483_v59 = vmul.f32 %v3946_v14, %v6039_v24  ;;  %v1484_v57 = vmul.f32 %v3946_v14, %v6041_v56 }
 0x186   : > { %v2329_v45 = vadd.f32 %v2265_v37, %v2197_v52  ;;  %v2330_v20 = vadd.f32 %v2266_v41, %v2198_v28  ;;  %v922_v43 = vsel %vm908_vm0, %v885_v7, %v903_v47  ;;  %v940_v38 = vsel %vm908_vm0, %v867_v46, %v885_v7  ;;  %v6851_v41 = vld [vmem:[#allocation6_spill] sm:$0xff] }
 0x187   : > { %v6119_v3 = vsel %vm1137_vm2, %v1114_v25, %v1132_v55  ;;  %v1205_v2 = vsel %vm1137_vm2, %v1132_v55, %v1078_v11  ;;  %v1351_v19 = vmul.f32 %v3935_v9, %v940_v38  ;;  %v1352_v34 = vmul.f32 %v3935_v9, %v922_v43 }
 0x188   : > { %v2461_v4 = vadd.f32 %v2397_v30, %v2329_v45  ;;  %v2462_v37 = vadd.f32 %v2398_v23, %v2330_v20  ;;  %v6127_v47 = vsel %vm1064_vm4, 0.0, %v1205_v2  ;;  %v1803_v46 = vadd.f32 %v6001_v60, %v6851_v41  ;;  %v6852_v2 = vld [vmem:[#allocation8_spill] sm:$0xff] }
 0x189   : > { %v1547_v52 = vadd.f32 %v1483_v59, %v1351_v19  ;;  %v1548_v25 = vadd.f32 %v1484_v57, %v1352_v34  ;;  %v1615_v11 = vmul.f32 %v3949_v15, %v6119_v3  ;;  %v1616_v28 = vmul.f32 %v3949_v15, %v6127_v47 }
 0x18a   : > { %v3620_v7 = vpack.c.bf16 %v2462_v37, %v2461_v4  ;;  %v6136_v45 = vadd.f32 %v5970_v50, %v2461_v4  ;;  %v6139_v20 = vadd.f32 %v5973_v40, %v2462_v37  ;;  %v2915_v30 = vmul.f32 %v2461_v4, %v2461_v4  ;;  %v3695_v4 = vld [vmem:[%s3927_s20 + $0xd8] sm:$0xff]  }
 0x18b   : > { %v6141_v23 = vadd.f32 %v1613_v48, %v1545_v44  ;;  %v6143_v60 = vadd.f32 %v1614_v29, %v1546_v6  ;;  %v6146_v55 = vmul.f32 %v3977_v35, %v1169_v63  ;;  %v2916_v59 = vmul.f32 %v2462_v37, %v2462_v37  ;;  %v3694_v29 = vld [vmem:[%s3927_s20 + $0xd0] sm:$0xff]  }
 0x18c   : > { %3721 = vst [vmem:[%s4235_s9 + $0xb0] sm:$0xff] %v3620_v7   ;;  %v6150_v57 = vadd.f32 %v5984_v33, %v2915_v30  ;;  %v1804_v50 = vadd.f32 %v6007_v21, %v6852_v2  ;;  %v1871_v40 = vmul.f32 %v3971_v31, %v5873_v32  ;;  %v1872_v48 = vmul.f32 %v3971_v31, %v5875_v12 }
 0x18d   : > { %v6160_v6 = vadd.f32 %v5994_v27, %v2916_v59  ;;  %v6162_v63 = vadd.f32 %v1615_v11, %v1547_v52  ;;  %v6164_v44 = vadd.f32 %v1616_v28, %v1548_v25  ;;  %v6167_v33 = vmul.f32 %v3951_v16, %v940_v38 }
 0x18e   : > { %v1935_v19 = vadd.f32 %v1871_v40, %v1803_v46  ;;  %v1936_v34 = vadd.f32 %v1872_v48, %v1804_v50  ;;  %v2135_v21 = vmul.f32 %v3954_v17, %v940_v38  ;;  %v2136_v32 = vmul.f32 %v3954_v17, %v922_v43 }
 0x18f   : > { %6853 = vst [vmem:[#allocation7_spill] sm:$0xff] %v6162_v63  ;;  %6854 = vst [vmem:[#allocation9_spill] sm:$0xff] %v6164_v44  ;;  %v6173_v12 = vmul.f32 %v3951_v16, %v922_v43  ;;  %v2267_v27 = vmul.f32 %v3985_v39, %v6039_v24  ;;  %v2268_v37 = vmul.f32 %v3985_v39, %v6041_v56  ;;  %v3485_v41 = vunpack.c.l.bf16 %v3694_v29 }
 0x190   : > { %v2067_v52 = vadd.f32 %v6056_v26, %v1935_v19  ;;  %v2068_v46 = vadd.f32 %v6081_v5, %v1936_v34  ;;  %v3486_v25 = vunpack.c.h.bf16 %v3694_v29  ;;  %v3489_v11 = vunpack.c.l.bf16 %v3695_v4 }
 0x191   : > { %v2399_v38 = vmul.f32 %v4032_v22, %v6119_v3  ;;  %v2400_v43 = vmul.f32 %v4032_v22, %v6127_v47  ;;  %v3490_v28 = vunpack.c.h.bf16 %v3695_v4  ;;  %v687_v7 = vmul.f32 %v5680_v54, %v3485_v41 }
 0x192   : > { %v2199_v30 = vadd.f32 %v2135_v21, %v2067_v52  ;;  %v2200_v59 = vadd.f32 %v2136_v32, %v2068_v46  ;;  %v688_v2 = vmul.f32 %v5680_v54, %v3486_v25  ;;  %v689_v50 = vmul.f32 %v5680_v54, %v3489_v11 }
 0x193   : > { %v690_v26 = vmul.f32 %v5680_v54, %v3490_v28  ;;  %v751_v5 = vadd.f32 %v5689_v61, %v687_v7  ;;  %v1805_v40 = vadd.f32 %v6090_v53, %v5975_v8  ;;  %v1873_v48 = vmul.f32 %v3971_v31, %v6031_v51 }
 0x194   : > { %v2331_v29 = vadd.f32 %v2267_v27, %v2199_v30  ;;  %v2332_v19 = vadd.f32 %v2268_v37, %v2200_v59  ;;  %v752_v34 = vadd.f32 %v5689_v61, %v688_v2  ;;  %v753_v21 = vadd.f32 %v5689_v61, %v689_v50 }
 0x195   : > { %v754_v32 = vadd.f32 %v5689_v61, %v690_v26  ;;  %v6197_v4 = vmax.f32 %v751_v5, 0.0  ;;  %v1806_v41 = vadd.f32 %v6094_v36, %v5977_v0  ;;  %v1874_v52 = vmul.f32 %v3971_v31, %v6037_v49 }
 0x196   : > { %v2463_v8 = vadd.f32 %v2399_v38, %v2331_v29  ;;  %v2464_v53 = vadd.f32 %v2400_v43, %v2332_v19  ;;  %v6203_v51 = vmax.f32 %v752_v34, 0.0  ;;  %v6205_v27 = vmax.f32 %v753_v21, 0.0 }
 0x197   : > { %v6207_v37 = vmax.f32 %v754_v32, 0.0  ;;  %v850_v46 = vrot.slane %v6197_v4, 7  ;;  %v1079_v25 = vrot.slane %v6197_v4, 1  ;;  %v1937_v11 = vadd.f32 %v1873_v48, %v1805_v40 }
 0x198   : > { %v3625_v28 = vpack.c.bf16 %v2464_v53, %v2463_v8  ;;  %v6212_v0 = vadd.f32 %v6046_v62, %v2463_v8  ;;  %v6215_v49 = vadd.f32 %v6049_v42, %v2464_v53  ;;  %v2917_v36 = vmul.f32 %v2463_v8, %v2463_v8 }
 0x199   : > { %v2918_v38 = vmul.f32 %v2464_v53, %v2464_v53  ;;  %v868_v43 = vrot.slane %v6203_v51, 7  ;;  %v904_v7 = vrot.slane %v6207_v37, 7  ;;  %v1097_v30 = vrot.slane %v6203_v51, 1 }
 0x19a   : > { %v6222_v59 = vmul.f32 %v3977_v35, %v6119_v3  ;;  %3722 = vst [vmem:[%s4235_s9 + $0xb8] sm:$0xff] %v3625_v28   ;;  %v6226_v2 = vadd.f32 %v6060_v18, %v2917_v36  ;;  %v1115_v62 = vrot.slane %v6205_v27, 1  ;;  %v1938_v42 = vadd.f32 %v1874_v52, %v1806_v41 }
 0x19b   : > { %v6230_v50 = vadd.f32 %v6064_v58, %v2918_v38  ;;  %v959_v26 = vsel %vm908_vm0, %v850_v46, %v868_v43  ;;  %v977_v5 = vsel %vm908_vm0, %v904_v7, %v850_v46  ;;  %v1188_v3 = vsel %vm1137_vm2, %v1079_v25, %v1097_v30 }
 0x19c   : > { %v1045_v40 = vsel %vm832_vm1, 0.0, %v977_v5  ;;  %v1170_v18 = vsel %vm1137_vm2, %v1097_v30, %v1115_v62  ;;  %v1354_v48 = vmul.f32 %v3935_v9, %v959_v26  ;;  %v1486_v58 = vmul.f32 %v3946_v14, %v6203_v51 }
 0x19d   : > { %v6247_v29 = vmul.f32 %v3977_v35, %v6127_v47  ;;  %v1485_v19 = vmul.f32 %v3946_v14, %v6197_v4  ;;  %v1617_v34 = vmul.f32 %v3949_v15, %v1188_v3  ;;  %v2069_v21 = vadd.f32 %v6101_v13, %v1937_v11 }
 0x19e   : > { %v1353_v32 = vmul.f32 %v3935_v9, %v1045_v40  ;;  %v1618_v41 = vmul.f32 %v3949_v15, %v1170_v18  ;;  %v6256_v52 = vmul.f32 %v3951_v16, %v1045_v40  ;;  %v2070_v8 = vadd.f32 %v6146_v55, %v1938_v42 }
 0x19f   : > { %v6260_v53 = vmul.f32 %v3951_v16, %v959_v26  ;;  %v2137_v47 = vmul.f32 %v3954_v17, %v1045_v40  ;;  %v2138_v46 = vmul.f32 %v3954_v17, %v959_v26  ;;  %v2269_v28 = vmul.f32 %v3985_v39, %v6197_v4 }
 0x1a0   : > { %v1550_v13 = vadd.f32 %v1486_v58, %v1354_v48  ;;  %v6267_v11 = vmul.f32 %v3977_v35, %v1188_v3  ;;  %v2270_v36 = vmul.f32 %v3985_v39, %v6203_v51  ;;  %v2401_v38 = vmul.f32 %v4032_v22, %v1188_v3 }
 0x1a1   : > { %v2201_v55 = vadd.f32 %v2137_v47, %v2069_v21  ;;  %v2202_v30 = vadd.f32 %v2138_v46, %v2070_v8  ;;  %v2402_v42 = vmul.f32 %v4032_v22, %v1170_v18  ;;  %v886_v5 = vrot.slane %v6205_v27, 7 }
 0x1a2   : > { %v1549_v40 = vadd.f32 %v1485_v19, %v1353_v32  ;;  %v1133_v26 = vrot.slane %v6207_v37, 1  ;;  %v1487_v48 = vmul.f32 %v3946_v14, %v6205_v27  ;;  %v1488_v58 = vmul.f32 %v3946_v14, %v6207_v37 }
 0x1a3   : > { %v2333_v44 = vadd.f32 %v2269_v28, %v2201_v55  ;;  %v2334_v63 = vadd.f32 %v2270_v36, %v2202_v30  ;;  %v923_v3 = vsel %vm908_vm0, %v886_v5, %v904_v7  ;;  %v941_v21 = vsel %vm908_vm0, %v868_v43, %v886_v5  ;;  %v6855_v36 = vld [vmem:[#allocation4_spill] sm:$0xff] }
 0x1a4   : > { %v6285_v8 = vsel %vm1137_vm2, %v1115_v62, %v1133_v26  ;;  %v1206_v19 = vsel %vm1137_vm2, %v1133_v26, %v1079_v25  ;;  %v1355_v32 = vmul.f32 %v3935_v9, %v941_v21  ;;  %v1356_v47 = vmul.f32 %v3935_v9, %v923_v3 }
 0x1a5   : > { %v2465_v46 = vadd.f32 %v2401_v38, %v2333_v44  ;;  %v2466_v28 = vadd.f32 %v2402_v42, %v2334_v63  ;;  %v6293_v7 = vsel %vm1064_vm4, 0.0, %v1206_v19  ;;  %v1807_v43 = vadd.f32 %v6167_v33, %v6855_v36  ;;  %v6856_v19 = vld [vmem:[#allocation5_spill] sm:$0xff] }
 0x1a6   : > { %v1551_v55 = vadd.f32 %v1487_v48, %v1355_v32  ;;  %v1552_v62 = vadd.f32 %v1488_v58, %v1356_v47  ;;  %v1619_v25 = vmul.f32 %v3949_v15, %v6285_v8  ;;  %v1620_v30 = vmul.f32 %v3949_v15, %v6293_v7 }
 0x1a7   : > { %v3630_v5 = vpack.c.bf16 %v2466_v28, %v2465_v46  ;;  %v6302_v44 = vadd.f32 %v6136_v45, %v2465_v46  ;;  %v6305_v63 = vadd.f32 %v6139_v20, %v2466_v28  ;;  %v2919_v38 = vmul.f32 %v2465_v46, %v2465_v46  ;;  %v3697_v46 = vld [vmem:[%s3927_s20 + $0xe8] sm:$0xff]  }
 0x1a8   : > { %v6307_v42 = vadd.f32 %v1617_v34, %v1549_v40  ;;  %v6309_v33 = vadd.f32 %v1618_v41, %v1550_v13  ;;  %v6312_v26 = vmul.f32 %v3977_v35, %v1170_v18  ;;  %v2920_v48 = vmul.f32 %v2466_v28, %v2466_v28  ;;  %v3696_v41 = vld [vmem:[%s3927_s20 + $0xe0] sm:$0xff]  }
 0x1a9   : > { %3723 = vst [vmem:[%s4235_s9 + $0xc0] sm:$0xff] %v3630_v5   ;;  %v6316_v58 = vadd.f32 %v6150_v57, %v2919_v38  ;;  %v1808_v45 = vadd.f32 %v6173_v12, %v6856_v19  ;;  %v1875_v20 = vmul.f32 %v3971_v31, %v6039_v24  ;;  %v1876_v34 = vmul.f32 %v3971_v31, %v6041_v56 }
 0x1aa   : > { %v6326_v13 = vadd.f32 %v6160_v6, %v2920_v48  ;;  %v6328_v18 = vadd.f32 %v1619_v25, %v1551_v55  ;;  %v6330_v40 = vadd.f32 %v1620_v30, %v1552_v62  ;;  %v6333_v57 = vmul.f32 %v3951_v16, %v941_v21 }
 0x1ab   : > { %v1939_v32 = vadd.f32 %v1875_v20, %v1807_v43  ;;  %v1940_v47 = vadd.f32 %v1876_v34, %v1808_v45  ;;  %v2139_v12 = vmul.f32 %v3954_v17, %v941_v21  ;;  %v2140_v24 = vmul.f32 %v3954_v17, %v923_v3 }
 0x1ac   : > { %v6339_v56 = vmul.f32 %v3951_v16, %v923_v3  ;;  %v2271_v6 = vmul.f32 %v3985_v39, %v6205_v27  ;;  %v2272_v28 = vmul.f32 %v3985_v39, %v6207_v37  ;;  %v3493_v36 = vunpack.c.l.bf16 %v3696_v41 }
 0x1ad   : > { %v2071_v55 = vadd.f32 %v6222_v59, %v1939_v32  ;;  %v2072_v43 = vadd.f32 %v6247_v29, %v1940_v47  ;;  %v3494_v62 = vunpack.c.h.bf16 %v3696_v41  ;;  %v3497_v25 = vunpack.c.l.bf16 %v3697_v46 }
 0x1ae   : > { %v2403_v21 = vmul.f32 %v4032_v22, %v6285_v8  ;;  %v2404_v3 = vmul.f32 %v4032_v22, %v6293_v7  ;;  %v3498_v30 = vunpack.c.h.bf16 %v3697_v46  ;;  %v691_v5 = vmul.f32 %v5680_v54, %v3493_v36 }
 0x1af   : > { %v2203_v38 = vadd.f32 %v2139_v12, %v2071_v55  ;;  %v2204_v48 = vadd.f32 %v2140_v24, %v2072_v43  ;;  %v692_v19 = vmul.f32 %v5680_v54, %v3494_v62  ;;  %v693_v45 = vmul.f32 %v5680_v54, %v3497_v25 }
 0x1b0   : > { %v694_v59 = vmul.f32 %v5680_v54, %v3498_v30  ;;  %v755_v29 = vadd.f32 %v5689_v61, %v691_v5  ;;  %v1809_v20 = vadd.f32 %v6256_v52, %v6141_v23  ;;  %v1877_v34 = vmul.f32 %v3971_v31, %v6197_v4 }
 0x1b1   : > { %v2335_v41 = vadd.f32 %v2271_v6, %v2203_v38  ;;  %v2336_v32 = vadd.f32 %v2272_v28, %v2204_v48  ;;  %v756_v47 = vadd.f32 %v5689_v61, %v692_v19  ;;  %v757_v12 = vadd.f32 %v5689_v61, %v693_v45 }
 0x1b2   : > { %v758_v24 = vadd.f32 %v5689_v61, %v694_v59  ;;  %v6363_v46 = vmax.f32 %v755_v29, 0.0  ;;  %v1810_v54 = vadd.f32 %v6260_v53, %v6143_v60  ;;  %v1878_v36 = vmul.f32 %v3971_v31, %v6203_v51 }
 0x1b3   : > { %v2467_v23 = vadd.f32 %v2403_v21, %v2335_v41  ;;  %v2468_v52 = vadd.f32 %v2404_v3, %v2336_v32  ;;  %v6369_v4 = vmax.f32 %v756_v47, 0.0  ;;  %v6371_v6 = vmax.f32 %v757_v12, 0.0 }
 0x1b4   : > { %v6373_v28 = vmax.f32 %v758_v24, 0.0  ;;  %v851_v55 = vrot.slane %v6363_v46, 7  ;;  %v1080_v61 = vrot.slane %v6363_v46, 1  ;;  %v1941_v43 = vadd.f32 %v1877_v34, %v1809_v20 }
 0x1b5   : > { %v3635_v62 = vpack.c.bf16 %v2468_v52, %v2467_v23  ;;  %v6378_v60 = vadd.f32 %v6212_v0, %v2467_v23  ;;  %v6381_v51 = vadd.f32 %v6215_v49, %v2468_v52  ;;  %v2921_v53 = vmul.f32 %v2467_v23, %v2467_v23 }
 0x1b6   : > { %v2922_v25 = vmul.f32 %v2468_v52, %v2468_v52  ;;  %v869_v21 = vrot.slane %v6369_v4, 7  ;;  %v905_v3 = vrot.slane %v6373_v28, 7  ;;  %v1098_v30 = vrot.slane %v6369_v4, 1 }
 0x1b7   : > { %v6388_v5 = vmul.f32 %v3977_v35, %v6285_v8  ;;  %3724 = vst [vmem:[%s4235_s9 + $0xc8] sm:$0xff] %v3635_v62   ;;  %v6392_v38 = vadd.f32 %v6226_v2, %v2921_v53  ;;  %v1116_v0 = vrot.slane %v6371_v6, 1  ;;  %v1942_v49 = vadd.f32 %v1878_v36, %v1810_v54 }
 0x1b8   : > { %v6396_v48 = vadd.f32 %v6230_v50, %v2922_v25  ;;  %v960_v19 = vsel %vm908_vm0, %v851_v55, %v869_v21  ;;  %v978_v45 = vsel %vm908_vm0, %v905_v3, %v851_v55  ;;  %v1189_v8 = vsel %vm1137_vm2, %v1080_v61, %v1098_v30 }
 0x1b9   : > { %v1049_v59 = vsel %vm832_vm1, 0.0, %v978_v45  ;;  %v1171_v2 = vsel %vm1137_vm2, %v1098_v30, %v1116_v0  ;;  %v1358_v29 = vmul.f32 %v3935_v9, %v960_v19  ;;  %v1490_v50 = vmul.f32 %v3946_v14, %v6369_v4 }
 0x1ba   : > { %v6413_v20 = vmul.f32 %v3977_v35, %v6293_v7  ;;  %v1489_v34 = vmul.f32 %v3946_v14, %v6363_v46  ;;  %v1621_v41 = vmul.f32 %v3949_v15, %v1189_v8  ;;  %v2073_v32 = vadd.f32 %v6267_v11, %v1941_v43 }
 0x1bb   : > { %v1357_v47 = vmul.f32 %v3935_v9, %v1049_v59  ;;  %v1622_v12 = vmul.f32 %v3949_v15, %v1171_v2  ;;  %v6422_v24 = vmul.f32 %v3951_v16, %v1049_v59  ;;  %v2074_v54 = vadd.f32 %v6312_v26, %v1942_v49 }
 0x1bc   : > { %v6426_v36 = vmul.f32 %v3951_v16, %v960_v19  ;;  %v2141_v7 = vmul.f32 %v3954_v17, %v1049_v59  ;;  %v2142_v23 = vmul.f32 %v3954_v17, %v960_v19  ;;  %v2273_v52 = vmul.f32 %v3985_v39, %v6363_v46 }
 0x1bd   : > { %v1554_v11 = vadd.f32 %v1490_v50, %v1358_v29  ;;  %v6433_v55 = vmul.f32 %v3977_v35, %v1189_v8  ;;  %v2274_v43 = vmul.f32 %v3985_v39, %v6369_v4  ;;  %v2405_v62 = vmul.f32 %v4032_v22, %v1189_v8 }
 0x1be   : > { %v2205_v26 = vadd.f32 %v2141_v7, %v2073_v32  ;;  %v2206_v53 = vadd.f32 %v2142_v23, %v2074_v54  ;;  %v2406_v25 = vmul.f32 %v4032_v22, %v1171_v2  ;;  %v887_v30 = vrot.slane %v6371_v6, 7 }
 0x1bf   : > { %v1553_v49 = vadd.f32 %v1489_v34, %v1357_v47  ;;  %v1134_v19 = vrot.slane %v6373_v28, 1  ;;  %v1491_v45 = vmul.f32 %v3946_v14, %v6371_v6  ;;  %v1492_v59 = vmul.f32 %v3946_v14, %v6373_v28 }
 0x1c0   : > { %v2337_v29 = vadd.f32 %v2273_v52, %v2205_v26  ;;  %v2338_v50 = vadd.f32 %v2274_v43, %v2206_v53  ;;  %v924_v8 = vsel %vm908_vm0, %v887_v30, %v905_v3  ;;  %v942_v32 = vsel %vm908_vm0, %v869_v21, %v887_v30  ;;  %v6857_v26 = vld [vmem:[#allocation7_spill] sm:$0xff] }
 0x1c1   : > { %v6451_v54 = vsel %vm1137_vm2, %v1116_v0, %v1134_v19  ;;  %v1207_v34 = vsel %vm1137_vm2, %v1134_v19, %v1080_v61  ;;  %v1359_v47 = vmul.f32 %v3935_v9, %v942_v32  ;;  %v1360_v14 = vmul.f32 %v3935_v9, %v924_v8 }
 0x1c2   : > { %v6458_v7 = vmul.f32 %v3977_v35, %v1171_v2  ;;  %v2469_v23 = vadd.f32 %v2405_v62, %v2337_v29  ;;  %v2470_v3 = vadd.f32 %v2406_v25, %v2338_v50  ;;  %v6462_v21 = vsel %vm1064_vm4, 0.0, %v1207_v34  ;;  %v3699_v34 = vld [vmem:[%s3927_s20 + $0xf8] sm:$0xff]  }
 0x1c3   : > { %v1555_v0 = vadd.f32 %v1491_v45, %v1359_v47  ;;  %v1556_v52 = vadd.f32 %v1492_v59, %v1360_v14  ;;  %v1623_v43 = vmul.f32 %v3949_v15, %v6451_v54  ;;  %v1624_v61 = vmul.f32 %v3949_v15, %v6462_v21 }
 0x1c4   : > { %v6468_v9 = vadd.f32 %v1621_v41, %v1553_v49  ;;  %v6470_v2 = vadd.f32 %v1622_v12, %v1554_v11  ;;  %v3640_v62 = vpack.c.bf16 %v2470_v3, %v2469_v23  ;;  %v1811_v53 = vadd.f32 %v6333_v57, %v6857_v26  ;;  %v6858_v41 = vld [vmem:[#allocation9_spill] sm:$0xff]  ;;  %v3698_v11 = vld [vmem:[%s3927_s20 + $0xf0] sm:$0xff]  }
 0x1c5   : > { %v6476_v25 = vadd.f32 %v6302_v44, %v2469_v23  ;;  %v6479_v30 = vadd.f32 %v6305_v63, %v2470_v3  ;;  %v2923_v19 = vmul.f32 %v2469_v23, %v2469_v23  ;;  %v6482_v45 = vmul.f32 %v3951_v16, %v942_v32 }
 0x1c6   : > { %3725 = vst [vmem:[%s4235_s9 + $0xd0] sm:$0xff] %v3640_v62   ;;  %v2924_v15 = vmul.f32 %v2470_v3, %v2470_v3  ;;  %v1812_v12 = vadd.f32 %v6339_v56, %v6858_v41  ;;  %v1879_v57 = vmul.f32 %v3971_v31, %v6205_v27  ;;  %v1880_v44 = vmul.f32 %v3971_v31, %v6207_v37 }
 0x1c7   : > { %v6492_v49 = vadd.f32 %v1623_v43, %v1555_v0  ;;  %v6494_v63 = vadd.f32 %v1624_v61, %v1556_v52  ;;  %v6497_v59 = vmul.f32 %v3951_v16, %v924_v8  ;;  %v2143_v29 = vmul.f32 %v3954_v17, %v942_v32  ;;  %v6521_v61 = vld [vmem:[%s6786_s4] ss:$0 sm:$0xff] }
 0x1c8   : > { %v1943_v56 = vadd.f32 %v1879_v57, %v1811_v53  ;;  %v1944_v27 = vadd.f32 %v1880_v44, %v1812_v12  ;;  %v2144_v50 = vmul.f32 %v3954_v17, %v924_v8  ;;  %v2275_v37 = vmul.f32 %v3985_v39, %v6371_v6 }
 0x1c9   : > { %v2276_v47 = vmul.f32 %v3985_v39, %v6373_v28  ;;  %v2407_v32 = vmul.f32 %v4032_v22, %v6451_v54  ;;  %v2408_v14 = vmul.f32 %v4032_v22, %v6462_v21  ;;  %v3501_v23 = vunpack.c.l.bf16 %v3698_v11 }
 0x1ca   : > { %v2075_v3 = vadd.f32 %v6388_v5, %v1943_v56  ;;  %v2076_v8 = vadd.f32 %v6413_v20, %v1944_v27  ;;  %v3502_v0 = vunpack.c.h.bf16 %v3698_v11  ;;  %v3505_v52 = vunpack.c.l.bf16 %v3699_v34 }
 0x1cb   : > { %v3506_v43 = vunpack.c.h.bf16 %v3699_v34  ;;  %v695_v62 = vmul.f32 %v6521_v61, %v3501_v23  ;;  %v1813_v26 = vadd.f32 %v6422_v24, %v6307_v42  ;;  %v1814_v53 = vadd.f32 %v6426_v36, %v6309_v33  ;;  %v6540_v42 = vld [vmem:[%s6786_s4 + $0x1] ss:$0 sm:$0xff] }
 0x1cc   : > { %v2207_v5 = vadd.f32 %v2143_v29, %v2075_v3  ;;  %v2208_v20 = vadd.f32 %v2144_v50, %v2076_v8  ;;  %v696_v41 = vmul.f32 %v6521_v61, %v3502_v0  ;;  %v697_v12 = vmul.f32 %v6521_v61, %v3505_v52 }
 0x1cd   : > { %v698_v57 = vmul.f32 %v6521_v61, %v3506_v43  ;;  %v759_v33 = vadd.f32 %v6540_v42, %v695_v62  ;;  %v1881_v24 = vmul.f32 %v3971_v31, %v6363_v46  ;;  %v1882_v36 = vmul.f32 %v3971_v31, %v6369_v4 }
 0x1ce   : > { %v2339_v44 = vadd.f32 %v2275_v37, %v2207_v5  ;;  %v2340_v11 = vadd.f32 %v2276_v47, %v2208_v20  ;;  %v760_v29 = vadd.f32 %v6540_v42, %v696_v41  ;;  %v761_v56 = vadd.f32 %v6540_v42, %v697_v12 }
 0x1cf   : > { %v6550_v27 = vadd.f32 %v6316_v58, %v2923_v19  ;;  %v6553_v50 = vadd.f32 %v6326_v13, %v2924_v15  ;;  %v762_v34 = vadd.f32 %v6540_v42, %v698_v57  ;;  %v6556_v23 = vmax.f32 %v759_v33, 0.0 }
 0x1d0   : > { %v2471_v46 = vadd.f32 %v2407_v32, %v2339_v44  ;;  %v2472_v4 = vadd.f32 %v2408_v14, %v2340_v11  ;;  %v6561_v37 = vmax.f32 %v760_v29, 0.0  ;;  %v1945_v47 = vadd.f32 %v1881_v24, %v1813_v26 }
 0x1d1   : > { %v6563_v3 = vmax.f32 %v761_v56, 0.0  ;;  %v6565_v8 = vmax.f32 %v762_v34, 0.0  ;;  %v852_v58 = vrot.slane %v6556_v23, 7  ;;  %v1946_v13 = vadd.f32 %v1882_v36, %v1814_v53 }
 0x1d2   : > { %v3645_v19 = vpack.c.bf16 %v2472_v4, %v2471_v46  ;;  %v6569_v15 = vadd.f32 %v6381_v51, %v2472_v4  ;;  %v2925_v0 = vmul.f32 %v2471_v46, %v2471_v46  ;;  %v1081_v52 = vrot.slane %v6556_v23, 1 }
 0x1d3   : > { %v2926_v32 = vmul.f32 %v2472_v4, %v2472_v4  ;;  %v870_v14 = vrot.slane %v6561_v37, 7  ;;  %v906_v43 = vrot.slane %v6565_v8, 7  ;;  %v1099_v62 = vrot.slane %v6561_v37, 1 }
 0x1d4   : > { %v2015_v26 = vmul.f32 %v3977_v35, %v6451_v54  ;;  %v2016_v53 = vmul.f32 %v3977_v35, %v6462_v21  ;;  %3726 = vst [vmem:[%s4235_s9 + $0xd8] sm:$0xff] %v3645_v19   ;;  %v1117_v51 = vrot.slane %v6563_v3, 1  ;;  %v2077_v5 = vadd.f32 %v6433_v55, %v1945_v47 }
 0x1d5   : > { %v6583_v20 = vadd.f32 %v6378_v60, %v2471_v46  ;;  %v6586_v41 = vadd.f32 %v6396_v48, %v2926_v32  ;;  %v979_v12 = vsel %vm908_vm0, %v906_v43, %v852_v58  ;;  %v2078_v57 = vadd.f32 %v6458_v7, %v1946_v13 }
 0x1d6   : > { %v6592_v54 = vadd.f32 %v6392_v38, %v2925_v0  ;;  %v961_v21 = vsel %vm908_vm0, %v852_v58, %v870_v14  ;;  %v1053_v55 = vsel %vm832_vm1, 0.0, %v979_v12  ;;  %v2277_v60 = vmul.f32 %v3985_v39, %v6556_v23 }
 0x1d7   : > { %v1172_v48 = vsel %vm1137_vm2, %v1099_v62, %v1117_v51  ;;  %v1190_v33 = vsel %vm1137_vm2, %v1081_v52, %v1099_v62  ;;  %v2145_v7 = vmul.f32 %v3954_v17, %v1053_v55  ;;  %v2146_v38 = vmul.f32 %v3954_v17, %v961_v21 }
 0x1d8   : > { %v2278_v24 = vmul.f32 %v3985_v39, %v6561_v37  ;;  %v2409_v36 = vmul.f32 %v4032_v22, %v1190_v33  ;;  %v2410_v44 = vmul.f32 %v4032_v22, %v1172_v48  ;;  %v888_v11 = vrot.slane %v6563_v3, 7 }
 0x1d9   : > { %v2209_v29 = vadd.f32 %v2145_v7, %v2077_v5  ;;  %v2210_v56 = vadd.f32 %v2146_v38, %v2078_v57  ;;  %v1135_v34 = vrot.slane %v6565_v8, 1  ;;  %v1815_v46 = vadd.f32 %v6482_v45, %v6328_v18 }
 0x1da   : > { %v6616_v4 = vmul.f32 %v3951_v16, %v961_v21  ;;  %v6619_v47 = vmul.f32 %v3977_v35, %v1190_v33  ;;  %v1816_v58 = vadd.f32 %v6497_v59, %v6330_v40  ;;  %v1883_v13 = vmul.f32 %v3971_v31, %v6371_v6  ;;  %v3372_v33 = vld [vmem:[%s417_s11] sm:$0xff]  }
 0x1db   : > { %v1753_v19 = vmul.f32 %v3951_v16, %v1053_v55  ;;  %v2341_v0 = vadd.f32 %v2277_v60, %v2209_v29  ;;  %v2342_v32 = vadd.f32 %v2278_v24, %v2210_v56  ;;  %v1208_v18 = vsel %vm1137_vm2, %v1135_v34, %v1081_v52 }
 0x1dc   : > { %v925_v45 = vsel %vm908_vm0, %v888_v11, %v906_v43  ;;  %v943_v62 = vsel %vm908_vm0, %v870_v14, %v888_v11  ;;  %v1154_v5 = vsel %vm1137_vm2, %v1117_v51, %v1135_v34  ;;  %v1884_v40 = vmul.f32 %v3971_v31, %v6373_v28 }
 0x1dd   : > { %v2473_v6 = vadd.f32 %v2409_v36, %v2341_v0  ;;  %v2474_v59 = vadd.f32 %v2410_v44, %v2342_v32  ;;  %v1285_v52 = vsel %vm1064_vm4, 0.0, %v1208_v18  ;;  %v1947_v12 = vadd.f32 %v1883_v13, %v1815_v46  ;;  %v3668_v36 = vld [vmem:[%s417_s11 + $0x8] sm:$0xff]  }
 0x1de   : > { %v6643_v14 = vmul.f32 %v3977_v35, %v1172_v48  ;;  %v1948_v43 = vadd.f32 %v1884_v40, %v1816_v58  ;;  %v2147_v51 = vmul.f32 %v3954_v17, %v943_v62  ;;  %v2148_v28 = vmul.f32 %v3954_v17, %v925_v45 }
 0x1df   : > { %v3650_v57 = vpack.c.bf16 %v2474_v59, %v2473_v6  ;;  %v1755_v21 = vmul.f32 %v3951_v16, %v943_v62  ;;  %v6649_v55 = vmul.f32 %v3951_v16, %v925_v45  ;;  %v6652_v60 = vmul.f32 %v3977_v35, %v1154_v5 }
 0x1e0   : > { %v6655_v7 = vmul.f32 %v3977_v35, %v1285_v52  ;;  %v2079_v48 = vadd.f32 %v2015_v26, %v1947_v12  ;;  %v2080_v38 = vadd.f32 %v2016_v53, %v1948_v43  ;;  %v2279_v24 = vmul.f32 %v3985_v39, %v6563_v3 }
 0x1e1   : > { %3727 = vst [vmem:[%s4235_s9 + $0xe0] sm:$0xff] %v3650_v57   ;;  %v6661_v44 = vadd.f32 %v6476_v25, %v2473_v6  ;;  %v6664_v16 = vadd.f32 %v6479_v30, %v2474_v59  ;;  %v2280_v11 = vmul.f32 %v3985_v39, %v6565_v8  ;;  %v2411_v29 = vmul.f32 %v4032_v22, %v1154_v5 }
 0x1e2   : > { %v2211_v35 = vadd.f32 %v2147_v51, %v2079_v48  ;;  %v2212_v26 = vadd.f32 %v2148_v28, %v2080_v38  ;;  %v2412_v53 = vmul.f32 %v4032_v22, %v1285_v52  ;;  %v3373_v56 = vunpack.c.l.bf16 %v3372_v33 }
 0x1e3   : > { %v2927_v34 = vmul.f32 %v2473_v6, %v2473_v6  ;;  %v3374_v46 = vunpack.c.h.bf16 %v3372_v33  ;;  %v3377_v58 = vunpack.c.l.bf16 %v3668_v36  ;;  %v3378_v25 = vunpack.c.h.bf16 %v3668_v36 }
 0x1e4   : > { %v2928_v13 = vmul.f32 %v2474_v59, %v2474_v59  ;;  %v2343_v0 = vadd.f32 %v2279_v24, %v2211_v35  ;;  %v2344_v30 = vadd.f32 %v2280_v11, %v2212_v26  ;;  %v488_v32 = vmul.f32 %v6521_v61, %v3373_v56 }
 0x1e5   : > { %v489_v18 = vmul.f32 %v6521_v61, %v3374_v46  ;;  %v490_v45 = vmul.f32 %v6521_v61, %v3377_v58  ;;  %v491_v62 = vmul.f32 %v6521_v61, %v3378_v25  ;;  %v501_v5 = vstv %s500_s13 }
 0x1e6   : > { %v6676_v40 = vadd.f32 %v2411_v29, %v2343_v0  ;;  %v6678_v52 = vadd.f32 %v2412_v53, %v2344_v30  ;;  %v492_v6 = vadd.f32 %v6540_v42, %v488_v32  ;;  %v1817_v59 = vadd.f32 %v1753_v19, %v6468_v9 }
 0x1e7   : > { %v493_v12 = vadd.f32 %v6540_v42, %v489_v18  ;;  %v494_v43 = vadd.f32 %v6540_v42, %v490_v45  ;;  %v495_v51 = vadd.f32 %v6540_v42, %v491_v62  ;;  %v1885_v28 = vmul.f32 %v3971_v31, %v6556_v23 }
 0x1e8   : > { %v6688_v61 = vadd.f32 %v6550_v27, %v2927_v34  ;;  %v6691_v57 = vadd.f32 %v6553_v50, %v2928_v13  ;;  %v3655_v33 = vpack.c.bf16 %v6678_v52, %v6676_v40  ;;  %vm502_vm5 = vcmp.eq.s32.totalorder %v501_v5, 1 }
 0x1e9   : > { %v496_v9 = vmax.f32 %v492_v6, 0.0  ;;  %v497_v19 = vmax.f32 %v493_v12, 0.0  ;;  %v498_v48 = vmax.f32 %v494_v43, 0.0  ;;  %v1818_v38 = vadd.f32 %v6616_v4, %v6470_v2 }
 0x1ea   : > { %3728 = vst [vmem:[%s4235_s9 + $0xe8] sm:$0xff] %v3655_v33   ;;  %v6700_v42 = vmul.f32 %v6676_v40, %v6676_v40  ;;  %v499_v27 = vmax.f32 %v495_v51, 0.0  ;;  %v1886_v50 = vmul.f32 %v3971_v31, %v6561_v37  ;;  %v1949_v23 = vadd.f32 %v1885_v28, %v1817_v59 }
 0x1eb   : > { %v503_v24 = vsel %vm502_vm5, 0.0, %v496_v9  ;;  %v504_v36 = vsel %vm502_vm5, 0.0, %v497_v19  ;;  %v505_v11 = vsel %vm502_vm5, 0.0, %v498_v48  ;;  %v1819_v29 = vadd.f32 %v1755_v21, %v6492_v49 }
 0x1ec   : > { %v506_v35 = vsel %vm502_vm5, 0.0, %v499_v27  ;;  %v853_v26 = vrot.slane %v503_v24, 7  ;;  %v871_v53 = vrot.slane %v504_v36, 7  ;;  %v1082_v56 = vrot.slane %v503_v24, 1 }
 0x1ed   : > { %v907_v2 = vrot.slane %v506_v35, 7  ;;  %v1100_v4 = vrot.slane %v504_v36, 1  ;;  %v1118_v34 = vrot.slane %v505_v11, 1  ;;  %v1950_v46 = vadd.f32 %v1886_v50, %v1818_v38 }
 0x1ee   : > { %v962_v58 = vsel %vm908_vm0, %v853_v26, %v871_v53  ;;  %v2081_v25 = vadd.f32 %v6619_v47, %v1949_v23  ;;  %v2281_v37 = vmul.f32 %v3985_v39, %v503_v24  ;;  %v2282_v13 = vmul.f32 %v3985_v39, %v504_v36 }
 0x1ef   : > { %v980_v49 = vsel %vm908_vm0, %v907_v2, %v853_v26  ;;  %v1173_v21 = vsel %vm1137_vm2, %v1100_v4, %v1118_v34  ;;  %v1191_v0 = vsel %vm1137_vm2, %v1082_v56, %v1100_v4  ;;  %v2082_v30 = vadd.f32 %v6643_v14, %v1950_v46 }
 0x1f0   : > { %v1057_v32 = vsel %vm832_vm1, 0.0, %v980_v49  ;;  %v2150_v47 = vmul.f32 %v3954_v17, %v962_v58  ;;  %v2413_v18 = vmul.f32 %v4032_v22, %v1191_v0  ;;  %v2414_v45 = vmul.f32 %v4032_v22, %v1173_v21 }
 0x1f1   : > { %v2149_v62 = vmul.f32 %v3954_v17, %v1057_v32  ;;  %v889_v5 = vrot.slane %v505_v11, 7  ;;  %v1136_v6 = vrot.slane %v506_v35, 1  ;;  %v1820_v59 = vadd.f32 %v6649_v55, %v6494_v63 }
 0x1f2   : > { %v2214_v12 = vadd.f32 %v2150_v47, %v2082_v30  ;;  %v1887_v14 = vmul.f32 %v3971_v31, %v6563_v3  ;;  %v1888_v43 = vmul.f32 %v3971_v31, %v6565_v8  ;;  %v2283_v51 = vmul.f32 %v3985_v39, %v505_v11 }
 0x1f3   : > { %v2213_v28 = vadd.f32 %v2149_v62, %v2081_v25  ;;  %v926_v33 = vsel %vm908_vm0, %v889_v5, %v907_v2  ;;  %v944_v9 = vsel %vm908_vm0, %v871_v53, %v889_v5  ;;  %v1155_v19 = vsel %vm1137_vm2, %v1118_v34, %v1136_v6 }
 0x1f4   : > { %v2346_v63 = vadd.f32 %v2282_v13, %v2214_v12  ;;  %v1209_v55 = vsel %vm1137_vm2, %v1136_v6, %v1082_v56  ;;  %v1951_v3 = vadd.f32 %v1887_v14, %v1819_v29  ;;  %v1952_v48 = vadd.f32 %v1888_v43, %v1820_v59 }
 0x1f5   : > { %v2345_v38 = vadd.f32 %v2281_v37, %v2213_v28  ;;  %v1289_v31 = vsel %vm1064_vm4, 0.0, %v1209_v55  ;;  %v2151_v8 = vmul.f32 %v3954_v17, %v944_v9  ;;  %v2152_v27 = vmul.f32 %v3954_v17, %v926_v33 }
 0x1f6   : > { %v2478_v50 = vadd.f32 %v2414_v45, %v2346_v63  ;;  %v2083_v23 = vadd.f32 %v6652_v60, %v1951_v3  ;;  %v2084_v24 = vadd.f32 %v6655_v7, %v1952_v48  ;;  %v2284_v36 = vmul.f32 %v3985_v39, %v506_v35 }
 0x1f7   : > { %v2930_v1 = vmul.f32 %v6678_v52, %v6678_v52  ;;  %v2477_v11 = vadd.f32 %v2413_v18, %v2345_v38  ;;  %v2415_v29 = vmul.f32 %v4032_v22, %v1155_v19  ;;  %v2416_v10 = vmul.f32 %v4032_v22, %v1289_v31 }
 0x1f8   : > { %v2830_v26 = vadd.f32 %v6664_v16, %v2478_v50  ;;  %v2932_v53 = vmul.f32 %v2478_v50, %v2478_v50  ;;  %v2215_v17 = vadd.f32 %v2151_v8, %v2083_v23  ;;  %v2216_v56 = vadd.f32 %v2152_v27, %v2084_v24 }
 0x1f9   : > { %v3660_v60 = vpack.c.bf16 %v2478_v50, %v2477_v11  ;;  %v2815_v7 = vadd.f32 %v6661_v44, %v2477_v11  ;;  %v2931_v2 = vmul.f32 %v2477_v11, %v2477_v11  ;;  %v2844_v39 = vadd.f32 %v6583_v20, %v6676_v40 }
 0x1fa   : > { %v2964_v35 = vadd.f32 %v6691_v57, %v2932_v53  ;;  %v2347_v4 = vadd.f32 %v2283_v51, %v2215_v17  ;;  %v2348_v34 = vadd.f32 %v2284_v36, %v2216_v56  ;;  %v2859_v22 = vadd.f32 %v6569_v15, %v6678_v52 }
 0x1fb   : > { %3729 = vst [vmem:[%s4235_s9 + $0xf0] sm:$0xff] %v3660_v60   ;;  %v2949_v16 = vadd.f32 %v6688_v61, %v2931_v2  ;;  %v2861_v46 = vadd.f32 %v2830_v26, %v2815_v7  ;;  %v2978_v44 = vadd.f32 %v6592_v54, %v6700_v42  ;;  %v2993_v20 = vadd.f32 %v6586_v41, %v2930_v1 }
 0x1fc   : > { %v2479_v58 = vadd.f32 %v2415_v29, %v2347_v4  ;;  %v2480_v25 = vadd.f32 %v2416_v10, %v2348_v34 }
 0x1fd   : > { %v2995_v40 = vadd.f32 %v2964_v35, %v2949_v16 }
 0x1fe   : > { %v3665_v57 = vpack.c.bf16 %v2480_v25, %v2479_v58  ;;  %v2845_v37 = vadd.f32 %v2844_v39, %v2479_v58  ;;  %v2933_v13 = vmul.f32 %v2479_v58, %v2479_v58  ;;  %v2934_v49 = vmul.f32 %v2480_v25, %v2480_v25 }
 0x1ff   : > { %v2860_v15 = vadd.f32 %v2859_v22, %v2480_v25 }
 0x200   : > { %3730 = vst [vmem:[%s4235_s9 + $0xf8] sm:$0xff] %v3665_v57   ;;  %v2862_v52 = vadd.f32 %v2861_v46, %v2845_v37  ;;  %v2979_v21 = vadd.f32 %v2978_v44, %v2933_v13  ;;  %v2994_v61 = vadd.f32 %v2993_v20, %v2934_v49 }
 0x202   : > { %v2863_v0 = vadd.f32 %v2862_v52, %v2860_v15  ;;  %v2996_v30 = vadd.f32 %v2995_v40, %v2979_v21 }
 0x204   : > { %v2864_v54 = vrot.slane %v2863_v0, 4  ;;  %v2997_v42 = vadd.f32 %v2996_v30, %v2994_v61 }
 0x206   : > { %v2865_v32 = vadd.f32 %v2864_v54, %v2863_v0  ;;  %v2998_v47 = vrot.slane %v2997_v42, 4 }
 0x208   : > { %v2866_v41 = vrot.slane %v2865_v32, 2  ;;  %v2999_v18 = vadd.f32 %v2998_v47, %v2997_v42 }
 0x20a   : > { %v2867_v45 = vadd.f32 %v2866_v41, %v2865_v32  ;;  %v3000_v62 = vrot.slane %v2999_v18, 2 }
 0x20c   : > { %v2868_v5 = vrot.slane %v2867_v45, 1  ;;  %v3001_v6 = vadd.f32 %v3000_v62, %v2999_v18 }
 0x20e   : > { %v2869_v59 = vadd.f32 %v2868_v5, %v2867_v45  ;;  %v3002_v12 = vrot.slane %v3001_v6, 1 }
 0x210   : > { %2870 = vst [vmem:[%s438_s15] sm:$0x1] %v2869_v59  ;;  %v3003_v14 = vadd.f32 %v3002_v12, %v3001_v6 }
 0x212   : > { %3004 = vst [vmem:[%s438_s15 + $0x1] sm:$0x1] %v3003_v14 }
 0x213 PF: > { %s17_s25 = sadd.s32 1, %s3815_s25   ;;  %s6860_s21 = smov %s3807_s23 }
 0x214   : > { %p14_p13 = scmp.ge.s32.totalorder %s17_s25, 6   ;;  %s6861_s22 = smov %s3811_s24 }
 0x215   : > { %s6862_s23 = smov %s6865_s26  ;;  %s6863_s24 = smov %s6869_s27 }
 0x216   :  { %16 = sbr.rel (!%p14_p13) target bundleno = 3 (0x3), region = 88 }

</bundles_post_ra>
